<compile_context>
chip_gen: v7x
topology: tpu7x:2x2x1
jax: 0.10.0
libtpu: 0.0.40
codegen_flags: <defaults>
</compile_context>

<pallas_src>
import functools

import numpy as np

import jax
import jax.numpy as jnp
from jax import lax
from jax.experimental import pallas as pl
from jax.experimental.pallas import tpu as pltpu


# ----------------------------------------------------------------------------
# In-kernel building blocks (pure value math on (rows, cols) matrices)
# ----------------------------------------------------------------------------
def _conv_block(a, w_ref, b_ref, *, seq, hl, wl, cin, cout):
    """3x3 SAME conv (+folded BN) + ReLU.

    a:      (seq*hl, wl*cin)  activation, rows=(frame, row), cols=(col, chan)
    w_ref:  (3, wl*cin, wl*cout) pre-packed per-dy weight matrices
    b_ref:  (1, wl*cout) folded bias (tiled over cols)
    """
    rows = seq * hl
    cols_in = wl * cin
    zrow = jnp.zeros((1, cols_in), jnp.float32)
    ap = jnp.concatenate([zrow, a, zrow], axis=0)               # (rows+2, cols_in)
    hidx = lax.broadcasted_iota(jnp.int32, (rows, cols_in), 0) % hl
    acc = jnp.zeros((rows, wl * cout), jnp.float32)
    for dy in range(3):
        tap = ap[dy:dy + rows, :]
        if dy == 0:        # row above crosses the frame boundary at h == 0
            tap = jnp.where(hidx == 0, 0.0, tap)
        elif dy == 2:      # row below crosses the frame boundary at h == hl-1
            tap = jnp.where(hidx == hl - 1, 0.0, tap)
        acc = acc + jnp.dot(tap, w_ref[dy], preferred_element_type=jnp.float32)
    return jnp.maximum(acc + b_ref[...], 0.0)                   # (rows, wl*cout)


def _pool_block(y, *, seq, hl, wl, cout):
    """2x2 max-pool on a (seq*hl, wl*cout) activation."""
    rows = seq * hl
    half = rows // 2
    # adjacent-row max via two 0/1 selection matmuls (no strided loads needed)
    ii = lax.broadcasted_iota(jnp.int32, (half, rows), 0)
    jj = lax.broadcasted_iota(jnp.int32, (half, rows), 1)
    sel_e = (jj == 2 * ii).astype(jnp.float32)
    sel_o = (jj == 2 * ii + 1).astype(jnp.float32)
    hp = jnp.maximum(
        jnp.dot(sel_e, y, preferred_element_type=jnp.float32),
        jnp.dot(sel_o, y, preferred_element_type=jnp.float32))  # (half, wl*cout)
    # adjacent column-block max (static lane slices)
    blocks = []
    for w in range(wl // 2):
        lo = hp[:, (2 * w) * cout:(2 * w + 1) * cout]
        hi = hp[:, (2 * w + 1) * cout:(2 * w + 2) * cout]
        blocks.append(jnp.maximum(lo, hi))
    return blocks[0] if len(blocks) == 1 else jnp.concatenate(blocks, axis=1)


# ----------------------------------------------------------------------------
# The single fused forward kernel (one batch element per grid step)
# ----------------------------------------------------------------------------
def _fused_forward_kernel(x_ref, cw1, cb1, cw2, cb2, cw3, cb3,
                          w1, b1, w2, b2, w3, b3, hw1, hb1, hw2, hb2,
                          out_ref, *, seq, hh, ww, chans, num_heads, num_models):
    c1, c2, c3 = chans
    x = x_ref[0].astype(jnp.float32)                 # (seq*H, W)

    a = _conv_block(x, cw1, cb1, seq=seq, hl=hh, wl=ww, cin=1, cout=c1)
    a = _pool_block(a, seq=seq, hl=hh, wl=ww, cout=c1)

    a = _conv_block(a, cw2, cb2, seq=seq, hl=hh // 2, wl=ww // 2, cin=c1, cout=c2)
    a = _pool_block(a, seq=seq, hl=hh // 2, wl=ww // 2, cout=c2)

    a = _conv_block(a, cw3, cb3, seq=seq, hl=hh // 4, wl=ww // 4, cin=c2, cout=c3)
    a = _pool_block(a, seq=seq, hl=hh // 4, wl=ww // 4, cout=c3)
    # a: (seq*h_out, w_out*c3); rows=(frame, h'), cols=(w', c)

    h_out, w_out = hh // 8, ww // 8
    rows3 = seq * h_out
    # gather per-frame feature rows -> feat (seq, h_out*w_out*c3), (h', w', c) order
    si = lax.broadcasted_iota(jnp.int32, (seq, rows3), 0)
    rj = lax.broadcasted_iota(jnp.int32, (seq, rows3), 1)
    parts = []
    for hp_ in range(h_out):
        sel = (rj == si * h_out + hp_).astype(jnp.float32)
        parts.append(jnp.dot(sel, a, preferred_element_type=jnp.float32))
    feat = parts[0] if len(parts) == 1 else jnp.concatenate(parts, axis=1)

    # FC trunk (BN folded, w1 rows pre-permuted to the kernel's feature order);
    # the temporal mean is a post-matmul row-sum (mean commutes with Linear).
    g = jnp.sum(jnp.dot(feat, w1[...], preferred_element_type=jnp.float32),
                axis=0, keepdims=True) * (1.0 / seq) + b1[...]
    h1 = jnp.maximum(g, 0.0)                                      # (1, 512)
    h2 = jnp.maximum(jnp.dot(h1, w2[...], preferred_element_type=jnp.float32)
                     + b2[...], 0.0)                              # (1, 256)
    fc = jnp.maximum(jnp.dot(h2, w3[...], preferred_element_type=jnp.float32)
                     + b3[...], 0.0)                              # (1, hidden)

    # all 4 policy heads + the value head fused into two matmuls
    hhid = jnp.maximum(jnp.dot(fc, hw1[...], preferred_element_type=jnp.float32)
                       + hb1[...], 0.0)                           # (1, 4*128+64)
    lg = jnp.dot(hhid, hw2[...], preferred_element_type=jnp.float32) + hb2[...]

    # per-head softmax, written straight into static lane slices of the output
    for h in range(num_heads):
        sl = lg[:, h * num_models:(h + 1) * num_models]
        m = jnp.max(sl, axis=-1, keepdims=True)
        e = jnp.exp(sl - m)
        denom = jnp.sum(e, axis=-1, keepdims=True)
        out_ref[0, :, h * num_models:(h + 1) * num_models] = (
            e * pl.reciprocal(denom, approx=True))
    out_ref[0, :, num_heads * num_models:] = lg[:, num_heads * num_models:]


# ----------------------------------------------------------------------------
# Wrapper
# ----------------------------------------------------------------------------
def model_forward(x, params):
    """x: (B, S, H, W) float32 (the torch 4-D branch with dim-1 > 1)."""
    B, S, H, W = x.shape
    hidden = params["w3"].shape[1]
    nh = 4                                         # torch builds exactly 4 heads
    nm = (params["hw2"].shape[1] - 1) // nh
    nout = nh * nm + 1
    c1 = params["cb1"].shape[1] // W
    c2 = params["cb2"].shape[1] // (W // 2)
    c3 = hidden
    x2 = x.reshape(B, S * H, W)                    # metadata-only reshape

    kernel = functools.partial(
        _fused_forward_kernel, seq=S, hh=H, ww=W, chans=(c1, c2, c3),
        num_heads=nh, num_models=nm)

    weight_names = ("cw1", "cb1", "cw2", "cb2", "cw3", "cb3",
                    "w1", "b1", "w2", "b2", "w3", "b3",
                    "hw1", "hb1", "hw2", "hb2")
    weights = [params[k] for k in weight_names]

    def _resident(a):                              # whole array, VMEM-resident
        nd = a.ndim
        return pl.BlockSpec(a.shape, lambda b, _nd=nd: (0,) * _nd)

    out = pl.pallas_call(
        kernel,
        out_shape=jax.ShapeDtypeStruct((B, 1, nout), jnp.float32),
        grid=(B,),
        in_specs=[pl.BlockSpec((1, S * H, W), lambda b: (b, 0, 0))]
        + [_resident(w) for w in weights],
        out_specs=pl.BlockSpec((1, 1, nout), lambda b: (b, 0, 0)),
        compiler_params=pltpu.CompilerParams(
            dimension_semantics=("parallel",)),       # megacore split on v7x
    )(x2, *weights)

    probs = out[:, 0, :nh * nm].reshape(B, nh, nm)
    value = out[:, 0, nh * nm:]
    return probs, value


# ----------------------------------------------------------------------------
# Deterministic parameter init (BN eval stats folded, all f32)
# ----------------------------------------------------------------------------
def _bn_fold(key, ch):
    k1, k2, k3, k4 = jax.random.split(key, 4)
    gamma = 1.0 + 0.1 * jax.random.normal(k1, (ch,), jnp.float32)
    beta = 0.1 * jax.random.normal(k2, (ch,), jnp.float32)
    mean = 0.05 * jax.random.normal(k3, (ch,), jnp.float32)
    var = 1.0 + 0.1 * jnp.abs(jax.random.normal(k4, (ch,), jnp.float32))
    s = gamma / jnp.sqrt(var + 1e-5)
    t = beta - mean * s
    return s, t


def _conv_bn(key, cin, cout):
    k1, k2, k3 = jax.random.split(key, 3)
    w = jax.random.normal(k1, (3, 3, cin, cout), jnp.float32) * (cin * 9) ** -0.5
    b = 0.05 * jax.random.normal(k2, (cout,), jnp.float32)
    s, t = _bn_fold(k3, cout)
    return w * s[None, None, None, :], b * s + t            # HWIO, (cout,)


def _conv_rowmat(w_hwio, b, wl):
    """Pack a (3,3,Cin,Cout) conv into 3 per-dy (wl*Cin, wl*Cout) matrices."""
    w = np.asarray(w_hwio)
    bb = np.asarray(b)
    cin, cout = w.shape[2], w.shape[3]
    m = np.zeros((3, wl * cin, wl * cout), np.float32)
    for dy in range(3):
        for xo in range(wl):
            for dx in range(3):
                xi = xo + dx - 1
                if 0 <= xi < wl:                 # x-boundary zeros baked in
                    m[dy, xi * cin:(xi + 1) * cin,
                      xo * cout:(xo + 1) * cout] = w[dy, dx]
    bias = np.tile(bb, wl)[None, :].astype(np.float32)       # (1, wl*cout)
    return jnp.asarray(m), jnp.asarray(bias)


def _linear_bn(key, fin, fout):
    k1, k2, k3 = jax.random.split(key, 3)
    w = jax.random.normal(k1, (fin, fout), jnp.float32) * fin ** -0.5
    b = 0.05 * jax.random.normal(k2, (fout,), jnp.float32)
    s, t = _bn_fold(k3, fout)
    return w * s[None, :], (b * s + t)[None, :]


def _linear(key, fin, fout):
    k1, k2 = jax.random.split(key, 2)
    w = jax.random.normal(k1, (fin, fout), jnp.float32) * fin ** -0.5
    b = 0.05 * jax.random.normal(k2, (fout,), jnp.float32)
    return w, b[None, :]


def init_params(key, hidden_dim=32, num_models=4, num_heads=4,
                input_size=(16, 16)):
    H, W = input_size
    h_out, w_out = H // 8, W // 8
    feature_size = hidden_dim * h_out * w_out
    keys = jax.random.split(key, 16)

    convs_ref = [_conv_bn(keys[0], 1, 16),
                 _conv_bn(keys[1], 16, 32),
                 _conv_bn(keys[2], 32, hidden_dim)]
    cw1, cb1 = _conv_rowmat(*convs_ref[0], W)
    cw2, cb2 = _conv_rowmat(*convs_ref[1], W // 2)
    cw3, cb3 = _conv_rowmat(*convs_ref[2], W // 4)

    w1, b1 = _linear_bn(keys[3], feature_size, 512)
    w2, b2 = _linear_bn(keys[4], 512, 256)
    w3, b3 = _linear_bn(keys[5], 256, hidden_dim)

    # fold torch's (c, h', w') feature-flatten order into w1's rows: kernel
    # features are ordered (h', w', c)
    perm = np.zeros(feature_size, np.int64)
    idx = 0
    for hp_ in range(h_out):
        for wp_ in range(w_out):
            for c in range(hidden_dim):
                perm[idx] = (c * h_out + hp_) * w_out + wp_
                idx += 1
    w1_k = jnp.asarray(np.asarray(w1)[perm, :])

    pw1, pb1, pw2, pb2 = [], [], [], []
    for i in range(num_heads):
        wa, ba = _linear(keys[6 + i], hidden_dim, 128)
        wb, bb = _linear(keys[10 + i], 128, num_models)
        pw1.append(wa); pb1.append(ba); pw2.append(wb); pb2.append(bb)
    vw1, vb1 = _linear(keys[14], hidden_dim, 64)
    vw2, vb2 = _linear(keys[15], 64, 1)

    # fused head weights: layer 1 concatenated, layer 2 block-diagonal
    ph, vh = 128, 64
    nout = num_heads * num_models + 1
    hw1 = jnp.concatenate(pw1 + [vw1], axis=1)               # (hidden, 4*128+64)
    hb1 = jnp.concatenate(pb1 + [vb1], axis=1)               # (1, 576)
    hw2_np = np.zeros((num_heads * ph + vh, nout), np.float32)
    for i in range(num_heads):
        hw2_np[i * ph:(i + 1) * ph,
               i * num_models:(i + 1) * num_models] = np.asarray(pw2[i])
    hw2_np[num_heads * ph:, num_heads * num_models:] = np.asarray(vw2)
    hw2 = jnp.asarray(hw2_np)
    hb2 = jnp.concatenate(pb2 + [vb2], axis=1)               # (1, 17)

    return dict(
        # kernel parameters
        cw1=cw1, cb1=cb1, cw2=cw2, cb2=cb2, cw3=cw3, cb3=cb3,
        w1=w1_k, b1=b1, w2=w2, b2=b2, w3=w3, b3=b3,
        hw1=hw1, hb1=hb1, hw2=hw2, hb2=hb2,
        # reference-only parameters
        convs_ref=convs_ref, w1_t=w1,
        pw1=jnp.stack(pw1), pb1=jnp.stack(pb1),
        pw2=jnp.stack(pw2), pb2=jnp.stack(pb2),
        vw1=vw1, vb1=vb1, vw2=vw2, vb2=vb2)


# ----------------------------------------------------------------------------
# Pure-JAX reference (same folded f32 weights)
# ----------------------------------------------------------------------------
def maxpool2x2(x_nhwc):
    return jnp.maximum(
        jnp.maximum(x_nhwc[:, 0::2, 0::2, :], x_nhwc[:, 0::2, 1::2, :]),
        jnp.maximum(x_nhwc[:, 1::2, 0::2, :], x_nhwc[:, 1::2, 1::2, :]))


def reference_forward(x, p):
    B, S, H, W = x.shape
    h = x.reshape(B * S, H, W, 1).astype(jnp.float32)
    for (w_hwio, b) in p["convs_ref"]:
        h = lax.conv_general_dilated(h, w_hwio, (1, 1), "SAME",
                                     dimension_numbers=("NHWC", "HWIO", "NHWC"))
        h = jnp.maximum(h + b.reshape(1, 1, 1, -1), 0.0)
        h = maxpool2x2(h)
    N, hh, ww, C = h.shape
    feats = jnp.mean(h.transpose(0, 3, 1, 2).reshape(B, S, C * hh * ww), axis=1)
    h1 = jnp.maximum(feats @ p["w1_t"] + p["b1"], 0.0)
    h2 = jnp.maximum(h1 @ p["w2"] + p["b2"], 0.0)
    fc = jnp.maximum(h2 @ p["w3"] + p["b3"], 0.0)
    probs = []
    for i in range(p["pw1"].shape[0]):
        ph = jnp.maximum(fc @ p["pw1"][i] + p["pb1"][i], 0.0)
        probs.append(jax.nn.softmax(ph @ p["pw2"][i] + p["pb2"][i], axis=-1))
    probs = jnp.stack(probs, axis=1)
    vh = jnp.maximum(fc @ p["vw1"] + p["vb1"], 0.0)
    value = vh @ p["vw2"] + p["vb2"]
    return probs, value


if __name__ == "__main__":
    hidden_dim, num_models = 32, 4
    B, S, H, W = 2, 4, 16, 16              # x: (batch, seq-of-frames, H, W)

    key = jax.random.PRNGKey(0)
    kx, kp = jax.random.split(key)
    x = jax.random.normal(kx, (B, S, H, W), jnp.float32)
    params = init_params(kp, hidden_dim=hidden_dim, num_models=num_models,
                         input_size=(H, W))

    fwd = jax.jit(model_forward)
    probs, value = fwd(x, params)
    jax.block_until_ready((probs, value))

    ref_probs, ref_value = reference_forward(x, params)

    assert probs.shape == (B, 4, num_models), probs.shape
    assert value.shape == (B, 1), value.shape
    assert bool(jnp.allclose(jnp.sum(probs, axis=-1), 1.0, atol=5e-3))
    assert bool(jnp.allclose(probs, ref_probs, rtol=2e-2, atol=2e-2))
    assert bool(jnp.allclose(value, ref_value, rtol=2e-2, atol=2e-2))

    print("KERNEL_OK")
</pallas_src>

<mosaic_0001>
module attributes {stable_mosaic.version = 11 : i64} {
  func.func @_fused_forward_kernel(%arg0: i32, %arg1: memref<1x64x16xf32, #tpu.memory_space<vmem>>, %arg2: memref<3x16x256xf32, #tpu.memory_space<vmem>>, %arg3: memref<1x256xf32, #tpu.memory_space<vmem>>, %arg4: memref<3x128x256xf32, #tpu.memory_space<vmem>>, %arg5: memref<1x256xf32, #tpu.memory_space<vmem>>, %arg6: memref<3x128x128xf32, #tpu.memory_space<vmem>>, %arg7: memref<1x128xf32, #tpu.memory_space<vmem>>, %arg8: memref<128x512xf32, #tpu.memory_space<vmem>>, %arg9: memref<1x512xf32, #tpu.memory_space<vmem>>, %arg10: memref<512x256xf32, #tpu.memory_space<vmem>>, %arg11: memref<1x256xf32, #tpu.memory_space<vmem>>, %arg12: memref<256x32xf32, #tpu.memory_space<vmem>>, %arg13: memref<1x32xf32, #tpu.memory_space<vmem>>, %arg14: memref<32x576xf32, #tpu.memory_space<vmem>>, %arg15: memref<1x576xf32, #tpu.memory_space<vmem>>, %arg16: memref<576x17xf32, #tpu.memory_space<vmem>>, %arg17: memref<1x17xf32, #tpu.memory_space<vmem>>, %arg18: memref<1x1x17xf32, #tpu.memory_space<vmem>>) attributes {dimension_semantics = [#tpu.dimension_semantics<parallel>], iteration_bounds = array<i64: 2>, scalar_prefetch = 0 : i64, scratch_operands = 0 : i64, tpu.core_type = #tpu.core_type<tc>, window_params = [{transform_indices = @transform_0, window_bounds = array<i64: 1, 64, 16>}, {pipeline_mode = #tpu.pipeline_mode<synchronous>, transform_indices = @transform_1, window_bounds = array<i64: 3, 16, 256>}, {pipeline_mode = #tpu.pipeline_mode<synchronous>, transform_indices = @transform_2, window_bounds = array<i64: 1, 256>}, {pipeline_mode = #tpu.pipeline_mode<synchronous>, transform_indices = @transform_3, window_bounds = array<i64: 3, 128, 256>}, {pipeline_mode = #tpu.pipeline_mode<synchronous>, transform_indices = @transform_4, window_bounds = array<i64: 1, 256>}, {pipeline_mode = #tpu.pipeline_mode<synchronous>, transform_indices = @transform_5, window_bounds = array<i64: 3, 128, 128>}, {pipeline_mode = #tpu.pipeline_mode<synchronous>, transform_indices = @transform_6, window_bounds = array<i64: 1, 128>}, {pipeline_mode = #tpu.pipeline_mode<synchronous>, transform_indices = @transform_7, window_bounds = array<i64: 128, 512>}, {pipeline_mode = #tpu.pipeline_mode<synchronous>, transform_indices = @transform_8, window_bounds = array<i64: 1, 512>}, {pipeline_mode = #tpu.pipeline_mode<synchronous>, transform_indices = @transform_9, window_bounds = array<i64: 512, 256>}, {pipeline_mode = #tpu.pipeline_mode<synchronous>, transform_indices = @transform_10, window_bounds = array<i64: 1, 256>}, {pipeline_mode = #tpu.pipeline_mode<synchronous>, transform_indices = @transform_11, window_bounds = array<i64: 256, 32>}, {pipeline_mode = #tpu.pipeline_mode<synchronous>, transform_indices = @transform_12, window_bounds = array<i64: 1, 32>}, {pipeline_mode = #tpu.pipeline_mode<synchronous>, transform_indices = @transform_13, window_bounds = array<i64: 32, 576>}, {pipeline_mode = #tpu.pipeline_mode<synchronous>, transform_indices = @transform_14, window_bounds = array<i64: 1, 576>}, {pipeline_mode = #tpu.pipeline_mode<synchronous>, transform_indices = @transform_15, window_bounds = array<i64: 576, 17>}, {pipeline_mode = #tpu.pipeline_mode<synchronous>, transform_indices = @transform_16, window_bounds = array<i64: 1, 17>}, {transform_indices = @transform_17, window_bounds = array<i64: 1, 1, 17>}]} {
    %c0 = arith.constant 0 : index
    %c0_0 = arith.constant 0 : index
    %c0_1 = arith.constant 0 : index
    %0 = vector.load %arg1[%c0, %c0_0, %c0_1] : memref<1x64x16xf32, #tpu.memory_space<vmem>>, vector<1x64x16xf32>
    %1 = vector.shape_cast %0 : vector<1x64x16xf32> to vector<64x16xf32>
    %cst = arith.constant 0.000000e+00 : f32
    %2 = vector.broadcast %cst : f32 to vector<1x16xf32>
    %3 = tpu.concatenate %2, %1, %2 in 0 : vector<1x16xf32>, vector<64x16xf32>, vector<1x16xf32> -> vector<66x16xf32>
    %4 = tpu.iota {dimensions = array<i32: 0>} : vector<64x16xi32>
    %c16_i32 = arith.constant 16 : i32
    %c0_i32 = arith.constant 0 : i32
    %5 = arith.cmpi eq, %c16_i32, %c0_i32 : i32
    %c1_i32 = arith.constant 1 : i32
    %6 = arith.select %5, %c1_i32, %c16_i32 : i32
    %7 = vector.broadcast %6 : i32 to vector<64x16xi32>
    %8 = arith.remsi %4, %7 : vector<64x16xi32>
    %c0_i32_2 = arith.constant 0 : i32
    %9 = vector.broadcast %c0_i32_2 : i32 to vector<64x16xi32>
    %10 = arith.cmpi ne, %8, %9 : vector<64x16xi32>
    %c0_i32_3 = arith.constant 0 : i32
    %11 = vector.broadcast %c0_i32_3 : i32 to vector<64x16xi32>
    %12 = arith.cmpi slt, %8, %11 : vector<64x16xi32>
    %c0_i32_4 = arith.constant 0 : i32
    %13 = arith.cmpi slt, %6, %c0_i32_4 : i32
    %14 = vector.broadcast %13 : i1 to vector<64x16xi1>
    %15 = vector.broadcast %14 : vector<64x16xi1> to vector<64x16xi1>
    %16 = arith.xori %12, %15 : vector<64x16xi1>
    %17 = arith.andi %16, %10 : vector<64x16xi1>
    %18 = vector.broadcast %6 : i32 to vector<64x16xi32>
    %19 = arith.addi %8, %18 : vector<64x16xi32>
    %20 = arith.select %17, %19, %8 : vector<64x16xi1>, vector<64x16xi32>
    %cst_5 = arith.constant 0.000000e+00 : f32
    %21 = vector.broadcast %cst_5 : f32 to vector<64x256xf32>
    %22 = vector.extract_strided_slice %3 {offsets = [0, 0], sizes = [64, 16], strides = [1, 1]} : vector<66x16xf32> to vector<64x16xf32>
    %c0_i32_6 = arith.constant 0 : i32
    %23 = vector.broadcast %c0_i32_6 : i32 to vector<64x16xi32>
    %24 = arith.cmpi eq, %20, %23 : vector<64x16xi32>
    %cst_7 = arith.constant 0.000000e+00 : f32
    %25 = vector.broadcast %cst_7 : f32 to vector<64x16xf32>
    %26 = arith.select %24, %25, %22 : vector<64x16xi1>, vector<64x16xf32>
    %c0_8 = arith.constant 0 : index
    %c0_9 = arith.constant 0 : index
    %c0_10 = arith.constant 0 : index
    %27 = vector.load %arg2[%c0_8, %c0_9, %c0_10] : memref<3x16x256xf32, #tpu.memory_space<vmem>>, vector<1x16x256xf32>
    %28 = vector.shape_cast %27 : vector<1x16x256xf32> to vector<16x256xf32>
    %cst_11 = arith.constant dense<0.000000e+00> : vector<64x256xf32>
    %29 = tpu.matmul %26, %28, %cst_11 {dimension_numbers = #tpu.dot_dimension_numbers<[1], [0], [0], [1], [0, 0, 1, 1], [], []>} : vector<64x16xf32>, vector<16x256xf32>, vector<64x256xf32> -> vector<64x256xf32>
    %30 = arith.addf %21, %29 : vector<64x256xf32>
    %31 = vector.extract_strided_slice %3 {offsets = [1, 0], sizes = [64, 16], strides = [1, 1]} : vector<66x16xf32> to vector<64x16xf32>
    %c1 = arith.constant 1 : index
    %c0_12 = arith.constant 0 : index
    %c0_13 = arith.constant 0 : index
    %32 = vector.load %arg2[%c1, %c0_12, %c0_13] : memref<3x16x256xf32, #tpu.memory_space<vmem>>, vector<1x16x256xf32>
    %33 = vector.shape_cast %32 : vector<1x16x256xf32> to vector<16x256xf32>
    %cst_14 = arith.constant dense<0.000000e+00> : vector<64x256xf32>
    %34 = tpu.matmul %31, %33, %cst_14 {dimension_numbers = #tpu.dot_dimension_numbers<[1], [0], [0], [1], [0, 0, 1, 1], [], []>} : vector<64x16xf32>, vector<16x256xf32>, vector<64x256xf32> -> vector<64x256xf32>
    %35 = arith.addf %30, %34 : vector<64x256xf32>
    %36 = vector.extract_strided_slice %3 {offsets = [2, 0], sizes = [64, 16], strides = [1, 1]} : vector<66x16xf32> to vector<64x16xf32>
    %c15_i32 = arith.constant 15 : i32
    %37 = vector.broadcast %c15_i32 : i32 to vector<64x16xi32>
    %38 = arith.cmpi eq, %20, %37 : vector<64x16xi32>
    %cst_15 = arith.constant 0.000000e+00 : f32
    %39 = vector.broadcast %cst_15 : f32 to vector<64x16xf32>
    %40 = arith.select %38, %39, %36 : vector<64x16xi1>, vector<64x16xf32>
    %c2 = arith.constant 2 : index
    %c0_16 = arith.constant 0 : index
    %c0_17 = arith.constant 0 : index
    %41 = vector.load %arg2[%c2, %c0_16, %c0_17] : memref<3x16x256xf32, #tpu.memory_space<vmem>>, vector<1x16x256xf32>
    %42 = vector.shape_cast %41 : vector<1x16x256xf32> to vector<16x256xf32>
    %cst_18 = arith.constant dense<0.000000e+00> : vector<64x256xf32>
    %43 = tpu.matmul %40, %42, %cst_18 {dimension_numbers = #tpu.dot_dimension_numbers<[1], [0], [0], [1], [0, 0, 1, 1], [], []>} : vector<64x16xf32>, vector<16x256xf32>, vector<64x256xf32> -> vector<64x256xf32>
    %44 = arith.addf %35, %43 : vector<64x256xf32>
    %c0_19 = arith.constant 0 : index
    %c0_20 = arith.constant 0 : index
    %45 = vector.load %arg3[%c0_19, %c0_20] : memref<1x256xf32, #tpu.memory_space<vmem>>, vector<1x256xf32>
    %46 = vector.broadcast %45 : vector<1x256xf32> to vector<64x256xf32>
    %47 = arith.addf %44, %46 : vector<64x256xf32>
    %cst_21 = arith.constant 0.000000e+00 : f32
    %48 = vector.broadcast %cst_21 : f32 to vector<64x256xf32>
    %49 = arith.maximumf %47, %48 : vector<64x256xf32>
    %50 = tpu.iota {dimensions = array<i32: 0>} : vector<32x64xi32>
    %51 = tpu.iota {dimensions = array<i32: 1>} : vector<32x64xi32>
    %c2_i32 = arith.constant 2 : i32
    %52 = vector.broadcast %c2_i32 : i32 to vector<32x64xi32>
    %53 = arith.muli %52, %50 : vector<32x64xi32>
    %54 = arith.cmpi eq, %51, %53 : vector<32x64xi32>
    %55 = arith.extui %54 : vector<32x64xi1> to vector<32x64xi32>
    %56 = arith.sitofp %55 : vector<32x64xi32> to vector<32x64xf32>
    %c2_i32_22 = arith.constant 2 : i32
    %57 = vector.broadcast %c2_i32_22 : i32 to vector<32x64xi32>
    %58 = arith.muli %57, %50 : vector<32x64xi32>
    %c1_i32_23 = arith.constant 1 : i32
    %59 = vector.broadcast %c1_i32_23 : i32 to vector<32x64xi32>
    %60 = arith.addi %58, %59 : vector<32x64xi32>
    %61 = arith.cmpi eq, %51, %60 : vector<32x64xi32>
    %62 = arith.extui %61 : vector<32x64xi1> to vector<32x64xi32>
    %63 = arith.sitofp %62 : vector<32x64xi32> to vector<32x64xf32>
    %cst_24 = arith.constant dense<0.000000e+00> : vector<32x256xf32>
    %64 = tpu.matmul %56, %49, %cst_24 {dimension_numbers = #tpu.dot_dimension_numbers<[1], [0], [0], [1], [0, 0, 1, 1], [], []>} : vector<32x64xf32>, vector<64x256xf32>, vector<32x256xf32> -> vector<32x256xf32>
    %cst_25 = arith.constant dense<0.000000e+00> : vector<32x256xf32>
    %65 = tpu.matmul %63, %49, %cst_25 {dimension_numbers = #tpu.dot_dimension_numbers<[1], [0], [0], [1], [0, 0, 1, 1], [], []>} : vector<32x64xf32>, vector<64x256xf32>, vector<32x256xf32> -> vector<32x256xf32>
    %66 = arith.maximumf %64, %65 : vector<32x256xf32>
    %67 = vector.extract_strided_slice %66 {offsets = [0, 0], sizes = [32, 16], strides = [1, 1]} : vector<32x256xf32> to vector<32x16xf32>
    %68 = vector.extract_strided_slice %66 {offsets = [0, 16], sizes = [32, 16], strides = [1, 1]} : vector<32x256xf32> to vector<32x16xf32>
    %69 = arith.maximumf %67, %68 : vector<32x16xf32>
    %70 = vector.extract_strided_slice %66 {offsets = [0, 32], sizes = [32, 16], strides = [1, 1]} : vector<32x256xf32> to vector<32x16xf32>
    %71 = vector.extract_strided_slice %66 {offsets = [0, 48], sizes = [32, 16], strides = [1, 1]} : vector<32x256xf32> to vector<32x16xf32>
    %72 = arith.maximumf %70, %71 : vector<32x16xf32>
    %73 = vector.extract_strided_slice %66 {offsets = [0, 64], sizes = [32, 16], strides = [1, 1]} : vector<32x256xf32> to vector<32x16xf32>
    %74 = vector.extract_strided_slice %66 {offsets = [0, 80], sizes = [32, 16], strides = [1, 1]} : vector<32x256xf32> to vector<32x16xf32>
    %75 = arith.maximumf %73, %74 : vector<32x16xf32>
    %76 = vector.extract_strided_slice %66 {offsets = [0, 96], sizes = [32, 16], strides = [1, 1]} : vector<32x256xf32> to vector<32x16xf32>
    %77 = vector.extract_strided_slice %66 {offsets = [0, 112], sizes = [32, 16], strides = [1, 1]} : vector<32x256xf32> to vector<32x16xf32>
    %78 = arith.maximumf %76, %77 : vector<32x16xf32>
    %79 = vector.extract_strided_slice %66 {offsets = [0, 128], sizes = [32, 16], strides = [1, 1]} : vector<32x256xf32> to vector<32x16xf32>
    %80 = vector.extract_strided_slice %66 {offsets = [0, 144], sizes = [32, 16], strides = [1, 1]} : vector<32x256xf32> to vector<32x16xf32>
    %81 = arith.maximumf %79, %80 : vector<32x16xf32>
    %82 = vector.extract_strided_slice %66 {offsets = [0, 160], sizes = [32, 16], strides = [1, 1]} : vector<32x256xf32> to vector<32x16xf32>
    %83 = vector.extract_strided_slice %66 {offsets = [0, 176], sizes = [32, 16], strides = [1, 1]} : vector<32x256xf32> to vector<32x16xf32>
    %84 = arith.maximumf %82, %83 : vector<32x16xf32>
    %85 = vector.extract_strided_slice %66 {offsets = [0, 192], sizes = [32, 16], strides = [1, 1]} : vector<32x256xf32> to vector<32x16xf32>
    %86 = vector.extract_strided_slice %66 {offsets = [0, 208], sizes = [32, 16], strides = [1, 1]} : vector<32x256xf32> to vector<32x16xf32>
    %87 = arith.maximumf %85, %86 : vector<32x16xf32>
    %88 = vector.extract_strided_slice %66 {offsets = [0, 224], sizes = [32, 16], strides = [1, 1]} : vector<32x256xf32> to vector<32x16xf32>
    %89 = vector.extract_strided_slice %66 {offsets = [0, 240], sizes = [32, 16], strides = [1, 1]} : vector<32x256xf32> to vector<32x16xf32>
    %90 = arith.maximumf %88, %89 : vector<32x16xf32>
    %91 = tpu.concatenate %69, %72, %75, %78, %81, %84, %87, %90 in 1 : vector<32x16xf32>, vector<32x16xf32>, vector<32x16xf32>, vector<32x16xf32>, vector<32x16xf32>, vector<32x16xf32>, vector<32x16xf32>, vector<32x16xf32> -> vector<32x128xf32>
    %cst_26 = arith.constant 0.000000e+00 : f32
    %92 = vector.broadcast %cst_26 : f32 to vector<1x128xf32>
    %93 = tpu.concatenate %92, %91, %92 in 0 : vector<1x128xf32>, vector<32x128xf32>, vector<1x128xf32> -> vector<34x128xf32>
    %94 = tpu.iota {dimensions = array<i32: 0>} : vector<32x128xi32>
    %c8_i32 = arith.constant 8 : i32
    %c0_i32_27 = arith.constant 0 : i32
    %95 = arith.cmpi eq, %c8_i32, %c0_i32_27 : i32
    %c1_i32_28 = arith.constant 1 : i32
    %96 = arith.select %95, %c1_i32_28, %c8_i32 : i32
    %97 = vector.broadcast %96 : i32 to vector<32x128xi32>
    %98 = arith.remsi %94, %97 : vector<32x128xi32>
    %c0_i32_29 = arith.constant 0 : i32
    %99 = vector.broadcast %c0_i32_29 : i32 to vector<32x128xi32>
    %100 = arith.cmpi ne, %98, %99 : vector<32x128xi32>
    %c0_i32_30 = arith.constant 0 : i32
    %101 = vector.broadcast %c0_i32_30 : i32 to vector<32x128xi32>
    %102 = arith.cmpi slt, %98, %101 : vector<32x128xi32>
    %c0_i32_31 = arith.constant 0 : i32
    %103 = arith.cmpi slt, %96, %c0_i32_31 : i32
    %104 = vector.broadcast %103 : i1 to vector<32x128xi1>
    %105 = vector.broadcast %104 : vector<32x128xi1> to vector<32x128xi1>
    %106 = arith.xori %102, %105 : vector<32x128xi1>
    %107 = arith.andi %106, %100 : vector<32x128xi1>
    %108 = vector.broadcast %96 : i32 to vector<32x128xi32>
    %109 = arith.addi %98, %108 : vector<32x128xi32>
    %110 = arith.select %107, %109, %98 : vector<32x128xi1>, vector<32x128xi32>
    %cst_32 = arith.constant 0.000000e+00 : f32
    %111 = vector.broadcast %cst_32 : f32 to vector<32x256xf32>
    %112 = vector.extract_strided_slice %93 {offsets = [0, 0], sizes = [32, 128], strides = [1, 1]} : vector<34x128xf32> to vector<32x128xf32>
    %c0_i32_33 = arith.constant 0 : i32
    %113 = vector.broadcast %c0_i32_33 : i32 to vector<32x128xi32>
    %114 = arith.cmpi eq, %110, %113 : vector<32x128xi32>
    %cst_34 = arith.constant 0.000000e+00 : f32
    %115 = vector.broadcast %cst_34 : f32 to vector<32x128xf32>
    %116 = arith.select %114, %115, %112 : vector<32x128xi1>, vector<32x128xf32>
    %c0_35 = arith.constant 0 : index
    %c0_36 = arith.constant 0 : index
    %c0_37 = arith.constant 0 : index
    %117 = vector.load %arg4[%c0_35, %c0_36, %c0_37] : memref<3x128x256xf32, #tpu.memory_space<vmem>>, vector<1x128x256xf32>
    %118 = vector.shape_cast %117 : vector<1x128x256xf32> to vector<128x256xf32>
    %cst_38 = arith.constant dense<0.000000e+00> : vector<32x256xf32>
    %119 = tpu.matmul %116, %118, %cst_38 {dimension_numbers = #tpu.dot_dimension_numbers<[1], [0], [0], [1], [0, 0, 1, 1], [], []>} : vector<32x128xf32>, vector<128x256xf32>, vector<32x256xf32> -> vector<32x256xf32>
    %120 = arith.addf %111, %119 : vector<32x256xf32>
    %121 = vector.extract_strided_slice %93 {offsets = [1, 0], sizes = [32, 128], strides = [1, 1]} : vector<34x128xf32> to vector<32x128xf32>
    %c1_39 = arith.constant 1 : index
    %c0_40 = arith.constant 0 : index
    %c0_41 = arith.constant 0 : index
    %122 = vector.load %arg4[%c1_39, %c0_40, %c0_41] : memref<3x128x256xf32, #tpu.memory_space<vmem>>, vector<1x128x256xf32>
    %123 = vector.shape_cast %122 : vector<1x128x256xf32> to vector<128x256xf32>
    %cst_42 = arith.constant dense<0.000000e+00> : vector<32x256xf32>
    %124 = tpu.matmul %121, %123, %cst_42 {dimension_numbers = #tpu.dot_dimension_numbers<[1], [0], [0], [1], [0, 0, 1, 1], [], []>} : vector<32x128xf32>, vector<128x256xf32>, vector<32x256xf32> -> vector<32x256xf32>
    %125 = arith.addf %120, %124 : vector<32x256xf32>
    %126 = vector.extract_strided_slice %93 {offsets = [2, 0], sizes = [32, 128], strides = [1, 1]} : vector<34x128xf32> to vector<32x128xf32>
    %c7_i32 = arith.constant 7 : i32
    %127 = vector.broadcast %c7_i32 : i32 to vector<32x128xi32>
    %128 = arith.cmpi eq, %110, %127 : vector<32x128xi32>
    %cst_43 = arith.constant 0.000000e+00 : f32
    %129 = vector.broadcast %cst_43 : f32 to vector<32x128xf32>
    %130 = arith.select %128, %129, %126 : vector<32x128xi1>, vector<32x128xf32>
    %c2_44 = arith.constant 2 : index
    %c0_45 = arith.constant 0 : index
    %c0_46 = arith.constant 0 : index
    %131 = vector.load %arg4[%c2_44, %c0_45, %c0_46] : memref<3x128x256xf32, #tpu.memory_space<vmem>>, vector<1x128x256xf32>
    %132 = vector.shape_cast %131 : vector<1x128x256xf32> to vector<128x256xf32>
    %cst_47 = arith.constant dense<0.000000e+00> : vector<32x256xf32>
    %133 = tpu.matmul %130, %132, %cst_47 {dimension_numbers = #tpu.dot_dimension_numbers<[1], [0], [0], [1], [0, 0, 1, 1], [], []>} : vector<32x128xf32>, vector<128x256xf32>, vector<32x256xf32> -> vector<32x256xf32>
    %134 = arith.addf %125, %133 : vector<32x256xf32>
    %c0_48 = arith.constant 0 : index
    %c0_49 = arith.constant 0 : index
    %135 = vector.load %arg5[%c0_48, %c0_49] : memref<1x256xf32, #tpu.memory_space<vmem>>, vector<1x256xf32>
    %136 = vector.broadcast %135 : vector<1x256xf32> to vector<32x256xf32>
    %137 = arith.addf %134, %136 : vector<32x256xf32>
    %cst_50 = arith.constant 0.000000e+00 : f32
    %138 = vector.broadcast %cst_50 : f32 to vector<32x256xf32>
    %139 = arith.maximumf %137, %138 : vector<32x256xf32>
    %140 = tpu.iota {dimensions = array<i32: 0>} : vector<16x32xi32>
    %141 = tpu.iota {dimensions = array<i32: 1>} : vector<16x32xi32>
    %c2_i32_51 = arith.constant 2 : i32
    %142 = vector.broadcast %c2_i32_51 : i32 to vector<16x32xi32>
    %143 = arith.muli %142, %140 : vector<16x32xi32>
    %144 = arith.cmpi eq, %141, %143 : vector<16x32xi32>
    %145 = arith.extui %144 : vector<16x32xi1> to vector<16x32xi32>
    %146 = arith.sitofp %145 : vector<16x32xi32> to vector<16x32xf32>
    %c2_i32_52 = arith.constant 2 : i32
    %147 = vector.broadcast %c2_i32_52 : i32 to vector<16x32xi32>
    %148 = arith.muli %147, %140 : vector<16x32xi32>
    %c1_i32_53 = arith.constant 1 : i32
    %149 = vector.broadcast %c1_i32_53 : i32 to vector<16x32xi32>
    %150 = arith.addi %148, %149 : vector<16x32xi32>
    %151 = arith.cmpi eq, %141, %150 : vector<16x32xi32>
    %152 = arith.extui %151 : vector<16x32xi1> to vector<16x32xi32>
    %153 = arith.sitofp %152 : vector<16x32xi32> to vector<16x32xf32>
    %cst_54 = arith.constant dense<0.000000e+00> : vector<16x256xf32>
    %154 = tpu.matmul %146, %139, %cst_54 {dimension_numbers = #tpu.dot_dimension_numbers<[1], [0], [0], [1], [0, 0, 1, 1], [], []>} : vector<16x32xf32>, vector<32x256xf32>, vector<16x256xf32> -> vector<16x256xf32>
    %cst_55 = arith.constant dense<0.000000e+00> : vector<16x256xf32>
    %155 = tpu.matmul %153, %139, %cst_55 {dimension_numbers = #tpu.dot_dimension_numbers<[1], [0], [0], [1], [0, 0, 1, 1], [], []>} : vector<16x32xf32>, vector<32x256xf32>, vector<16x256xf32> -> vector<16x256xf32>
    %156 = arith.maximumf %154, %155 : vector<16x256xf32>
    %157 = vector.extract_strided_slice %156 {offsets = [0, 0], sizes = [16, 32], strides = [1, 1]} : vector<16x256xf32> to vector<16x32xf32>
    %158 = vector.extract_strided_slice %156 {offsets = [0, 32], sizes = [16, 32], strides = [1, 1]} : vector<16x256xf32> to vector<16x32xf32>
    %159 = arith.maximumf %157, %158 : vector<16x32xf32>
    %160 = vector.extract_strided_slice %156 {offsets = [0, 64], sizes = [16, 32], strides = [1, 1]} : vector<16x256xf32> to vector<16x32xf32>
    %161 = vector.extract_strided_slice %156 {offsets = [0, 96], sizes = [16, 32], strides = [1, 1]} : vector<16x256xf32> to vector<16x32xf32>
    %162 = arith.maximumf %160, %161 : vector<16x32xf32>
    %163 = vector.extract_strided_slice %156 {offsets = [0, 128], sizes = [16, 32], strides = [1, 1]} : vector<16x256xf32> to vector<16x32xf32>
    %164 = vector.extract_strided_slice %156 {offsets = [0, 160], sizes = [16, 32], strides = [1, 1]} : vector<16x256xf32> to vector<16x32xf32>
    %165 = arith.maximumf %163, %164 : vector<16x32xf32>
    %166 = vector.extract_strided_slice %156 {offsets = [0, 192], sizes = [16, 32], strides = [1, 1]} : vector<16x256xf32> to vector<16x32xf32>
    %167 = vector.extract_strided_slice %156 {offsets = [0, 224], sizes = [16, 32], strides = [1, 1]} : vector<16x256xf32> to vector<16x32xf32>
    %168 = arith.maximumf %166, %167 : vector<16x32xf32>
    %169 = tpu.concatenate %159, %162, %165, %168 in 1 : vector<16x32xf32>, vector<16x32xf32>, vector<16x32xf32>, vector<16x32xf32> -> vector<16x128xf32>
    %cst_56 = arith.constant 0.000000e+00 : f32
    %170 = vector.broadcast %cst_56 : f32 to vector<1x128xf32>
    %171 = tpu.concatenate %170, %169, %170 in 0 : vector<1x128xf32>, vector<16x128xf32>, vector<1x128xf32> -> vector<18x128xf32>
    %172 = tpu.iota {dimensions = array<i32: 0>} : vector<16x128xi32>
    %c4_i32 = arith.constant 4 : i32
    %c0_i32_57 = arith.constant 0 : i32
    %173 = arith.cmpi eq, %c4_i32, %c0_i32_57 : i32
    %c1_i32_58 = arith.constant 1 : i32
    %174 = arith.select %173, %c1_i32_58, %c4_i32 : i32
    %175 = vector.broadcast %174 : i32 to vector<16x128xi32>
    %176 = arith.remsi %172, %175 : vector<16x128xi32>
    %c0_i32_59 = arith.constant 0 : i32
    %177 = vector.broadcast %c0_i32_59 : i32 to vector<16x128xi32>
    %178 = arith.cmpi ne, %176, %177 : vector<16x128xi32>
    %c0_i32_60 = arith.constant 0 : i32
    %179 = vector.broadcast %c0_i32_60 : i32 to vector<16x128xi32>
    %180 = arith.cmpi slt, %176, %179 : vector<16x128xi32>
    %c0_i32_61 = arith.constant 0 : i32
    %181 = arith.cmpi slt, %174, %c0_i32_61 : i32
    %182 = vector.broadcast %181 : i1 to vector<16x128xi1>
    %183 = vector.broadcast %182 : vector<16x128xi1> to vector<16x128xi1>
    %184 = arith.xori %180, %183 : vector<16x128xi1>
    %185 = arith.andi %184, %178 : vector<16x128xi1>
    %186 = vector.broadcast %174 : i32 to vector<16x128xi32>
    %187 = arith.addi %176, %186 : vector<16x128xi32>
    %188 = arith.select %185, %187, %176 : vector<16x128xi1>, vector<16x128xi32>
    %cst_62 = arith.constant 0.000000e+00 : f32
    %189 = vector.broadcast %cst_62 : f32 to vector<16x128xf32>
    %190 = vector.extract_strided_slice %171 {offsets = [0, 0], sizes = [16, 128], strides = [1, 1]} : vector<18x128xf32> to vector<16x128xf32>
    %c0_i32_63 = arith.constant 0 : i32
    %191 = vector.broadcast %c0_i32_63 : i32 to vector<16x128xi32>
    %192 = arith.cmpi eq, %188, %191 : vector<16x128xi32>
    %cst_64 = arith.constant 0.000000e+00 : f32
    %193 = vector.broadcast %cst_64 : f32 to vector<16x128xf32>
    %194 = arith.select %192, %193, %190 : vector<16x128xi1>, vector<16x128xf32>
    %c0_65 = arith.constant 0 : index
    %c0_66 = arith.constant 0 : index
    %c0_67 = arith.constant 0 : index
    %195 = vector.load %arg6[%c0_65, %c0_66, %c0_67] : memref<3x128x128xf32, #tpu.memory_space<vmem>>, vector<1x128x128xf32>
    %196 = vector.shape_cast %195 : vector<1x128x128xf32> to vector<128x128xf32>
    %cst_68 = arith.constant dense<0.000000e+00> : vector<16x128xf32>
    %197 = tpu.matmul %194, %196, %cst_68 {dimension_numbers = #tpu.dot_dimension_numbers<[1], [0], [0], [1], [0, 0, 1, 1], [], []>} : vector<16x128xf32>, vector<128x128xf32>, vector<16x128xf32> -> vector<16x128xf32>
    %198 = arith.addf %189, %197 : vector<16x128xf32>
    %199 = vector.extract_strided_slice %171 {offsets = [1, 0], sizes = [16, 128], strides = [1, 1]} : vector<18x128xf32> to vector<16x128xf32>
    %c1_69 = arith.constant 1 : index
    %c0_70 = arith.constant 0 : index
    %c0_71 = arith.constant 0 : index
    %200 = vector.load %arg6[%c1_69, %c0_70, %c0_71] : memref<3x128x128xf32, #tpu.memory_space<vmem>>, vector<1x128x128xf32>
    %201 = vector.shape_cast %200 : vector<1x128x128xf32> to vector<128x128xf32>
    %cst_72 = arith.constant dense<0.000000e+00> : vector<16x128xf32>
    %202 = tpu.matmul %199, %201, %cst_72 {dimension_numbers = #tpu.dot_dimension_numbers<[1], [0], [0], [1], [0, 0, 1, 1], [], []>} : vector<16x128xf32>, vector<128x128xf32>, vector<16x128xf32> -> vector<16x128xf32>
    %203 = arith.addf %198, %202 : vector<16x128xf32>
    %204 = vector.extract_strided_slice %171 {offsets = [2, 0], sizes = [16, 128], strides = [1, 1]} : vector<18x128xf32> to vector<16x128xf32>
    %c3_i32 = arith.constant 3 : i32
    %205 = vector.broadcast %c3_i32 : i32 to vector<16x128xi32>
    %206 = arith.cmpi eq, %188, %205 : vector<16x128xi32>
    %cst_73 = arith.constant 0.000000e+00 : f32
    %207 = vector.broadcast %cst_73 : f32 to vector<16x128xf32>
    %208 = arith.select %206, %207, %204 : vector<16x128xi1>, vector<16x128xf32>
    %c2_74 = arith.constant 2 : index
    %c0_75 = arith.constant 0 : index
    %c0_76 = arith.constant 0 : index
    %209 = vector.load %arg6[%c2_74, %c0_75, %c0_76] : memref<3x128x128xf32, #tpu.memory_space<vmem>>, vector<1x128x128xf32>
    %210 = vector.shape_cast %209 : vector<1x128x128xf32> to vector<128x128xf32>
    %cst_77 = arith.constant dense<0.000000e+00> : vector<16x128xf32>
    %211 = tpu.matmul %208, %210, %cst_77 {dimension_numbers = #tpu.dot_dimension_numbers<[1], [0], [0], [1], [0, 0, 1, 1], [], []>} : vector<16x128xf32>, vector<128x128xf32>, vector<16x128xf32> -> vector<16x128xf32>
    %212 = arith.addf %203, %211 : vector<16x128xf32>
    %c0_78 = arith.constant 0 : index
    %c0_79 = arith.constant 0 : index
    %213 = vector.load %arg7[%c0_78, %c0_79] : memref<1x128xf32, #tpu.memory_space<vmem>>, vector<1x128xf32>
    %214 = vector.broadcast %213 : vector<1x128xf32> to vector<16x128xf32>
    %215 = arith.addf %212, %214 : vector<16x128xf32>
    %cst_80 = arith.constant 0.000000e+00 : f32
    %216 = vector.broadcast %cst_80 : f32 to vector<16x128xf32>
    %217 = arith.maximumf %215, %216 : vector<16x128xf32>
    %218 = tpu.iota {dimensions = array<i32: 0>} : vector<8x16xi32>
    %219 = tpu.iota {dimensions = array<i32: 1>} : vector<8x16xi32>
    %c2_i32_81 = arith.constant 2 : i32
    %220 = vector.broadcast %c2_i32_81 : i32 to vector<8x16xi32>
    %221 = arith.muli %220, %218 : vector<8x16xi32>
    %222 = arith.cmpi eq, %219, %221 : vector<8x16xi32>
    %223 = arith.extui %222 : vector<8x16xi1> to vector<8x16xi32>
    %224 = arith.sitofp %223 : vector<8x16xi32> to vector<8x16xf32>
    %c2_i32_82 = arith.constant 2 : i32
    %225 = vector.broadcast %c2_i32_82 : i32 to vector<8x16xi32>
    %226 = arith.muli %225, %218 : vector<8x16xi32>
    %c1_i32_83 = arith.constant 1 : i32
    %227 = vector.broadcast %c1_i32_83 : i32 to vector<8x16xi32>
    %228 = arith.addi %226, %227 : vector<8x16xi32>
    %229 = arith.cmpi eq, %219, %228 : vector<8x16xi32>
    %230 = arith.extui %229 : vector<8x16xi1> to vector<8x16xi32>
    %231 = arith.sitofp %230 : vector<8x16xi32> to vector<8x16xf32>
    %cst_84 = arith.constant dense<0.000000e+00> : vector<8x128xf32>
    %232 = tpu.matmul %224, %217, %cst_84 {dimension_numbers = #tpu.dot_dimension_numbers<[1], [0], [0], [1], [0, 0, 1, 1], [], []>} : vector<8x16xf32>, vector<16x128xf32>, vector<8x128xf32> -> vector<8x128xf32>
    %cst_85 = arith.constant dense<0.000000e+00> : vector<8x128xf32>
    %233 = tpu.matmul %231, %217, %cst_85 {dimension_numbers = #tpu.dot_dimension_numbers<[1], [0], [0], [1], [0, 0, 1, 1], [], []>} : vector<8x16xf32>, vector<16x128xf32>, vector<8x128xf32> -> vector<8x128xf32>
    %234 = arith.maximumf %232, %233 : vector<8x128xf32>
    %235 = vector.extract_strided_slice %234 {offsets = [0, 0], sizes = [8, 32], strides = [1, 1]} : vector<8x128xf32> to vector<8x32xf32>
    %236 = vector.extract_strided_slice %234 {offsets = [0, 32], sizes = [8, 32], strides = [1, 1]} : vector<8x128xf32> to vector<8x32xf32>
    %237 = arith.maximumf %235, %236 : vector<8x32xf32>
    %238 = vector.extract_strided_slice %234 {offsets = [0, 64], sizes = [8, 32], strides = [1, 1]} : vector<8x128xf32> to vector<8x32xf32>
    %239 = vector.extract_strided_slice %234 {offsets = [0, 96], sizes = [8, 32], strides = [1, 1]} : vector<8x128xf32> to vector<8x32xf32>
    %240 = arith.maximumf %238, %239 : vector<8x32xf32>
    %241 = tpu.concatenate %237, %240 in 1 : vector<8x32xf32>, vector<8x32xf32> -> vector<8x64xf32>
    %242 = tpu.iota {dimensions = array<i32: 0>} : vector<4x8xi32>
    %243 = tpu.iota {dimensions = array<i32: 1>} : vector<4x8xi32>
    %c2_i32_86 = arith.constant 2 : i32
    %244 = vector.broadcast %c2_i32_86 : i32 to vector<4x8xi32>
    %245 = arith.muli %242, %244 : vector<4x8xi32>
    %c0_i32_87 = arith.constant 0 : i32
    %246 = vector.broadcast %c0_i32_87 : i32 to vector<4x8xi32>
    %247 = arith.addi %245, %246 : vector<4x8xi32>
    %248 = arith.cmpi eq, %243, %247 : vector<4x8xi32>
    %249 = arith.extui %248 : vector<4x8xi1> to vector<4x8xi32>
    %250 = arith.sitofp %249 : vector<4x8xi32> to vector<4x8xf32>
    %cst_88 = arith.constant dense<0.000000e+00> : vector<4x64xf32>
    %251 = tpu.matmul %250, %241, %cst_88 {dimension_numbers = #tpu.dot_dimension_numbers<[1], [0], [0], [1], [0, 0, 1, 1], [], []>} : vector<4x8xf32>, vector<8x64xf32>, vector<4x64xf32> -> vector<4x64xf32>
    %c2_i32_89 = arith.constant 2 : i32
    %252 = vector.broadcast %c2_i32_89 : i32 to vector<4x8xi32>
    %253 = arith.muli %242, %252 : vector<4x8xi32>
    %c1_i32_90 = arith.constant 1 : i32
    %254 = vector.broadcast %c1_i32_90 : i32 to vector<4x8xi32>
    %255 = arith.addi %253, %254 : vector<4x8xi32>
    %256 = arith.cmpi eq, %243, %255 : vector<4x8xi32>
    %257 = arith.extui %256 : vector<4x8xi1> to vector<4x8xi32>
    %258 = arith.sitofp %257 : vector<4x8xi32> to vector<4x8xf32>
    %cst_91 = arith.constant dense<0.000000e+00> : vector<4x64xf32>
    %259 = tpu.matmul %258, %241, %cst_91 {dimension_numbers = #tpu.dot_dimension_numbers<[1], [0], [0], [1], [0, 0, 1, 1], [], []>} : vector<4x8xf32>, vector<8x64xf32>, vector<4x64xf32> -> vector<4x64xf32>
    %260 = tpu.concatenate %251, %259 in 1 : vector<4x64xf32>, vector<4x64xf32> -> vector<4x128xf32>
    %c0_92 = arith.constant 0 : index
    %c0_93 = arith.constant 0 : index
    %261 = vector.load %arg8[%c0_92, %c0_93] : memref<128x512xf32, #tpu.memory_space<vmem>>, vector<128x512xf32>
    %cst_94 = arith.constant dense<0.000000e+00> : vector<4x512xf32>
    %262 = tpu.matmul %260, %261, %cst_94 {dimension_numbers = #tpu.dot_dimension_numbers<[1], [0], [0], [1], [0, 0, 1, 1], [], []>} : vector<4x128xf32>, vector<128x512xf32>, vector<4x512xf32> -> vector<4x512xf32>
    %cst_95 = arith.constant dense<0.000000e+00> : vector<512xf32>
    %263 = vector.multi_reduction <add>, %262, %cst_95 [0] : vector<4x512xf32> to vector<512xf32>
    %264 = vector.shape_cast %263 : vector<512xf32> to vector<1x512xf32>
    %cst_96 = arith.constant 2.500000e-01 : f32
    %265 = vector.broadcast %cst_96 : f32 to vector<1x512xf32>
    %266 = arith.mulf %264, %265 : vector<1x512xf32>
    %c0_97 = arith.constant 0 : index
    %c0_98 = arith.constant 0 : index
    %267 = vector.load %arg9[%c0_97, %c0_98] : memref<1x512xf32, #tpu.memory_space<vmem>>, vector<1x512xf32>
    %268 = arith.addf %266, %267 : vector<1x512xf32>
    %cst_99 = arith.constant 0.000000e+00 : f32
    %269 = vector.broadcast %cst_99 : f32 to vector<1x512xf32>
    %270 = arith.maximumf %268, %269 : vector<1x512xf32>
    %c0_100 = arith.constant 0 : index
    %c0_101 = arith.constant 0 : index
    %271 = vector.load %arg10[%c0_100, %c0_101] : memref<512x256xf32, #tpu.memory_space<vmem>>, vector<512x256xf32>
    %cst_102 = arith.constant dense<0.000000e+00> : vector<1x256xf32>
    %272 = tpu.matmul %270, %271, %cst_102 {dimension_numbers = #tpu.dot_dimension_numbers<[1], [0], [0], [1], [0, 0, 1, 1], [], []>} : vector<1x512xf32>, vector<512x256xf32>, vector<1x256xf32> -> vector<1x256xf32>
    %c0_103 = arith.constant 0 : index
    %c0_104 = arith.constant 0 : index
    %273 = vector.load %arg11[%c0_103, %c0_104] : memref<1x256xf32, #tpu.memory_space<vmem>>, vector<1x256xf32>
    %274 = arith.addf %272, %273 : vector<1x256xf32>
    %cst_105 = arith.constant 0.000000e+00 : f32
    %275 = vector.broadcast %cst_105 : f32 to vector<1x256xf32>
    %276 = arith.maximumf %274, %275 : vector<1x256xf32>
    %c0_106 = arith.constant 0 : index
    %c0_107 = arith.constant 0 : index
    %277 = vector.load %arg12[%c0_106, %c0_107] : memref<256x32xf32, #tpu.memory_space<vmem>>, vector<256x32xf32>
    %cst_108 = arith.constant dense<0.000000e+00> : vector<1x32xf32>
    %278 = tpu.matmul %276, %277, %cst_108 {dimension_numbers = #tpu.dot_dimension_numbers<[1], [0], [0], [1], [0, 0, 1, 1], [], []>} : vector<1x256xf32>, vector<256x32xf32>, vector<1x32xf32> -> vector<1x32xf32>
    %c0_109 = arith.constant 0 : index
    %c0_110 = arith.constant 0 : index
    %279 = vector.load %arg13[%c0_109, %c0_110] : memref<1x32xf32, #tpu.memory_space<vmem>>, vector<1x32xf32>
    %280 = arith.addf %278, %279 : vector<1x32xf32>
    %cst_111 = arith.constant 0.000000e+00 : f32
    %281 = vector.broadcast %cst_111 : f32 to vector<1x32xf32>
    %282 = arith.maximumf %280, %281 : vector<1x32xf32>
    %c0_112 = arith.constant 0 : index
    %c0_113 = arith.constant 0 : index
    %283 = vector.load %arg14[%c0_112, %c0_113] : memref<32x576xf32, #tpu.memory_space<vmem>>, vector<32x576xf32>
    %cst_114 = arith.constant dense<0.000000e+00> : vector<1x576xf32>
    %284 = tpu.matmul %282, %283, %cst_114 {dimension_numbers = #tpu.dot_dimension_numbers<[1], [0], [0], [1], [0, 0, 1, 1], [], []>} : vector<1x32xf32>, vector<32x576xf32>, vector<1x576xf32> -> vector<1x576xf32>
    %c0_115 = arith.constant 0 : index
    %c0_116 = arith.constant 0 : index
    %285 = vector.load %arg15[%c0_115, %c0_116] : memref<1x576xf32, #tpu.memory_space<vmem>>, vector<1x576xf32>
    %286 = arith.addf %284, %285 : vector<1x576xf32>
    %cst_117 = arith.constant 0.000000e+00 : f32
    %287 = vector.broadcast %cst_117 : f32 to vector<1x576xf32>
    %288 = arith.maximumf %286, %287 : vector<1x576xf32>
    %c0_118 = arith.constant 0 : index
    %c0_119 = arith.constant 0 : index
    %289 = vector.load %arg16[%c0_118, %c0_119] : memref<576x17xf32, #tpu.memory_space<vmem>>, vector<576x17xf32>
    %cst_120 = arith.constant dense<0.000000e+00> : vector<1x17xf32>
    %290 = tpu.matmul %288, %289, %cst_120 {dimension_numbers = #tpu.dot_dimension_numbers<[1], [0], [0], [1], [0, 0, 1, 1], [], []>} : vector<1x576xf32>, vector<576x17xf32>, vector<1x17xf32> -> vector<1x17xf32>
    %c0_121 = arith.constant 0 : index
    %c0_122 = arith.constant 0 : index
    %291 = vector.load %arg17[%c0_121, %c0_122] : memref<1x17xf32, #tpu.memory_space<vmem>>, vector<1x17xf32>
    %292 = arith.addf %290, %291 : vector<1x17xf32>
    %293 = vector.extract_strided_slice %292 {offsets = [0, 0], sizes = [1, 4], strides = [1, 1]} : vector<1x17xf32> to vector<1x4xf32>
    %cst_123 = arith.constant dense<0xFF800000> : vector<1xf32>
    %294 = vector.multi_reduction <maximumf>, %293, %cst_123 [1] : vector<1x4xf32> to vector<1xf32>
    %295 = vector.shape_cast %294 : vector<1xf32> to vector<1x1xf32>
    %296 = vector.broadcast %295 : vector<1x1xf32> to vector<1x4xf32>
    %297 = arith.subf %293, %296 : vector<1x4xf32>
    %298 = math.exp %297 : vector<1x4xf32>
    %cst_124 = arith.constant dense<0.000000e+00> : vector<1xf32>
    %299 = vector.multi_reduction <add>, %298, %cst_124 [1] : vector<1x4xf32> to vector<1xf32>
    %300 = vector.shape_cast %299 : vector<1xf32> to vector<1x1xf32>
    %301 = tpu.reciprocal %300 {approx = true} : vector<1x1xf32> -> vector<1x1xf32>
    %302 = vector.broadcast %301 : vector<1x1xf32> to vector<1x4xf32>
    %303 = arith.mulf %298, %302 : vector<1x4xf32>
    %c0_125 = arith.constant 0 : index
    %c0_126 = arith.constant 0 : index
    %c0_127 = arith.constant 0 : index
    %304 = vector.load %arg18[%c0_125, %c0_126, %c0_127] : memref<1x1x17xf32, #tpu.memory_space<vmem>>, vector<1x1x4xf32>
    %305 = vector.shape_cast %304 : vector<1x1x4xf32> to vector<1x4xf32>
    %306 = vector.shape_cast %303 : vector<1x4xf32> to vector<1x1x4xf32>
    tpu.vector_store %arg18[%c0_125, %c0_126, %c0_127], %306 {strides = array<i32>} : memref<1x1x17xf32, #tpu.memory_space<vmem>>, vector<1x1x4xf32>,
    %307 = vector.extract_strided_slice %292 {offsets = [0, 4], sizes = [1, 4], strides = [1, 1]} : vector<1x17xf32> to vector<1x4xf32>
    %cst_128 = arith.constant dense<0xFF800000> : vector<1xf32>
    %308 = vector.multi_reduction <maximumf>, %307, %cst_128 [1] : vector<1x4xf32> to vector<1xf32>
    %309 = vector.shape_cast %308 : vector<1xf32> to vector<1x1xf32>
    %310 = vector.broadcast %309 : vector<1x1xf32> to vector<1x4xf32>
    %311 = arith.subf %307, %310 : vector<1x4xf32>
    %312 = math.exp %311 : vector<1x4xf32>
    %cst_129 = arith.constant dense<0.000000e+00> : vector<1xf32>
    %313 = vector.multi_reduction <add>, %312, %cst_129 [1] : vector<1x4xf32> to vector<1xf32>
    %314 = vector.shape_cast %313 : vector<1xf32> to vector<1x1xf32>
    %315 = tpu.reciprocal %314 {approx = true} : vector<1x1xf32> -> vector<1x1xf32>
    %316 = vector.broadcast %315 : vector<1x1xf32> to vector<1x4xf32>
    %317 = arith.mulf %312, %316 : vector<1x4xf32>
    %c0_130 = arith.constant 0 : index
    %c0_131 = arith.constant 0 : index
    %c4 = arith.constant 4 : index
    %318 = vector.load %arg18[%c0_130, %c0_131, %c4] : memref<1x1x17xf32, #tpu.memory_space<vmem>>, vector<1x1x4xf32>
    %319 = vector.shape_cast %318 : vector<1x1x4xf32> to vector<1x4xf32>
    %320 = vector.shape_cast %317 : vector<1x4xf32> to vector<1x1x4xf32>
    tpu.vector_store %arg18[%c0_130, %c0_131, %c4], %320 {strides = array<i32>} : memref<1x1x17xf32, #tpu.memory_space<vmem>>, vector<1x1x4xf32>,
    %321 = vector.extract_strided_slice %292 {offsets = [0, 8], sizes = [1, 4], strides = [1, 1]} : vector<1x17xf32> to vector<1x4xf32>
    %cst_132 = arith.constant dense<0xFF800000> : vector<1xf32>
    %322 = vector.multi_reduction <maximumf>, %321, %cst_132 [1] : vector<1x4xf32> to vector<1xf32>
    %323 = vector.shape_cast %322 : vector<1xf32> to vector<1x1xf32>
    %324 = vector.broadcast %323 : vector<1x1xf32> to vector<1x4xf32>
    %325 = arith.subf %321, %324 : vector<1x4xf32>
    %326 = math.exp %325 : vector<1x4xf32>
    %cst_133 = arith.constant dense<0.000000e+00> : vector<1xf32>
    %327 = vector.multi_reduction <add>, %326, %cst_133 [1] : vector<1x4xf32> to vector<1xf32>
    %328 = vector.shape_cast %327 : vector<1xf32> to vector<1x1xf32>
    %329 = tpu.reciprocal %328 {approx = true} : vector<1x1xf32> -> vector<1x1xf32>
    %330 = vector.broadcast %329 : vector<1x1xf32> to vector<1x4xf32>
    %331 = arith.mulf %326, %330 : vector<1x4xf32>
    %c0_134 = arith.constant 0 : index
    %c0_135 = arith.constant 0 : index
    %c8 = arith.constant 8 : index
    %332 = vector.load %arg18[%c0_134, %c0_135, %c8] : memref<1x1x17xf32, #tpu.memory_space<vmem>>, vector<1x1x4xf32>
    %333 = vector.shape_cast %332 : vector<1x1x4xf32> to vector<1x4xf32>
    %334 = vector.shape_cast %331 : vector<1x4xf32> to vector<1x1x4xf32>
    tpu.vector_store %arg18[%c0_134, %c0_135, %c8], %334 {strides = array<i32>} : memref<1x1x17xf32, #tpu.memory_space<vmem>>, vector<1x1x4xf32>,
    %335 = vector.extract_strided_slice %292 {offsets = [0, 12], sizes = [1, 4], strides = [1, 1]} : vector<1x17xf32> to vector<1x4xf32>
    %cst_136 = arith.constant dense<0xFF800000> : vector<1xf32>
    %336 = vector.multi_reduction <maximumf>, %335, %cst_136 [1] : vector<1x4xf32> to vector<1xf32>
    %337 = vector.shape_cast %336 : vector<1xf32> to vector<1x1xf32>
    %338 = vector.broadcast %337 : vector<1x1xf32> to vector<1x4xf32>
    %339 = arith.subf %335, %338 : vector<1x4xf32>
    %340 = math.exp %339 : vector<1x4xf32>
    %cst_137 = arith.constant dense<0.000000e+00> : vector<1xf32>
    %341 = vector.multi_reduction <add>, %340, %cst_137 [1] : vector<1x4xf32> to vector<1xf32>
    %342 = vector.shape_cast %341 : vector<1xf32> to vector<1x1xf32>
    %343 = tpu.reciprocal %342 {approx = true} : vector<1x1xf32> -> vector<1x1xf32>
    %344 = vector.broadcast %343 : vector<1x1xf32> to vector<1x4xf32>
    %345 = arith.mulf %340, %344 : vector<1x4xf32>
    %c0_138 = arith.constant 0 : index
    %c0_139 = arith.constant 0 : index
    %c12 = arith.constant 12 : index
    %346 = vector.load %arg18[%c0_138, %c0_139, %c12] : memref<1x1x17xf32, #tpu.memory_space<vmem>>, vector<1x1x4xf32>
    %347 = vector.shape_cast %346 : vector<1x1x4xf32> to vector<1x4xf32>
    %348 = vector.shape_cast %345 : vector<1x4xf32> to vector<1x1x4xf32>
    tpu.vector_store %arg18[%c0_138, %c0_139, %c12], %348 {strides = array<i32>} : memref<1x1x17xf32, #tpu.memory_space<vmem>>, vector<1x1x4xf32>,
    %349 = vector.extract_strided_slice %292 {offsets = [0, 16], sizes = [1, 1], strides = [1, 1]} : vector<1x17xf32> to vector<1x1xf32>
    %c0_140 = arith.constant 0 : index
    %c0_141 = arith.constant 0 : index
    %c16 = arith.constant 16 : index
    %350 = vector.load %arg18[%c0_140, %c0_141, %c16] : memref<1x1x17xf32, #tpu.memory_space<vmem>>, vector<1x1x1xf32>
    %351 = vector.shape_cast %350 : vector<1x1x1xf32> to vector<1x1xf32>
    %352 = vector.shape_cast %349 : vector<1x1xf32> to vector<1x1x1xf32>
    tpu.vector_store %arg18[%c0_140, %c0_141, %c16], %352 {strides = array<i32>} : memref<1x1x17xf32, #tpu.memory_space<vmem>>, vector<1x1x1xf32>,
    return
  }
  func.func @transform_0(%arg0: i32) -> (i32, i32, i32) {
    %c0_i32 = arith.constant 0 : i32
    %c0_i32_0 = arith.constant 0 : i32
    %c0_i32_1 = arith.constant 0 : i32
    return %arg0, %c0_i32, %c0_i32_0 : i32, i32, i32
  }
  func.func @transform_1(%arg0: i32) -> (i32, i32, i32) {
    %c0_i32 = arith.constant 0 : i32
    %c0_i32_0 = arith.constant 0 : i32
    %c0_i32_1 = arith.constant 0 : i32
    %c0_i32_2 = arith.constant 0 : i32
    return %c0_i32, %c0_i32_0, %c0_i32_1 : i32, i32, i32
  }
  func.func @transform_2(%arg0: i32) -> (i32, i32) {
    %c0_i32 = arith.constant 0 : i32
    %c0_i32_0 = arith.constant 0 : i32
    %c0_i32_1 = arith.constant 0 : i32
    return %c0_i32, %c0_i32_0 : i32, i32
  }
  func.func @transform_3(%arg0: i32) -> (i32, i32, i32) {
    %c0_i32 = arith.constant 0 : i32
    %c0_i32_0 = arith.constant 0 : i32
    %c0_i32_1 = arith.constant 0 : i32
    %c0_i32_2 = arith.constant 0 : i32
    return %c0_i32, %c0_i32_0, %c0_i32_1 : i32, i32, i32
  }
  func.func @transform_4(%arg0: i32) -> (i32, i32) {
    %c0_i32 = arith.constant 0 : i32
    %c0_i32_0 = arith.constant 0 : i32
    %c0_i32_1 = arith.constant 0 : i32
    return %c0_i32, %c0_i32_0 : i32, i32
  }
  func.func @transform_5(%arg0: i32) -> (i32, i32, i32) {
    %c0_i32 = arith.constant 0 : i32
    %c0_i32_0 = arith.constant 0 : i32
    %c0_i32_1 = arith.constant 0 : i32
    %c0_i32_2 = arith.constant 0 : i32
    return %c0_i32, %c0_i32_0, %c0_i32_1 : i32, i32, i32
  }
  func.func @transform_6(%arg0: i32) -> (i32, i32) {
    %c0_i32 = arith.constant 0 : i32
    %c0_i32_0 = arith.constant 0 : i32
    %c0_i32_1 = arith.constant 0 : i32
    return %c0_i32, %c0_i32_0 : i32, i32
  }
  func.func @transform_7(%arg0: i32) -> (i32, i32) {
    %c0_i32 = arith.constant 0 : i32
    %c0_i32_0 = arith.constant 0 : i32
    %c0_i32_1 = arith.constant 0 : i32
    return %c0_i32, %c0_i32_0 : i32, i32
  }
  func.func @transform_8(%arg0: i32) -> (i32, i32) {
    %c0_i32 = arith.constant 0 : i32
    %c0_i32_0 = arith.constant 0 : i32
    %c0_i32_1 = arith.constant 0 : i32
    return %c0_i32, %c0_i32_0 : i32, i32
  }
  func.func @transform_9(%arg0: i32) -> (i32, i32) {
    %c0_i32 = arith.constant 0 : i32
    %c0_i32_0 = arith.constant 0 : i32
    %c0_i32_1 = arith.constant 0 : i32
    return %c0_i32, %c0_i32_0 : i32, i32
  }
  func.func @transform_10(%arg0: i32) -> (i32, i32) {
    %c0_i32 = arith.constant 0 : i32
    %c0_i32_0 = arith.constant 0 : i32
    %c0_i32_1 = arith.constant 0 : i32
    return %c0_i32, %c0_i32_0 : i32, i32
  }
  func.func @transform_11(%arg0: i32) -> (i32, i32) {
    %c0_i32 = arith.constant 0 : i32
    %c0_i32_0 = arith.constant 0 : i32
    %c0_i32_1 = arith.constant 0 : i32
    return %c0_i32, %c0_i32_0 : i32, i32
  }
  func.func @transform_12(%arg0: i32) -> (i32, i32) {
    %c0_i32 = arith.constant 0 : i32
    %c0_i32_0 = arith.constant 0 : i32
    %c0_i32_1 = arith.constant 0 : i32
    return %c0_i32, %c0_i32_0 : i32, i32
  }
  func.func @transform_13(%arg0: i32) -> (i32, i32) {
    %c0_i32 = arith.constant 0 : i32
    %c0_i32_0 = arith.constant 0 : i32
    %c0_i32_1 = arith.constant 0 : i32
    return %c0_i32, %c0_i32_0 : i32, i32
  }
  func.func @transform_14(%arg0: i32) -> (i32, i32) {
    %c0_i32 = arith.constant 0 : i32
    %c0_i32_0 = arith.constant 0 : i32
    %c0_i32_1 = arith.constant 0 : i32
    return %c0_i32, %c0_i32_0 : i32, i32
  }
  func.func @transform_15(%arg0: i32) -> (i32, i32) {
    %c0_i32 = arith.constant 0 : i32
    %c0_i32_0 = arith.constant 0 : i32
    %c0_i32_1 = arith.constant 0 : i32
    return %c0_i32, %c0_i32_0 : i32, i32
  }
  func.func @transform_16(%arg0: i32) -> (i32, i32) {
    %c0_i32 = arith.constant 0 : i32
    %c0_i32_0 = arith.constant 0 : i32
    %c0_i32_1 = arith.constant 0 : i32
    return %c0_i32, %c0_i32_0 : i32, i32
  }
  func.func @transform_17(%arg0: i32) -> (i32, i32, i32) {
    %c0_i32 = arith.constant 0 : i32
    %c0_i32_0 = arith.constant 0 : i32
    %c0_i32_1 = arith.constant 0 : i32
    return %arg0, %c0_i32, %c0_i32_0 : i32, i32, i32
  }
}

</mosaic_0001>

<bundles_post_ra>
// kernel: squeeze.2
= control target key start
LH: loop header
LB: loop body
LE: loop exit
PB: predicated region body
PF: predicated region fallthrough
CT: control target
= control target key end

     0   :  { %s106_s0 = inlined_call_operand.vmem [shape: f32[2,16], index: 0, kind: input, shape index: {}]   ;;  %s107_s1 = inlined_call_operand.hbm [shape: f32[2,4,4], index: 1, kind: output, shape index: {}]  }
   0x1   :  { %v5_v0 = vld [vmem:[%s106_s0] sm:$0x3] }
   0x2   :  { %6 = vst [vmem:[#allocation3] sm:$0x3] %v5_v0 }
   0x3   :  { %2 = vsyncpa [#allocation1], 0  ;;  %s77_s0 = smov 124   ;;  %s78_s8 = smov 116   ;;  %vm8_vm0 = vcmask 31744  }
   0x4   :  { %s79_s9 = smov 120   ;;  %s80_s10 = smov [#allocation0]  }
   0x5   :  { %s43_s11 = sshll.u32 %s80_s10, 4  ;;  %s44_s11 = int_to_ptr.vmem [resolvable:$true] %s43_s11 }
   0x6   :  { %s53_s12 = scalar_lea.vmem %s44_s11, 128  ;;  %p58_p1 = scmp.lt.s32.totalorder %s44_s11, %s44_s11 }
   0x7   :  { %p54_p0 = scmp.ne.s32.totalorder %s44_s11, %s53_s12  ;;  %p59_p2 = scmp.lt.s32.totalorder %s53_s12, %s53_s12 }
   0x9   :  { %v10_v1 = vld [vmem:[#allocation3] sm:$0x3]   ;;  %p60_p3 = por %p59_p2, %p58_p1 }
   0xa   :  { %v22_v2 = vld [vmem:[#allocation3] sm:$0x3]   ;;  %11 = vrot.lane.b32.xlu0 %v10_v1, %s77_s0 }
   0xb   :  { %23 = vrot.lane.b32.xlu1 %v22_v2, %s78_s8  ;;  %v7_v3 = vld [vmem:[#allocation3] sm:$0x3]   ;;  %p61_p4 = pnand %p60_p3, %p54_p0 }
   0xc   :  { %v16_v4 = vld [vmem:[#allocation3] sm:$0x3]   ;;  %9 = vst.msk [vmem:[#allocation2] ss:$8 sm:$0x3] %vm8_vm0, %v7_v3  }
   0xe   :  { %17 = vrot.lane.b32.xlu0 %v16_v4, %s79_s9 }
  0x7c   :  { %v12_v5 = vpop.permute.xlu0 %11  }
  0x7d   :  { %v24_v6 = vpop.permute.xlu1 %23   ;;  %15 = vst.msk [vmem:[#allocation2 + $0x1] ss:$8 sm:$0x3] %vm8_vm0, %v12_v5  }
  0x7e   :  { %27 = vst.msk [vmem:[#allocation2 + $0x3] ss:$8 sm:$0x3] %vm8_vm0, %v24_v6  }
  0x80   :  { %v18_v7 = vpop.permute.xlu0 %17  }
  0x81   :  { %21 = vst.msk [vmem:[#allocation2 + $0x2] ss:$8 sm:$0x3] %vm8_vm0, %v18_v7  }
  0x88   :  { %v31_v8 = vld [vmem:[#allocation2] sm:$0xf]  ;;  %v35_v9 = vld [vmem:[#allocation2 + $0x8] sm:$0xf] }
  0x89   :  { %33 = vst [vmem:[#allocation0] sm:$0xf] %v31_v8  ;;  %38 = vst [vmem:[#allocation0 + $0x4] sm:$0xf] %v35_v9 }
  0x8a   :  { %64 = shalt.err (!%p61_p4)
}
  0x8b   :  { %s65_s15 = scalar_lea.hbm %s107_s1, 128 }
  0x8c   :  { %p66_p5 = scmp.ne.s32.totalorder %s107_s1, %s65_s15  ;;  %p69_p6 = scmp.lt.u32.totalorder %s65_s15, %s107_s1 }
  0x8e   :  { %p71_p7 = pnand %p69_p6, %p66_p5 }
  0x90   :  { %74 = shalt.err (!%p71_p7)
}
  0x91   :  { %46 = dma.vmem_to_hbm [thread:$0]  %s44_s11, 128, %s107_s1, [#allocation1]  }
  0x92   :  { %75 = dma.done.wait [#allocation1], 128  }
  0x93   :  { %76 = vsyncadd [#allocation1], 4294967168 }
  0x94   :  { %48 = vsyncpa [#allocation1], 1 }

// kernel: model_forward.1
= control target key start
LH: loop header
LB: loop body
LE: loop exit
PB: predicated region body
PF: predicated region fallthrough
CT: control target
= control target key end

     0   :  { %s7594_s0 = inlined_call_operand.hbm [shape: f32[2,64,16], index: 0, kind: input, shape index: {}]   ;;  %s7595_s1 = inlined_call_operand.hbm [shape: f32[3,16,256], index: 1, kind: input, shape index: {}]   ;;  %s7596_s2 = inlined_call_operand.vmem [shape: f32[1,256], index: 2, kind: input, shape index: {}]   ;;  %s7597_s3 = inlined_call_operand.hbm [shape: f32[3,128,256], index: 3, kind: input, shape index: {}]   ;;  %s7598_s4 = inlined_call_operand.vmem [shape: f32[1,256], index: 4, kind: input, shape index: {}]   ;;  %s7599_s5 = inlined_call_operand.hbm [shape: f32[3,128,128], index: 5, kind: input, shape index: {}]   ;;  %s7600_s6 = inlined_call_operand.vmem [shape: f32[1,128], index: 6, kind: input, shape index: {}]   ;;  %s7601_s7 = inlined_call_operand.hbm [shape: f32[128,512], index: 7, kind: input, shape index: {}]   ;;  %s7602_s8 = inlined_call_operand.vmem [shape: f32[1,512], index: 8, kind: input, shape index: {}]   ;;  %s7603_s9 = inlined_call_operand.vmem [shape: f32[512,256], index: 9, kind: input, shape index: {}]   ;;  %s7604_s10 = inlined_call_operand.vmem [shape: f32[1,256], index: 10, kind: input, shape index: {}]   ;;  %s7605_s11 = inlined_call_operand.vmem [shape: f32[256,32], index: 11, kind: input, shape index: {}]   ;;  %s7606_s12 = inlined_call_operand.vmem [shape: f32[1,32], index: 12, kind: input, shape index: {}]   ;;  %s7607_s13 = inlined_call_operand.hbm [shape: f32[32,576], index: 13, kind: input, shape index: {}]   ;;  %s7608_s14 = inlined_call_operand.vmem [shape: f32[1,576], index: 14, kind: input, shape index: {}]   ;;  %s7609_s15 = inlined_call_operand.vmem [shape: f32[576,17], index: 15, kind: input, shape index: {}]   ;;  %s7610_s16 = inlined_call_operand.vmem [shape: f32[1,17], index: 16, kind: input, shape index: {}]   ;;  %s7611_s17 = inlined_call_operand.vmem [shape: f32[2,1,17], index: 17, kind: output, shape index: {}]  }
   0x1   :  { %7621 = sst [smem:[#allocation16_spill]] %s7594_s0 }
   0x2   :  { %7622 = sst [smem:[#allocation17_spill]] %s7595_s1 }
   0x3   :  { %7623 = sst [smem:[#allocation18_spill]] %s7602_s8 }
   0x4   :  { %7624 = sst [smem:[#allocation19_spill]] %s7604_s10 }
   0x5   :  { %7625 = sst [smem:[#allocation20_spill]] %s7605_s11 }
   0x6   :  { %7626 = sst [smem:[#allocation21_spill]] %s7606_s12 }
   0x7   :  { %7627 = sst [smem:[#allocation22_spill]] %s7608_s14 }
   0x8   :  { %7628 = sst [smem:[#allocation23_spill]] %s7609_s15 }
   0x9   :  { %7629 = sst [smem:[#allocation24_spill]] %s7610_s16 }
   0xa   :  { %7630 = sst [smem:[#allocation25_spill]] %s7611_s17 }
   0xb   :  { %22 = vsyncpa [#allocation3], 0 }
   0xc   :  { %24 = vsyncpa [#allocation3 + $0x1], 0 }
   0xd   :  { %25 = vsyncpa [#allocation5], 0 }
   0xe   :  { %26 = vsyncpa [#allocation8], 0 }
   0xf   :  { %27 = vsyncpa [#allocation11], 0  ;;  %s6061_s24 = smov 0   ;;  %s6063_s25 = smov 0  }
  0x10   :  { %s6065_s26 = smov 0   ;;  %s6067_s27 = smov 0  }
  0x11 LB: > { %s5944_s28 = smov [#allocation4]   ;;  %s6082_s0 = sadd.s32 4294967295, %s5942_s27   ;;  %s5942_s27 = sphi %s6067_s27, %s7661_s27   ;;  %s5938_s26 = sphi %s6065_s26, %s7660_s26   ;;  %s5934_s25 = sphi %s6063_s25, %s7659_s25   ;;  %s5930_s24 = sphi %s6061_s24, %s7658_s24  }
  0x12   : > { %s438_s29 = sshll.u32 %s5944_s28, 4  ;;  %p4512_p0 = scmp.ge.s32.totalorder %s5942_s27, 1  ;;  %s6087_s29 = int_to_ptr.vmem [resolvable:$true] %s438_s29 }
  0x13   : > { %p7617_p1 = scmp.eq.s32.totalorder %s6082_s0, 0  ;;  %p426_p2 = scmp.lt.s32.totalorder %s5942_s27, 3 }
  0x14   : > { %s5945_s18 = smov [#allocation7]   ;;  %s5946_s20 = smov [#allocation6]  }
  0x15   : > { %p6089_p3 = pnand %p4512_p0, %p426_p2  ;;  %s470_s19 = sshll.u32 %s5945_s18, 4  ;;  %s6101_s19 = int_to_ptr.vmem [resolvable:$true] %s470_s19 }
  0x16   : > { %s6103_s21 = sshll.u32 %s5946_s20, 4  ;;  %s7633_s28 = sld [smem:[#allocation17_spill]]  ;;  %s455_s21 = int_to_ptr.vmem [resolvable:$true] %s6103_s21 }
  0x17   : > { %s7631_s30 = scalar_select %p6089_p3, 1, 0 }
  0x18   : > { %p5621_p4 = pneg %p6089_p3 }
  0x1a   : > { %p6097_p5 = pnand %p5621_p4, %p7617_p1 }
  0x1c   : > { %s5726_s17 = scalar_lea.hbm %s7633_s28, 1536  ;;  %p6113_p7 = pneg %p6097_p5 }
  0x1d   : > { %p5727_p6 = scmp.ne.s32.totalorder %s7633_s28, %s5726_s17  ;;  %p5733_p10 = scmp.lt.u32.totalorder %s5726_s17, %s7633_s28 }
  0x1f   : > { %p5729_p8 = pnand %p6113_p7, %p5727_p6 }
  0x21   : > { %p5730_p9 = pneg %p5729_p8 }
  0x23   : > { %p5735_p11 = pnand %p5733_p10, %p5730_p9 }
  0x25   : > { %5738 = shalt.err (!%p5735_p11)
}
  0x26   : > { %s5739_s14 = scalar_lea.vmem %s6087_s29, 1536  ;;  %p5747_p2 = scmp.lt.s32.totalorder %s6087_s29, %s6087_s29 }
  0x27   : > { %p5740_p12 = scmp.ne.s32.totalorder %s6087_s29, %s5739_s14  ;;  %p5748_p4 = scmp.lt.s32.totalorder %s5739_s14, %s5739_s14 }
  0x29   : > { %p5742_p13 = pnand %p5740_p12, %p6113_p7  ;;  %p5749_p6 = por %p5748_p4, %p5747_p2 }
  0x2b   : > { %p5743_p0 = pneg %p5742_p13 }
  0x2d   : > { %p5750_p8 = pnand %p5749_p6, %p5743_p0 }
  0x2f   : > { %5753 = shalt.err (!%p5750_p8)
}
  0x30   : > { %s7616_s16 = smov 256   ;;  %s5948_s15 = smov 16  }
  0x31   : > { %5624 = dma.hbm_to_vmem [thread:$0]  (!%p6097_p5), %s7633_s28, 1536, %s6087_s29, [#allocation5], %s7616_s16, %s7616_s16, %s5948_s15  }
  0x32   : > { %s5754_s14 = scalar_lea.hbm %s7599_s5, 6144 }
  0x33   : > { %p5755_p9 = scmp.ne.s32.totalorder %s7599_s5, %s5754_s14  ;;  %p5761_p12 = scmp.lt.u32.totalorder %s5754_s14, %s7599_s5 }
  0x35   : > { %p5757_p10 = pnand %p5755_p9, %p6113_p7 }
  0x37   : > { %p5758_p11 = pneg %p5757_p10 }
  0x39   : > { %p5763_p13 = pnand %p5761_p12, %p5758_p11 }
  0x3b   : > { %5766 = shalt.err (!%p5763_p13)
}
  0x3c   : > { %s5767_s29 = scalar_lea.vmem %s6101_s19, 6144  ;;  %p5775_p6 = scmp.lt.s32.totalorder %s6101_s19, %s6101_s19 }
  0x3d   : > { %p5768_p0 = scmp.ne.s32.totalorder %s6101_s19, %s5767_s29  ;;  %p5776_p8 = scmp.lt.s32.totalorder %s5767_s29, %s5767_s29 }
  0x3f   : > { %p5770_p2 = pnand %p5768_p0, %p6113_p7  ;;  %p5777_p9 = por %p5776_p8, %p5775_p6 }
  0x41   : > { %p5771_p4 = pneg %p5770_p2 }
  0x43   : > { %p5778_p10 = pnand %p5777_p9, %p5771_p4 }
  0x45   : > { %5781 = shalt.err (!%p5778_p10)
}
  0x46   : > { %s7619_s10 = smov 128   ;;  %s7620_s8 = smov 8  }
  0x47   : > { %5630 = dma.hbm_to_vmem [thread:$0]  (!%p6097_p5), %s7599_s5, 6144, %s6101_s19, [#allocation8], %s7619_s10, %s7619_s10, %s7620_s8  }
  0x48   : > { %s5782_s23 = scalar_lea.hbm %s7597_s3, 12288 }
  0x49   : > { %p5783_p11 = scmp.ne.s32.totalorder %s7597_s3, %s5782_s23  ;;  %p5789_p0 = scmp.lt.u32.totalorder %s5782_s23, %s7597_s3 }
  0x4b   : > { %p5785_p12 = pnand %p5783_p11, %p6113_p7 }
  0x4d   : > { %p5786_p13 = pneg %p5785_p12 }
  0x4f   : > { %p5791_p2 = pnand %p5789_p0, %p5786_p13 }
  0x51   : > { %5794 = shalt.err (!%p5791_p2)
}
  0x52   : > { %s5795_s11 = scalar_lea.vmem %s455_s21, 12288  ;;  %p5803_p9 = scmp.lt.s32.totalorder %s455_s21, %s455_s21 }
  0x53   : > { %p5796_p4 = scmp.ne.s32.totalorder %s455_s21, %s5795_s11  ;;  %p5804_p10 = scmp.lt.s32.totalorder %s5795_s11, %s5795_s11 }
  0x55   : > { %p5798_p6 = pnand %p5796_p4, %p6113_p7  ;;  %p5805_p1 = por %p5804_p10, %p5803_p9 }
  0x57   : > { %p5799_p8 = pneg %p5798_p6 }
  0x59   : > { %p5806_p3 = pnand %p5805_p1, %p5799_p8 }
  0x5b   : > { %5809 = shalt.err (!%p5806_p3)
}
  0x5c   : > { %s7635_s19 = smov 256   ;;  %s5951_s17 = smov [#allocation9]  }
  0x5d   : > { %5627 = dma.hbm_to_vmem [thread:$0]  (!%p6097_p5), %s7597_s3, 12288, %s455_s21, [#allocation5], %s7635_s19, %s7635_s19, %s5948_s15  }
  0x5e   : > { %s486_s22 = sshll.u32 %s5951_s17, 4  ;;  %s5810_s14 = scalar_lea.hbm %s7601_s7, 8192  ;;  %s487_s22 = int_to_ptr.vmem [resolvable:$true] %s486_s22 }
  0x5f   : > { %p5811_p1 = scmp.ne.s32.totalorder %s7601_s7, %s5810_s14  ;;  %p5817_p12 = scmp.lt.u32.totalorder %s5810_s14, %s7601_s7 }
  0x61   : > { %p5813_p3 = pnand %p5811_p1, %p6113_p7 }
  0x63   : > { %p5814_p11 = pneg %p5813_p3 }
  0x65   : > { %p5819_p13 = pnand %p5817_p12, %p5814_p11 }
  0x67   : > { %5822 = shalt.err (!%p5819_p13)
}
  0x68   : > { %s5823_s21 = scalar_lea.vmem %s487_s22, 8192  ;;  %p5831_p6 = scmp.lt.s32.totalorder %s487_s22, %s487_s22 }
  0x69   : > { %p5824_p0 = scmp.ne.s32.totalorder %s487_s22, %s5823_s21  ;;  %p5832_p8 = scmp.lt.s32.totalorder %s5823_s21, %s5823_s21 }
  0x6b   : > { %p5826_p2 = pnand %p5824_p0, %p6113_p7  ;;  %p5833_p9 = por %p5832_p8, %p5831_p6 }
  0x6d   : > { %p5827_p4 = pneg %p5826_p2 }
  0x6f   : > { %p5834_p10 = pnand %p5833_p9, %p5827_p4 }
  0x71   : > { %5837 = shalt.err (!%p5834_p10)
}
  0x72   : > { %s5952_s15 = smov 512   ;;  %s5953_s19 = smov 32  }
  0x73   : > { %5633 = dma.hbm_to_vmem [thread:$0]  (!%p6097_p5), %s7601_s7, 8192, %s487_s22, [#allocation8], %s5952_s15, %s5952_s15, %s5953_s19  }
  0x74   : > { %s5954_s16 = smov [#allocation10]   ;;  %s5838_s20 = scalar_lea.hbm %s7607_s13, 2560 }
  0x75   : > { %s514_s12 = sshll.u32 %s5954_s16, 4  ;;  %p5839_p1 = scmp.ne.s32.totalorder %s7607_s13, %s5838_s20  ;;  %s515_s12 = int_to_ptr.vmem [resolvable:$true] %s514_s12 }
  0x76   : > { %p5845_p12 = scmp.lt.u32.totalorder %s5838_s20, %s7607_s13 }
  0x77   : > { %p5841_p3 = pnand %p5839_p1, %p6113_p7 }
  0x79   : > { %p5842_p11 = pneg %p5841_p3 }
  0x7b   : > { %p5847_p13 = pnand %p5845_p12, %p5842_p11 }
  0x7d   : > { %5850 = shalt.err (!%p5847_p13)
}
  0x7e   : > { %s5851_s22 = scalar_lea.vmem %s515_s12, 2560  ;;  %p5859_p6 = scmp.lt.s32.totalorder %s515_s12, %s515_s12 }
  0x7f   : > { %p5852_p0 = scmp.ne.s32.totalorder %s515_s12, %s5851_s22  ;;  %p5860_p8 = scmp.lt.s32.totalorder %s5851_s22, %s5851_s22 }
  0x81   : > { %p5854_p2 = pnand %p5852_p0, %p6113_p7  ;;  %p5861_p9 = por %p5860_p8, %p5859_p6 }
  0x83   : > { %p5855_p4 = pneg %p5854_p2 }
  0x85   : > { %p5862_p10 = pnand %p5861_p9, %p5855_p4 }
  0x87   : > { %5865 = shalt.err (!%p5862_p10)
}
  0x88   : > { %s5955_s15 = smov 640   ;;  %s5956_s18 = smov 40  }
  0x89   : > { %5636 = dma.hbm_to_vmem [thread:$0]  (!%p6097_p5), %s7607_s13, 2560, %s515_s12, [#allocation11], %s5955_s15, %s5955_s15, %s5956_s18  }
  0x8a   : > { %s6222_s8 = sadd.s32 1, %s5942_s27   ;;  %s40_s17 = sadd.s32 1, %s5938_s26 }
  0x8b   : > { %s37_s16 = ssub.s32 %s5942_s27, %s6222_s8  ;;  %p47_p1 = scmp.ne.s32.totalorder %s5938_s26, %s5934_s25 }
  0x8c   : > { %p38_p7 = scmp.eq.s32.totalorder %s37_s16, 0  ;;  %p48_p3 = scmp.eq.s32.totalorder %s5942_s27, 0 }
  0x8d   : > { %p53_p11 = scmp.ne.s32.totalorder %s5934_s25, %s5930_s24  ;;  %p7636_p13 = scmp.eq.s32.totalorder %s6082_s0, 0 }
  0x8e   : > { %s6233_s23 = scalar_select %p38_p7, %s5938_s26, %s40_s17  }
  0x8f   : > { %p49_p12 = por %p48_p3, %p47_p1  ;;  %p6237_p0 = por %p7636_p13, %p53_p11 }
  0x90   : > { %p5646_p2 = scmp.lt.s32.totalorder %s5942_s27, 2  ;;  %s537_s1 = sand.u32 1, %s5938_s26  }
  0x91   : > { %s4519_s12 = sshll.u32 %s537_s1, 6  ;;  %s4608_s14 = sshll.u32 %s5942_s27, 10 }
  0x92   : > { %s7638_s21 = sld [smem:[#allocation16_spill]]  ;;  %s541_s24 = scalar_lea.vmem [#allocation2], %s4519_s12 }
  0x93   : > { %s548_s15 = sshll.u32 %s541_s24, 4  ;;  %p6251_p5 = pnand %p5646_p2, %p49_p12  ;;  %s6249_s15 = int_to_ptr.vmem [resolvable:$true] %s548_s15 }
  0x94   : > { %s6255_s27 = scalar_lea.sflag [#allocation3], %s537_s1 }
  0x95   : > { %p5868_p6 = pneg %p6251_p5 }
  0x98   : > { %s6247_s22 = scalar_lea.hbm %s7638_s21, %s4608_s14  ;;  %s5871_s17 = scalar_lea.hbm %s7638_s21, 2048 }
  0x99   : > { %s5866_s19 = scalar_lea.hbm %s6247_s22, 1024  ;;  %p5872_p10 = scmp.lt.u32.totalorder %s6247_s22, %s7638_s21 }
  0x9a   : > { %p5867_p4 = scmp.ne.s32.totalorder %s6247_s22, %s5866_s19  ;;  %p5873_p7 = scmp.lt.u32.totalorder %s5871_s17, %s5866_s19 }
  0x9b   : > { %p5875_p3 = scmp.lt.u32.totalorder %s5866_s19, %s6247_s22 }
  0x9c   : > { %p5869_p8 = pnand %p5868_p6, %p5867_p4  ;;  %p5874_p1 = por %p5873_p7, %p5872_p10 }
  0x9e   : > { %p5870_p9 = pneg %p5869_p8  ;;  %p5876_p11 = por %p5875_p3, %p5874_p1 }
  0xa0   : > { %p5877_p12 = pnand %p5876_p11, %p5870_p9 }
  0xa2   : > { %5880 = shalt.err (!%p5877_p12)
}
  0xa3   : > { %s5881_s1 = scalar_lea.vmem %s6249_s15, 1024  ;;  %s5957_s29 = smov [#allocation2]  }
  0xa4   : > { %p5882_p13 = scmp.ne.s32.totalorder %s6249_s15, %s5881_s1  ;;  %s5886_s11 = sshll.u32 %s5957_s29, 4  ;;  %s5887_s11 = int_to_ptr.vmem [resolvable:$false] %s5886_s11 }
  0xa5   : > { %s5888_s24 = scalar_lea.vmem %s5887_s11, 2048  ;;  %p5889_p8 = scmp.lt.s32.totalorder %s6249_s15, %s5887_s11 }
  0xa6   : > { %p5884_p2 = pnand %p5882_p13, %p5868_p6  ;;  %p5890_p10 = scmp.lt.s32.totalorder %s5888_s24, %s5881_s1 }
  0xa8   : > { %p5885_p4 = pneg %p5884_p2  ;;  %p5891_p7 = por %p5890_p10, %p5889_p8 }
  0xaa   : > { %p5892_p1 = pnand %p5891_p7, %p5885_p4 }
  0xac   : > { %5895 = shalt.err (!%p5892_p1)
}
  0xad   : > { %s7640_s19 = smov 8   ;;  %s7641_s10 = smov 128  }
  0xae   : > { %5640 = dma.hbm_to_vmem [thread:$0]  (!%p6251_p5), %s6247_s22, 1024, %s6249_s15, %s6255_s27, %s7641_s10, %s7641_s10, %s7640_s19  }
  0xaf   : > { %p7642_p6 = scmp.ne.s32.totalorder %s7631_s30, 0 }
  0xb0   : > { %s562_s16 = sand.u32 (!%p7642_p6), 1, %s5934_s25  }
  0xb1   : > { %560 = sbr.rel (%p7642_p6) target bundleno = 4501 (0x1195), region = 88  ;;  %s4523_s17 = sshll.u32 (!%p7642_p6), %s562_s16, 6 }
  0xb2   : > { %s563_s12 = scalar_lea.sflag (!%p7642_p6), [#allocation3], %s562_s16  ;;  %s6289_s14 = scalar_lea.vmem (!%p7642_p6), [#allocation2], %s4523_s17 }
  0xb8   : > { %5913 = dma.done.wait (%p6237_p0), %s563_s12, 1024  }
  0xb9   : > { %5915 = vsyncadd (%p6237_p0), %s563_s12, 4294966272  ;;  %p7643_p9 = scmp.eq.s32.totalorder %s6082_s0, 0 }
  0xbb   : > { %5917 = dma.done.wait (%p7643_p9), [#allocation5], 13824   ;;  %p7644_p5 = pmov %p7643_p9 }
  0xbd   : > { %5919 = vsyncadd (%p7644_p5), [#allocation5], 4294953472  ;;  %p7645_p3 = pmov %p7644_p5 }
  0xbf   : > { %5921 = dma.done.wait (%p7645_p3), [#allocation8], 14336   ;;  %p7646_p11 = pmov %p7645_p3 }
  0xc0   : > { %p7647_p12 = pmov %p7645_p3 }
  0xc1   : > { %5923 = vsyncadd (%p7646_p11), [#allocation8], 4294952960 }
  0xc2   : > { %5925 = dma.done.wait (%p7647_p12), [#allocation11], 2560   ;;  %p7648_p13 = pmov %p7645_p3 }
  0xc3   : > { %v5958_v0 = vmov 0.0   ;;  %v808_v1 = vld [vmem:[#allocation4 + $0x28] sm:$0xff]  ;;  %v810_v2 = vld [vmem:[#allocation4 + $0x38] sm:$0xff]  ;;  %v807_v3 = vld [vmem:[#allocation4 + $0x20] sm:$0xff]  ;;  %vm654_vm0 = vcmask 1040384   ;;  %vm813_vm1 = vcmask 1046528   ;;  %v681_v55 = vlaneseq }
  0xc4   : > { %5927 = vsyncadd (%p7648_p13), [#allocation11], 4294964736  ;;  %912 = vmatprep.mubr.f32.mxu0 %v5958_v0  ;;  %1453 = vmatprep.mubr.f32.mxu1 %v5958_v0  ;;  %v4963_v4 = vpack.c.bf16 %v810_v2, %v808_v1  ;;  %v809_v5 = vld [vmem:[#allocation4 + $0x30] sm:$0xff]  ;;  %v638_v6 = vld [vmem:[%s6289_s14] sm:$0xff]  ;;  %vm831_vm2 = vcmask 130048   ;;  %vm1106_vm3 = vcmask 1045504  }
  0xc5   : > { %v639_v7 = vld [vmem:[%s6289_s14 + $0x8] sm:$0xff]  ;;  %v4965_v8 = vpack.c.bf16 %v809_v5, %v807_v3  ;;  %v655_v9 = vrot.slane %v638_v6, 7  ;;  %v640_v11 = vld [vmem:[%s6289_s14 + $0x10] sm:$0xff]  ;;  %v641_v12 = vld [vmem:[%s6289_s14 + $0x18] sm:$0xff]  ;;  %v6376_v59 = vshrl.u32 %v681_v55, 7  ;;  %vm1376_vm13 = vcmask 523264  }
  0xc6   : > { %v656_v10 = vrot.slane %v639_v7, 7  ;;  %4964 = vmatprep.subr.bf16.mxu0 %v4963_v4  ;;  %v658_v13 = vrot.slane %v640_v11, 7  ;;  %v660_v14 = vrot.slane %v641_v12, 7  ;;  %v642_v15 = vld [vmem:[%s6289_s14 + $0x20] sm:$0xff]  ;;  %v803_v18 = vld [vmem:[#allocation4 + $0x8] sm:$0xff]  ;;  %v805_v21 = vld [vmem:[#allocation4 + $0x18] sm:$0xff] }
  0xc7   : > { %4966 = vmatpush1.bf16.msra.mxu0 %v4965_v8  ;;  %v6318_v17 = vsel %vm654_vm0, 0.0, %v655_v9  ;;  %v802_v22 = vld [vmem:[#allocation4] sm:$0xff]  ;;  %v804_v23 = vld [vmem:[#allocation4 + $0x10] sm:$0xff]  ;;  %v662_v26 = vrot.slane %v642_v15, 7  ;;  %v643_v29 = vld [vmem:[%s6289_s14 + $0x28] sm:$0xff]  ;;  %v4967_v30 = vpack.c.bf16 %v805_v21, %v803_v18  ;;  %v694_v62 = vand.u32 15, %v6376_v59 }
  0xc8   : > { %v6315_v16 = vsel %vm654_vm0, %v655_v9, %v656_v10  ;;  %v814_v19 = vrot.slane %v6318_v17, 1  ;;  %v6323_v24 = vsel %vm654_vm0, %v656_v10, %v658_v13  ;;  %v6326_v25 = vsel %vm654_vm0, %v658_v13, %v660_v14  ;;  %v1142_v32 = vld [vmem:[#allocation4 + $0x48] sm:$0xff]  ;;  %v1144_v33 = vld [vmem:[#allocation4 + $0x58] sm:$0xff]  ;;  %v644_v40 = vld [vmem:[%s6289_s14 + $0x30] sm:$0xff]  ;;  %s5959_s22 = smov 112   ;;  %s5960_s15 = smov 96  }
  0xc9   : > { %v815_v20 = vrot.slane %v6315_v16, 1  ;;  %v817_v28 = vrot.slane %v6323_v24, 1  ;;  %v4969_v31 = vpack.c.bf16 %v804_v23, %v802_v22  ;;  %v1107_v34 = vrot.slane %v6318_v17, 2  ;;  %4968 = vmatprep.subr.bf16.mxu0 %v4967_v30  ;;  %v645_v47 = vld [vmem:[%s6289_s14 + $0x38] sm:$0xff]  ;;  %v1141_v2 = vld [vmem:[#allocation4 + $0x40] sm:$0xff]  ;;  %v1143_v3 = vld [vmem:[#allocation4 + $0x50] sm:$0xff] }
  0xca   : > { %v1108_v35 = vrot.slane %v6315_v16, 2  ;;  %v819_v37 = vrot.slane %v6326_v25, 1  ;;  %v6338_v38 = vsel %vm654_vm0, %v660_v14, %v662_v26  ;;  %v664_v39 = vrot.slane %v643_v29, 7  ;;  %s5961_s18 = smov 80   ;;  %s5962_s27 = smov 64  }
  0xcb   : > { %v816_v27 = vsel %vm813_vm1, %v814_v19, %v815_v20  ;;  %v818_v36 = vsel %vm813_vm1, %v815_v20, %v817_v28  ;;  %v4971_v41 = vpack.c.bf16 %v1144_v33, %v1142_v32  ;;  %v821_v43 = vrot.slane %v6338_v38, 1  ;;  %s5963_s1 = smov 48   ;;  %s5964_s29 = smov 32  }
  0xcc   : > { %4529 = vmatmul.mubr.msk.f32.vlgmr.msra.gmra.mrb[0].mxu0 %vm831_vm2, %v816_v27  ;;  %v820_v42 = vsel %vm813_vm1, %v817_v28, %v819_v37  ;;  %v6348_v44 = vsel %vm1106_vm3, %v1107_v34, %v1108_v35  ;;  %v6351_v45 = vsel %vm654_vm0, %v662_v26, %v664_v39  ;;  %v666_v46 = vrot.slane %v644_v40, 7  ;;  %s5965_s11 = smov 16   ;;  %s7650_s10 = sld [smem:[#allocation18_spill]] }
  0xcd   : > { %918 = vmatprep.mubr.f32.mxu0 %v5958_v0  ;;  %4970 = vmatpush1.bf16.msra.mxu0 %v4969_v31  ;;  %v822_v48 = vsel %vm813_vm1, %v819_v37, %v821_v43  ;;  %v823_v49 = vrot.slane %v6351_v45, 1  ;;  %v668_v51 = vrot.slane %v645_v47, 7  ;;  %vm786_vm4 = vcmp.eq.s32.totalorder %v694_v62, 0  ;;  %s7651_s14 = sld [smem:[#allocation19_spill]]  ;;  %s5968_s30 = smov 120  }
  0xce   : > { %4972 = vmatprep.subr.bf16.mxu0 %v4971_v41  ;;  %v6359_v50 = vsel %vm654_vm0, %v664_v39, %v666_v46  ;;  %v6387_v1 = vadd.s32 16, %v6376_v59  ;;  %v794_v4 = vsel %vm786_vm4, 0.0, %v6318_v17  ;;  %v4973_v5 = vpack.c.bf16 %v1143_v3, %v1141_v2  ;;  %v1298_v41 = vld [vmem:[%s7596_s2] sm:$0x3]  ;;  %s5969_s20 = smov 124   ;;  %p635_p0 = scmp.lt.s32.totalorder %s6082_s0, 1 }
  0xcf   : > { %v824_v52 = vsel %vm813_vm1, %v821_v43, %v823_v49  ;;  %v825_v53 = vrot.slane %v6359_v50, 1  ;;  %v6366_v54 = vsel %vm654_vm0, %v666_v46, %v668_v51  ;;  %v6373_v58 = vsel %vm654_vm0, %v668_v51, 0.0 }
  0xd0   : > { %4530 = vmatmul.mubr.msk.f32.gmra.mrb[2].mxu0 %vm831_vm2, %v818_v36  ;;  %v827_v57 = vrot.slane %v6366_v54, 1  ;;  %v829_v61 = vrot.slane %v6373_v58, 1  ;;  %v708_v6 = vand.u32 15, %v6387_v1  ;;  %v686_v7 = vadd.s32 32, %v6376_v59  ;;  %s7663_s0 = smov (!%p635_p0, %s6082_s0), 1 }
  0xd1   : > { %924 = vmatprep.mubr.f32.mxu0 %v5958_v0  ;;  %v826_v56 = vsel %vm813_vm1, %v823_v49, %v825_v53  ;;  %v688_v10 = vadd.s32 48, %v6376_v59  ;;  %v6414_v14 = vadd.s32 8, %v6376_v59  ;;  %v1110_v17 = vrot.slane %v6323_v24, 2 }
  0xd2   : > { %v828_v60 = vsel %vm813_vm1, %v825_v53, %v827_v57  ;;  %v830_v63 = vsel %vm813_vm1, %v827_v57, %v829_v61  ;;  %vm788_vm5 = vcmp.eq.s32.totalorder %v708_v6, 0  ;;  %v722_v9 = vand.u32 15, %v686_v7 }
  0xd3   : > { %v796_v8 = vsel %vm788_vm5, 0.0, %v6323_v24  ;;  %v736_v12 = vand.u32 15, %v688_v10  ;;  %v701_v15 = vand.u32 15, %v6414_v14  ;;  %v1111_v18 = vsel %vm1106_vm3, %v1108_v35, %v1110_v17 }
  0xd4   : > { %4531 = vmatmul.mubr.msk.f32.gmra.mrb[4].mxu0 %vm831_vm2, %v820_v42  ;;  %vm790_vm6 = vcmp.eq.s32.totalorder %v722_v9, 0  ;;  %v6427_v19 = vadd.s32 24, %v6376_v59  ;;  %v1112_v21 = vrot.slane %v6326_v25, 2  ;;  %v1114_v23 = vrot.slane %v6338_v38, 2 }
  0xd5   : > { %930 = vmatprep.mubr.f32.mxu0 %v5958_v0  ;;  %v798_v11 = vsel %vm790_vm6, 0.0, %v6338_v38  ;;  %vm792_vm7 = vcmp.eq.s32.totalorder %v736_v12, 0  ;;  %vm1099_vm8 = vcmp.eq.s32.totalorder %v701_v15, 15  ;;  %v687_v26 = vadd.s32 40, %v6376_v59 }
  0xd6   : > { %v800_v13 = vsel %vm792_vm7, 0.0, %v6359_v50  ;;  %v1133_v20 = vsel %vm1099_vm8, 0.0, %v1111_v18  ;;  %v715_v22 = vand.u32 15, %v6427_v19  ;;  %v1115_v24 = vsel %vm1106_vm3, %v1112_v21, %v1114_v23 }
  0xd7   : > { %v1116_v27 = vrot.slane %v6351_v45, 2  ;;  %v729_v28 = vand.u32 15, %v687_v26  ;;  %v1118_v29 = vrot.slane %v6359_v50, 2  ;;  %v689_v32 = vadd.s32 56, %v6376_v59 }
  0xd8   : > { %4532 = vmatmul.mubr.msk.f32.gmra.mrb[6].mxu0 %vm831_vm2, %v822_v48  ;;  %vm1101_vm9 = vcmp.eq.s32.totalorder %v715_v22, 15  ;;  %v1120_v34 = vrot.slane %v6366_v54, 2  ;;  %v1122_v36 = vrot.slane %v6373_v58, 2  ;;  %v6462_v40 = vsub.s32 0, %v6376_v59 }
  0xd9   : > { %936 = vmatprep.mubr.f32.mxu0 %v5958_v0  ;;  %v1117_v30 = vsel %vm1106_vm3, %v1114_v23, %v1116_v27  ;;  %vm1103_vm10 = vcmp.eq.s32.totalorder %v729_v28, 15  ;;  %v1119_v31 = vsel %vm1106_vm3, %v1116_v27, %v1118_v29  ;;  %v743_v35 = vand.u32 15, %v689_v32 }
  0xda   : > { %v1137_v33 = vsel %vm1103_vm10, 0.0, %v1119_v31  ;;  %v1121_v37 = vsel %vm1106_vm3, %v1118_v29, %v1120_v34  ;;  %v1123_v38 = vsel %vm1106_vm3, %v1120_v34, %v1122_v36  ;;  %v6468_v42 = vsub.s32 1, %v6376_v59 }
  0xdb   : > { %vm1105_vm11 = vcmp.eq.s32.totalorder %v743_v35, 15  ;;  %v1303_v43 = vrot.slane %v1298_v41, %v6462_v40  ;;  %vm1728_vm10 = vcmask 392192  }
  0xdc   : > { %4533 = vmatmul.mubr.msk.f32.gmra.mrb[8].mxu0 %vm831_vm2, %v824_v52  ;;  %v1139_v39 = vsel %vm1105_vm11, 0.0, %v1123_v38  ;;  %v1344_v38 = vmul.u32 2, %v6376_v59  ;;  %vm1737_vm11 = vcmask 654336  }
  0xdd   : > { %942 = vmatprep.mubr.f32.mxu0 %v5958_v0 }
  0xe0   : > { %4534 = vmatmul.mubr.msk.f32.gmra.mrb[10].mxu0 %vm831_vm2, %v826_v56 }
  0xe1   : > { %948 = vmatprep.mubr.f32.mxu0 %v5958_v0 }
  0xe4   : > { %4535 = vmatmul.mubr.msk.f32.gmra.mrb[12].mxu0 %vm831_vm2, %v828_v60 }
  0xe5   : > { %954 = vmatprep.mubr.f32.mxu0 %v5958_v0 }
  0xe8   : > { %4536 = vmatmul.mubr.msk.f32.gmra.mrb[14].mxu0 %vm831_vm2, %v830_v63 }
  0xe9   : > { %1049 = vmatprep.mubr.f32.mxu0 %v5958_v0 }
  0xec   : > { %4537 = vmatmul.mubr.msk.f32.vlgmr.msra.gmra.mrb[0].mxu0 %vm831_vm2, %v794_v4 }
  0xed   : > { %1055 = vmatprep.mubr.f32.mxu0 %v5958_v0  ;;  %4974 = vmatpush1.bf16.msra.mxu0 %v4973_v5 }
  0xf0   : > { %4538 = vmatmul.mubr.msk.f32.gmra.mrb[2].mxu0 %vm831_vm2, %v6315_v16  ;;  %v1113_v16 = vsel %vm1106_vm3, %v1110_v17, %v1112_v21 }
  0xf1   : > { %1061 = vmatprep.mubr.f32.mxu0 %v5958_v0 }
  0xf4   : > { %4539 = vmatmul.mubr.msk.f32.gmra.mrb[4].mxu0 %vm831_vm2, %v796_v8 }
  0xf5   : > { %1067 = vmatprep.mubr.f32.mxu0 %v5958_v0 }
  0xf8   : > { %4540 = vmatmul.mubr.msk.f32.gmra.mrb[6].mxu0 %vm831_vm2, %v6326_v25  ;;  %v1135_v25 = vsel %vm1101_vm9, 0.0, %v1115_v24  ;;  %vm1723_vm9 = vcmask 261120  }
  0xf9   : > { %1073 = vmatprep.mubr.f32.mxu0 %v5958_v0 }
  0xfc   : > { %4541 = vmatmul.mubr.msk.f32.gmra.mrb[8].mxu0 %vm831_vm2, %v798_v11 }
  0xfd   : > { %1079 = vmatprep.mubr.f32.mxu0 %v5958_v0 }
 0x100   : > { %4542 = vmatmul.mubr.msk.f32.gmra.mrb[10].mxu0 %vm831_vm2, %v6351_v45  ;;  %v1307_v45 = vrot.slane %v1298_v41, %v6468_v42 }
 0x101   : > { %1085 = vmatprep.mubr.f32.mxu0 %v5958_v0 }
 0x104   : > { %4543 = vmatmul.mubr.msk.f32.gmra.mrb[12].mxu0 %vm831_vm2, %v800_v13 }
 0x105   : > { %1091 = vmatprep.mubr.f32.mxu0 %v5958_v0 }
 0x108   : > { %4544 = vmatmul.mubr.msk.f32.gmra.mrb[14].mxu0 %vm831_vm2, %v6366_v54 }
 0x109   : > { %1233 = vmatprep.mubr.f32.mxu0 %v5958_v0 }
 0x10c   : > { %4545 = vmatmul.mubr.msk.f32.vlgmr.msra.gmra.mrb[0].mxu0 %vm831_vm2, %v6348_v44 }
 0x10d   : > { %1239 = vmatprep.mubr.f32.mxu0 %v5958_v0 }
 0x110   : > { %4546 = vmatmul.mubr.msk.f32.gmra.mrb[2].mxu0 %vm831_vm2, %v1133_v20 }
 0x111   : > { %1245 = vmatprep.mubr.f32.mxu0 %v5958_v0 }
 0x114   : > { %4547 = vmatmul.mubr.msk.f32.gmra.mrb[4].mxu0 %vm831_vm2, %v1113_v16 }
 0x115   : > { %1251 = vmatprep.mubr.f32.mxu0 %v5958_v0 }
 0x118   : > { %4548 = vmatmul.mubr.msk.f32.gmra.mrb[6].mxu0 %vm831_vm2, %v1135_v25 }
 0x119   : > { %1257 = vmatprep.mubr.f32.mxu0 %v5958_v0 }
 0x11c   : > { %4549 = vmatmul.mubr.msk.f32.gmra.mrb[8].mxu0 %vm831_vm2, %v1117_v30 }
 0x11d   : > { %1263 = vmatprep.mubr.f32.mxu0 %v5958_v0 }
 0x120   : > { %4550 = vmatmul.mubr.msk.f32.gmra.mrb[10].mxu0 %vm831_vm2, %v1137_v33 }
 0x121   : > { %1269 = vmatprep.mubr.f32.mxu0 %v5958_v0 }
 0x124   : > { %4551 = vmatmul.mubr.msk.f32.gmra.mrb[12].mxu0 %vm831_vm2, %v1121_v37  ;;  %v1343_v37 = vand.u32 127, %v681_v55  ;;  %v1346_v55 = vmul.u32 2, %v6387_v1 }
 0x125   : > { %1275 = vmatprep.mubr.f32.mxu0 %v5958_v0 }
 0x126   : > { %vm1348_vm12 = vcmp.eq.s32.totalorder %v1343_v37, %v1344_v38  ;;  %vm1350_vm15 = vcmp.eq.s32.totalorder %v1343_v37, %v1346_v55 }
 0x128   : > { %4552 = vmatmul.mubr.msk.f32.gmra.mrb[14].mxu0 %vm831_vm2, %v1139_v39 }
 0x129   : > { %2331 = vmatprep.mubr.f32.mxu0 %v5958_v0 }
 0x1df   : > { %v1235_v44 = vpop.f32.mrb[0].mxu0 }
 0x1e0   : > { %v1237_v46 = vpop.f32.mrb[1].mxu0  ;;  %v1310_v47 = vadd.f32 %v1303_v43, %v1235_v44 }
 0x1e1   : > { %v1311_v48 = vadd.f32 %v1307_v45, %v1237_v46 }
 0x1e2   : > { %v1326_v53 = vmax.f32 %v1310_v47, 0.0 }
 0x1e3   : > { %v1241_v49 = vpop.f32.mrb[2].mxu0  ;;  %v1327_v56 = vmax.f32 %v1311_v48, 0.0 }
 0x1e4   : > { %v1312_v50 = vadd.f32 %v1303_v43, %v1241_v49  ;;  %v1243_v51 = vpop.f32.mrb[3].mxu0  ;;  %v1345_v49 = vmul.u32 2, %v6414_v14 }
 0x1e5   : > { %v1313_v52 = vadd.f32 %v1307_v45, %v1243_v51  ;;  %v4555_v51 = vsel %vm1350_vm15, 1.0, %v5958_v0 }
 0x1e6   : > { %v1328_v54 = vmax.f32 %v1312_v50, 0.0  ;;  %vm1349_vm14 = vcmp.eq.s32.totalorder %v1343_v37, %v1345_v49  ;;  %v1347_v50 = vmul.u32 2, %v6427_v19 }
 0x1e7   : > { %v1329_v57 = vmax.f32 %v1313_v52, 0.0  ;;  %v1247_v58 = vpop.f32.mrb[4].mxu0  ;;  %v1360_v52 = vadd.s32 1, %v1344_v38 }
 0x1e8   : > { %v1249_v60 = vpop.f32.mrb[5].mxu0  ;;  %v4977_v61 = vpack.c.bf16 %v1328_v54, %v1326_v53  ;;  %v1314_v63 = vadd.f32 %v1303_v43, %v1247_v58  ;;  %vm1351_vm4 = vcmp.eq.s32.totalorder %v1343_v37, %v1347_v50  ;;  %v1361_v54 = vadd.s32 1, %v1345_v49 }
 0x1e9   : > { %v4975_v62 = vpack.c.bf16 %v1329_v57, %v1327_v56  ;;  %v1315_v2 = vadd.f32 %v1307_v45, %v1249_v60  ;;  %v4556_v53 = vsel %vm1351_vm4, 1.0, %v5958_v0  ;;  %vm1364_vm5 = vcmp.eq.s32.totalorder %v1343_v37, %v1360_v52 }
 0x1ea   : > { %v1330_v7 = vmax.f32 %v1314_v63, 0.0  ;;  %v6496_v56 = vsel %vm1364_vm5, 1.0, %v5958_v0  ;;  %vm1365_vm6 = vcmp.eq.s32.totalorder %v1343_v37, %v1361_v54  ;;  %v1362_v57 = vadd.s32 1, %v1346_v55  ;;  %v1873_v54 = vld [vmem:[#allocation6 + $0x170] sm:$0xff] }
 0x1eb   : > { %v1253_v3 = vpop.f32.mrb[6].mxu0  ;;  %4976 = vmatprep.subr.bf16.mxu1 %v4975_v62  ;;  %v1331_v9 = vmax.f32 %v1315_v2, 0.0  ;;  %v6502_v58 = vsel %vm1365_vm6, 1.0, %v5958_v0  ;;  %v1363_v60 = vadd.s32 1, %v1347_v50  ;;  %v1872_v50 = vld [vmem:[#allocation6 + $0x168] sm:$0xff] }
 0x1ec   : > { %v1316_v4 = vadd.f32 %v1303_v43, %v1253_v3  ;;  %v1255_v5 = vpop.f32.mrb[7].mxu0  ;;  %4978 = vmatpush1.bf16.msra.mxu1 %v4977_v61  ;;  %vm1366_vm7 = vcmp.eq.s32.totalorder %v1343_v37, %v1362_v57 }
 0x1ed   : > { %v1317_v6 = vadd.f32 %v1307_v45, %v1255_v5  ;;  %vm1367_vm8 = vcmp.eq.s32.totalorder %v1343_v37, %v1363_v60  ;;  %v1865_v37 = vld [vmem:[#allocation6 + $0x130] sm:$0xff] }
 0x1ee   : > { %v1332_v8 = vmax.f32 %v1316_v4, 0.0 }
 0x1ef   : > { %v1333_v10 = vmax.f32 %v1317_v6, 0.0  ;;  %v1259_v11 = vpop.f32.mrb[8].mxu0 }
 0x1f0   : > { %v4981_v12 = vpack.c.bf16 %v1332_v8, %v1330_v7  ;;  %v1261_v13 = vpop.f32.mrb[9].mxu0  ;;  %v1318_v17 = vadd.f32 %v1303_v43, %v1259_v11 }
 0x1f1   : > { %v4979_v15 = vpack.c.bf16 %v1333_v10, %v1331_v9  ;;  %v1319_v18 = vadd.f32 %v1307_v45, %v1261_v13 }
 0x1f2   : > { %v1334_v16 = vmax.f32 %v1318_v17, 0.0 }
 0x1f3   : > { %v1265_v20 = vpop.f32.mrb[10].mxu0  ;;  %4980 = vmatprep.subr.bf16.mxu1 %v4979_v15  ;;  %v1335_v26 = vmax.f32 %v1319_v18, 0.0 }
 0x1f4   : > { %v1320_v21 = vadd.f32 %v1303_v43, %v1265_v20  ;;  %v1267_v22 = vpop.f32.mrb[11].mxu0  ;;  %4982 = vmatpush1.bf16.msra.mxu1 %v4981_v12 }
 0x1f5   : > { %v1321_v23 = vadd.f32 %v1307_v45, %v1267_v22 }
 0x1f6   : > { %v1336_v24 = vmax.f32 %v1320_v21, 0.0 }
 0x1f7   : > { %v1337_v25 = vmax.f32 %v1321_v23, 0.0  ;;  %v1271_v27 = vpop.f32.mrb[12].mxu0 }
 0x1f8   : > { %v4985_v28 = vpack.c.bf16 %v1336_v24, %v1334_v16  ;;  %v1273_v29 = vpop.f32.mrb[13].mxu0  ;;  %v1322_v31 = vadd.f32 %v1303_v43, %v1271_v27  ;;  %v1860_v27 = vld [vmem:[#allocation6 + $0x108] sm:$0xff] }
 0x1f9   : > { %v4983_v30 = vpack.c.bf16 %v1337_v25, %v1335_v26  ;;  %v1323_v32 = vadd.f32 %v1307_v45, %v1273_v29 }
 0x1fa   : > { %v1338_v39 = vmax.f32 %v1322_v31, 0.0  ;;  %v1861_v31 = vld [vmem:[#allocation6 + $0x110] sm:$0xff] }
 0x1fb   : > { %v1277_v33 = vpop.f32.mrb[14].mxu0  ;;  %4984 = vmatprep.subr.bf16.mxu1 %v4983_v30  ;;  %v1339_v44 = vmax.f32 %v1323_v32, 0.0 }
 0x1fc   : > { %v1324_v34 = vadd.f32 %v1303_v43, %v1277_v33  ;;  %v1279_v35 = vpop.f32.mrb[15].mxu0  ;;  %4986 = vmatpush1.bf16.msra.mxu1 %v4985_v28  ;;  %v6476_v43 = vsel %vm1348_vm12, 1.0, %v5958_v0  ;;  %v1864_v33 = vld [vmem:[#allocation6 + $0x128] sm:$0xff]  ;;  %vm1742_vm12 = vcmask 785408  }
 0x1fd   : > { %v1325_v36 = vadd.f32 %v1307_v45, %v1279_v35  ;;  %v6483_v45 = vsel %vm1349_vm14, 1.0, %v5958_v0  ;;  %vm1747_vm14 = vcmask 916480  }
 0x1fe   : > { %v1340_v41 = vmax.f32 %v1324_v34, 0.0  ;;  %v1866_v34 = vld [vmem:[#allocation6 + $0x138] sm:$0xff] }
 0x1ff   : > { %v1341_v46 = vmax.f32 %v1325_v36, 0.0  ;;  %v5011_v35 = vpack.c.bf16 %v1866_v34, %v1864_v33  ;;  %v1863_v36 = vld [vmem:[#allocation6 + $0x120] sm:$0xff]  ;;  %v1889_v33 = vld [vmem:[#allocation6 + $0x1f0] sm:$0xff] }
 0x200   : > { %v4989_v47 = vpack.c.bf16 %v1340_v41, %v1338_v39  ;;  %v5013_v38 = vpack.c.bf16 %v1865_v37, %v1863_v36  ;;  %v1868_v39 = vld [vmem:[#allocation6 + $0x148] sm:$0xff]  ;;  %v1870_v41 = vld [vmem:[#allocation6 + $0x158] sm:$0xff] }
 0x201   : > { %v4987_v48 = vpack.c.bf16 %v1341_v46, %v1339_v44  ;;  %v5015_v44 = vpack.c.bf16 %v1870_v41, %v1868_v39  ;;  %v1867_v46 = vld [vmem:[#allocation6 + $0x140] sm:$0xff] }
 0x203   : > { %4988 = vmatprep.subr.bf16.mxu1 %v4987_v48 }
 0x204   : > { %4990 = vmatpush1.bf16.msra.mxu1 %v4989_v47 }
 0x205   : > { %4992 = vmatprep.subr.bf16.mxu1 %v4975_v62  ;;  %v4560_v62 = vsel %vm1367_vm8, 1.0, %v5958_v0 }
 0x207   : > { %4561 = vmatmul.mubr.msk.f32.vlgmr.msra.gmra.mrb[0].mxu1 %vm1376_vm13, %v6476_v43 }
 0x208   : > { %4994 = vmatpush1.bf16.msra.mxu1 %v4977_v61  ;;  %1459 = vmatprep.mubr.f32.mxu1 %v5958_v0  ;;  %v4559_v61 = vsel %vm1366_vm7, 1.0, %v5958_v0 }
 0x209   : > { %4996 = vmatprep.subr.bf16.mxu1 %v4979_v15 }
 0x20b   : > { %4562 = vmatmul.mubr.msk.f32.gmra.mrb[2].mxu1 %vm1376_vm13, %v6483_v45 }
 0x20c   : > { %4998 = vmatpush1.bf16.msra.mxu1 %v4981_v12  ;;  %1465 = vmatprep.mubr.f32.mxu1 %v5958_v0 }
 0x20d   : > { %5000 = vmatprep.subr.bf16.mxu1 %v4983_v30  ;;  %v1859_v30 = vld [vmem:[#allocation6 + $0x100] sm:$0xff] }
 0x20e   : > { %v5009_v32 = vpack.c.bf16 %v1861_v31, %v1859_v30  ;;  %v1890_v30 = vld [vmem:[#allocation6 + $0x1f8] sm:$0xff] }
 0x20f   : > { %4563 = vmatmul.mubr.msk.f32.gmra.mrb[4].mxu1 %vm1376_vm13, %v4555_v51  ;;  %v1874_v51 = vld [vmem:[#allocation6 + $0x178] sm:$0xff] }
 0x210   : > { %5002 = vmatpush1.bf16.msra.mxu1 %v4985_v28  ;;  %1471 = vmatprep.mubr.f32.mxu1 %v5958_v0  ;;  %v1862_v28 = vld [vmem:[#allocation6 + $0x118] sm:$0xff]  ;;  %v5019_v52 = vpack.c.bf16 %v1874_v51, %v1872_v50 }
 0x211   : > { %5004 = vmatprep.subr.bf16.mxu1 %v4987_v48  ;;  %v5007_v29 = vpack.c.bf16 %v1862_v28, %v1860_v27  ;;  %v1885_v27 = vld [vmem:[#allocation6 + $0x1d0] sm:$0xff] }
 0x213   : > { %4564 = vmatmul.mubr.msk.f32.gmra.mrb[6].mxu1 %vm1376_vm13, %v4556_v53  ;;  %v1871_v53 = vld [vmem:[#allocation6 + $0x160] sm:$0xff] }
 0x214   : > { %5006 = vmatpush1.bf16.msra.mxu1 %v4989_v47  ;;  %1554 = vmatprep.mubr.f32.mxu1 %v5958_v0  ;;  %v1869_v47 = vld [vmem:[#allocation6 + $0x150] sm:$0xff]  ;;  %v5021_v60 = vpack.c.bf16 %v1873_v54, %v1871_v53 }
 0x215   : > { %5008 = vmatprep.subr.bf16.mxu1 %v5007_v29  ;;  %v5017_v49 = vpack.c.bf16 %v1869_v47, %v1867_v46 }
 0x217   : > { %4565 = vmatmul.mubr.msk.f32.vlgmr.msra.gmra.mrb[8].mxu1 %vm1376_vm13, %v6496_v56 }
 0x218   : > { %1560 = vmatprep.mubr.f32.mxu1 %v5958_v0  ;;  %5010 = vmatpush1.bf16.msra.mxu1 %v5009_v32  ;;  %v1887_v32 = vld [vmem:[#allocation6 + $0x1e0] sm:$0xff] }
 0x219   : > { %5012 = vmatprep.subr.bf16.mxu1 %v5011_v35  ;;  %v5037_v34 = vpack.c.bf16 %v1889_v33, %v1887_v32  ;;  %v1829_v35 = vld [vmem:[#allocation6 + $0x18] sm:$0xff] }
 0x21b   : > { %4566 = vmatmul.mubr.msk.f32.gmra.mrb[10].mxu1 %vm1376_vm13, %v6502_v58 }
 0x21c   : > { %1566 = vmatprep.mubr.f32.mxu1 %v5958_v0  ;;  %5014 = vmatpush1.bf16.msra.mxu1 %v5013_v38 }
 0x21d   : > { %5016 = vmatprep.subr.bf16.mxu1 %v5015_v44 }
 0x21f   : > { %4567 = vmatmul.mubr.msk.f32.gmra.mrb[12].mxu1 %vm1376_vm13, %v4559_v61 }
 0x220   : > { %1572 = vmatprep.mubr.f32.mxu1 %v5958_v0  ;;  %5018 = vmatpush1.bf16.msra.mxu1 %v5017_v49 }
 0x221   : > { %5020 = vmatprep.subr.bf16.mxu1 %v5019_v52 }
 0x223   : > { %4568 = vmatmul.mubr.msk.f32.gmra.mrb[14].mxu1 %vm1376_vm13, %v4560_v62  ;;  %v1876_v62 = vld [vmem:[#allocation6 + $0x188] sm:$0xff] }
 0x224   : > { %1970 = vmatprep.mubr.f32.mxu1 %v5958_v0  ;;  %5022 = vmatpush1.bf16.msra.mxu1 %v5021_v60 }
 0x2da   : > { %v1455_v63 = vpop.f32.mrb[0].mxu1 }
 0x2db   : > { %v1457_v2 = vpop.f32.mrb[1].mxu1 }
 0x2de   : > { %v1461_v3 = vpop.f32.mrb[2].mxu1 }
 0x2df   : > { %v1463_v4 = vpop.f32.mrb[3].mxu1 }
 0x2e2   : > { %v1467_v5 = vpop.f32.mrb[4].mxu1 }
 0x2e3   : > { %v1469_v6 = vpop.f32.mrb[5].mxu1 }
 0x2e6   : > { %v1473_v7 = vpop.f32.mrb[6].mxu1 }
 0x2e7   : > { %v1475_v8 = vpop.f32.mrb[7].mxu1 }
 0x2ea   : > { %v1556_v9 = vpop.f32.mrb[8].mxu1 }
 0x2eb   : > { %v1579_v10 = vmax.f32 %v1455_v63, %v1556_v9  ;;  %v1558_v11 = vpop.f32.mrb[9].mxu1  ;;  %v1878_v63 = vld [vmem:[#allocation6 + $0x198] sm:$0xff] }
 0x2ec   : > { %v6513_v12 = vmax.f32 %v1457_v2, %v1558_v11  ;;  %v5023_v2 = vpack.c.bf16 %v1878_v63, %v1876_v62  ;;  %v1881_v11 = vld [vmem:[#allocation6 + $0x1b0] sm:$0xff] }
 0x2ed   : > { %1591 = vrot.lane.b32.xlu0 %v1579_v10, %s5959_s22 }
 0x2ee   : > { %1611 = vrot.lane.b32.xlu1 %v6513_v12, %s5959_s22  ;;  %v1562_v13 = vpop.f32.mrb[10].mxu1  ;;  %5024 = vmatprep.subr.bf16.mxu1 %v5023_v2 }
 0x2ef   : > { %v1581_v15 = vmax.f32 %v1461_v3, %v1562_v13  ;;  %v1564_v17 = vpop.f32.mrb[11].mxu1  ;;  %v1875_v3 = vld [vmem:[#allocation6 + $0x180] sm:$0xff] }
 0x2f0   : > { %v6518_v18 = vmax.f32 %v1463_v4, %v1564_v17  ;;  %v1877_v4 = vld [vmem:[#allocation6 + $0x190] sm:$0xff] }
 0x2f1   : > { %1593 = vrot.lane.b32.xlu0 %v1581_v15, %s5959_s22 }
 0x2f2   : > { %1613 = vrot.lane.b32.xlu1 %v6518_v18, %s5959_s22  ;;  %v1568_v20 = vpop.f32.mrb[12].mxu1 }
 0x2f3   : > { %v6523_v21 = vmax.f32 %v1467_v5, %v1568_v20  ;;  %v1570_v22 = vpop.f32.mrb[13].mxu1  ;;  %v1884_v20 = vld [vmem:[#allocation6 + $0x1c8] sm:$0xff] }
 0x2f4   : > { %v6525_v23 = vmax.f32 %v1469_v6, %v1570_v22  ;;  %v5025_v6 = vpack.c.bf16 %v1877_v4, %v1875_v3  ;;  %v1886_v22 = vld [vmem:[#allocation6 + $0x1d8] sm:$0xff] }
 0x2f5   : > { %1595 = vrot.lane.b32.xlu0 %v6523_v21, %s5959_s22 }
 0x2f6   : > { %1615 = vrot.lane.b32.xlu1 %v6525_v23, %s5959_s22  ;;  %v1574_v16 = vpop.f32.mrb[14].mxu1  ;;  %5026 = vmatpush1.bf16.msra.mxu1 %v5025_v6 }
 0x2f7   : > { %v6531_v24 = vmax.f32 %v1473_v7, %v1574_v16  ;;  %v1576_v26 = vpop.f32.mrb[15].mxu1  ;;  %v1880_v7 = vld [vmem:[#allocation6 + $0x1a8] sm:$0xff]  ;;  %v5031_v16 = vpack.c.bf16 %v1886_v22, %v1884_v20  ;;  %v1826_v22 = vld [vmem:[#allocation6] sm:$0xff] }
 0x2f8   : > { %v6533_v25 = vmax.f32 %v1475_v8, %v1576_v26  ;;  %v1882_v8 = vld [vmem:[#allocation6 + $0x1b8] sm:$0xff]  ;;  %v1883_v26 = vld [vmem:[#allocation6 + $0x1c0] sm:$0xff] }
 0x2f9   : > { %1597 = vrot.lane.b32.xlu0 %v6531_v24, %s5959_s22  ;;  %v5027_v9 = vpack.c.bf16 %v1882_v8, %v1880_v7  ;;  %v5033_v28 = vpack.c.bf16 %v1885_v27, %v1883_v26 }
 0x2fa   : > { %1617 = vrot.lane.b32.xlu1 %v6533_v25, %s5959_s22 }
 0x2fb   : > { %5028 = vmatprep.subr.bf16.mxu1 %v5027_v9 }
 0x35f   : > { %v1592_v48 = vpop.permute.xlu0 %1591 }
 0x360   : > { %v6539_v55 = vmax.f32 %v1579_v10, %v1592_v48  ;;  %v1612_v5 = vpop.permute.xlu1 %1611  ;;  %v1879_v10 = vld [vmem:[#allocation6 + $0x1a0] sm:$0xff] }
 0x361   : > { %v5029_v13 = vpack.c.bf16 %v1881_v11, %v1879_v10 }
 0x362   : > { %1631 = vrot.lane.b32.xlu0 %v6539_v55, %s5959_s22 }
 0x363   : > { %v1594_v57 = vpop.permute.xlu0 %1593  ;;  %5030 = vmatpush1.bf16.msra.mxu1 %v5029_v13 }
 0x364   : > { %v6543_v61 = vmax.f32 %v1581_v15, %v1594_v57  ;;  %v1623_v15 = vmax.f32 %v6513_v12, %v1612_v5  ;;  %v1614_v17 = vpop.permute.xlu1 %1613  ;;  %5032 = vmatprep.subr.bf16.mxu1 %v5031_v16  ;;  %v1888_v12 = vld [vmem:[#allocation6 + $0x1e8] sm:$0xff]  ;;  %v1828_v16 = vld [vmem:[#allocation6 + $0x10] sm:$0xff] }
 0x365   : > { %v1624_v29 = vmax.f32 %v6518_v18, %v1614_v17  ;;  %v5035_v31 = vpack.c.bf16 %v1890_v30, %v1888_v12  ;;  %v1827_v18 = vld [vmem:[#allocation6 + $0x8] sm:$0xff]  ;;  %v5041_v32 = vpack.c.bf16 %v1828_v16, %v1826_v22 }
 0x366   : > { %1643 = vrot.lane.b32.xlu0 %v6539_v55, %s5960_s15  ;;  %1633 = vrot.lane.b32.xlu1 %v6543_v61, %s5959_s22  ;;  %v5039_v37 = vpack.c.bf16 %v1829_v35, %v1827_v18 }
 0x367   : > { %5034 = vmatpush1.bf16.msra.mxu1 %v5033_v28  ;;  %v1596_v36 = vpop.permute.xlu0 %1595  ;;  %v1831_v28 = vld [vmem:[#allocation6 + $0x28] sm:$0xff] }
 0x368   : > { %5036 = vmatprep.subr.bf16.mxu1 %v5035_v31  ;;  %v6564_v38 = vmax.f32 %v6523_v21, %v1596_v36  ;;  %v1616_v39 = vpop.permute.xlu1 %1615 }
 0x369   : > { %v1625_v44 = vmax.f32 %v6525_v23, %v1616_v39  ;;  %v1832_v39 = vld [vmem:[#allocation6 + $0x30] sm:$0xff] }
 0x36a   : > { %1655 = vrot.lane.b32.xlu0 %v6539_v55, %s5961_s18  ;;  %1645 = vrot.lane.b32.xlu1 %v6543_v61, %s5960_s15 }
 0x36b   : > { %5038 = vmatpush1.bf16.msra.mxu1 %v5037_v34  ;;  %v1598_v41 = vpop.permute.xlu0 %1597 }
 0x36c   : > { %5040 = vmatprep.subr.bf16.mxu1 %v5039_v37  ;;  %v6574_v46 = vmax.f32 %v6531_v24, %v1598_v41  ;;  %v1618_v21 = vpop.permute.xlu1 %1617  ;;  %v1830_v37 = vld [vmem:[#allocation6 + $0x20] sm:$0xff] }
 0x36d   : > { %v1626_v23 = vmax.f32 %v6533_v25, %v1618_v21  ;;  %v1837_v21 = vld [vmem:[#allocation6 + $0x58] sm:$0xff] }
 0x36e   : > { %1671 = vrot.lane.b32.xlu0 %v1623_v15, %s5962_s27  ;;  %1657 = vrot.lane.b32.xlu1 %v6543_v61, %s5961_s18 }
 0x372   : > { %1683 = vrot.lane.b32.xlu0 %v1623_v15, %s5963_s1  ;;  %1673 = vrot.lane.b32.xlu1 %v1624_v29, %s5962_s27 }
 0x376   : > { %1695 = vrot.lane.b32.xlu0 %v1623_v15, %s5964_s29  ;;  %1685 = vrot.lane.b32.xlu1 %v1624_v29, %s5963_s1 }
 0x37a   : > { %1707 = vrot.lane.b32.xlu0 %v1623_v15, %s5965_s11  ;;  %1697 = vrot.lane.b32.xlu1 %v1624_v29, %s5964_s29 }
 0x37e   : > { %1635 = vrot.lane.b32.xlu0 %v6564_v38, %s5959_s22  ;;  %1709 = vrot.lane.b32.xlu1 %v1624_v29, %s5965_s11  ;;  %v1833_v29 = vld [vmem:[#allocation6 + $0x38] sm:$0xff] }
 0x37f   : > { %v5043_v36 = vpack.c.bf16 %v1833_v29, %v1831_v28 }
 0x382   : > { %1659 = vrot.lane.b32.xlu0 %v6564_v38, %s5961_s18  ;;  %1647 = vrot.lane.b32.xlu1 %v6564_v38, %s5960_s15 }
 0x386   : > { %1637 = vrot.lane.b32.xlu0 %v6574_v46, %s5959_s22  ;;  %1675 = vrot.lane.b32.xlu1 %v1625_v44, %s5962_s27  ;;  %s7652_s22 = sld [smem:[#allocation21_spill]] }
 0x38a   : > { %1649 = vrot.lane.b32.xlu0 %v6574_v46, %s5960_s15  ;;  %1687 = vrot.lane.b32.xlu1 %v1625_v44, %s5963_s1 }
 0x38e   : > { %1661 = vrot.lane.b32.xlu0 %v6574_v46, %s5961_s18  ;;  %1699 = vrot.lane.b32.xlu1 %v1625_v44, %s5964_s29 }
 0x392   : > { %1711 = vrot.lane.b32.xlu1 %v1625_v44, %s5965_s11  ;;  %1677 = vrot.lane.b32.xlu0 %v1626_v23, %s5962_s27  ;;  %v1835_v44 = vld [vmem:[#allocation6 + $0x48] sm:$0xff] }
 0x396   : > { %1689 = vrot.lane.b32.xlu1 %v1626_v23, %s5963_s1  ;;  %1701 = vrot.lane.b32.xlu0 %v1626_v23, %s5964_s29 }
 0x39a   : > { %1713 = vrot.lane.b32.xlu1 %v1626_v23, %s5965_s11  ;;  %s7655_s11 = sld [smem:[#allocation22_spill]] }
 0x3d4   : > { %v1632_v24 = vpop.permute.xlu0 %1631 }
 0x3d5   : > { %v1719_v25 = vsel %vm831_vm2, %v6539_v55, %v1632_v24 }
 0x3d8   : > { %v1644_v47 = vpop.permute.xlu0 %1643  ;;  %v1634_v48 = vpop.permute.xlu1 %1633 }
 0x3d9   : > { %v1724_v57 = vsel %vm1723_vm9, %v1719_v25, %v1644_v47  ;;  %v1720_v3 = vsel %vm831_vm2, %v6543_v61, %v1634_v48  ;;  %v5045_v48 = vpack.c.bf16 %v1832_v39, %v1830_v37  ;;  %v1851_v39 = vld [vmem:[#allocation6 + $0xc8] sm:$0xff] }
 0x3dc   : > { %v1656_v49 = vpop.permute.xlu0 %1655  ;;  %v1646_v50 = vpop.permute.xlu1 %1645 }
 0x3dd   : > { %v1729_v63 = vsel %vm1728_vm10, %v1724_v57, %v1656_v49  ;;  %v1725_v5 = vsel %vm1723_vm9, %v1720_v3, %v1646_v50  ;;  %v5047_v49 = vpack.c.bf16 %v1837_v21, %v1835_v44  ;;  %v1834_v50 = vld [vmem:[#allocation6 + $0x40] sm:$0xff]  ;;  %v1840_v3 = vld [vmem:[#allocation6 + $0x70] sm:$0xff] }
 0x3e0   : > { %v1672_v51 = vpop.permute.xlu0 %1671  ;;  %v1658_v52 = vpop.permute.xlu1 %1657 }
 0x3e1   : > { %v1733_v2 = vsel %vm1376_vm13, %v1729_v63, %v1672_v51  ;;  %v1730_v8 = vsel %vm1728_vm10, %v1725_v5, %v1658_v52  ;;  %v1836_v51 = vld [vmem:[#allocation6 + $0x50] sm:$0xff]  ;;  %v1839_v52 = vld [vmem:[#allocation6 + $0x68] sm:$0xff]  ;;  %v1845_v5 = vld [vmem:[#allocation6 + $0x98] sm:$0xff] }
 0x3e4   : > { %v1684_v53 = vpop.permute.xlu0 %1683  ;;  %v1674_v54 = vpop.permute.xlu1 %1673 }
 0x3e5   : > { %v1738_v4 = vsel %vm1737_vm11, %v1733_v2, %v1684_v53  ;;  %v1734_v10 = vsel %vm1376_vm13, %v1730_v8, %v1674_v54  ;;  %v1841_v53 = vld [vmem:[#allocation6 + $0x78] sm:$0xff]  ;;  %v1838_v2 = vld [vmem:[#allocation6 + $0x60] sm:$0xff] }
 0x3e6   : > { %v5051_v63 = vpack.c.bf16 %v1841_v53, %v1839_v52  ;;  %v5053_v8 = vpack.c.bf16 %v1840_v3, %v1838_v2  ;;  %v1852_v52 = vld [vmem:[#allocation6 + $0xd0] sm:$0xff]  ;;  %v1854_v2 = vld [vmem:[#allocation6 + $0xe0] sm:$0xff] }
 0x3e7   : > { %v1856_v3 = vld [vmem:[#allocation6 + $0xf0] sm:$0xff] }
 0x3e8   : > { %v1696_v60 = vpop.permute.xlu0 %1695  ;;  %v1686_v62 = vpop.permute.xlu1 %1685 }
 0x3e9   : > { %v1743_v55 = vsel %vm1742_vm12, %v1738_v4, %v1696_v60  ;;  %v1739_v13 = vsel %vm1737_vm11, %v1734_v10, %v1686_v62  ;;  %v5049_v60 = vpack.c.bf16 %v1836_v51, %v1834_v50  ;;  %v1843_v4 = vld [vmem:[#allocation6 + $0x88] sm:$0xff]  ;;  %v1842_v10 = vld [vmem:[#allocation6 + $0x80] sm:$0xff] }
 0x3ea   : > { %v1850_v51 = vld [vmem:[#allocation6 + $0xc0] sm:$0xff] }
 0x3ec   : > { %v1708_v6 = vpop.permute.xlu0 %1707  ;;  %v1698_v7 = vpop.permute.xlu1 %1697 }
 0x3ed   : > { %v1748_v9 = vsel %vm1747_vm14, %v1743_v55, %v1708_v6  ;;  %v1744_v15 = vsel %vm1742_vm12, %v1739_v13, %v1698_v7 }
 0x3ee   : > { %v1756_v11 = vrot.slane %v1748_v9, 7 }
 0x3f0   : > { %v1636_v61 = vpop.permute.xlu0 %1635  ;;  %v1710_v17 = vpop.permute.xlu1 %1709  ;;  %v6608_v26 = vsel %vm654_vm0, 0.0, %v1756_v11 }
 0x3f1   : > { %v6605_v20 = vsel %vm1747_vm14, %v1744_v15, %v1710_v17  ;;  %v1893_v33 = vrot.slane %v6608_v26, 1  ;;  %v2088_v34 = vrot.slane %v6608_v26, 2  ;;  %v1721_v57 = vsel %vm831_vm2, %v6564_v38, %v1636_v61  ;;  %v1847_v15 = vld [vmem:[#allocation6 + $0xa8] sm:$0xff]  ;;  %v1849_v61 = vld [vmem:[#allocation6 + $0xb8] sm:$0xff] }
 0x3f2   : > { %v1757_v27 = vrot.slane %v6605_v20, 7  ;;  %v5055_v38 = vpack.c.bf16 %v1845_v5, %v1843_v4  ;;  %v1855_v20 = vld [vmem:[#allocation6 + $0xe8] sm:$0xff]  ;;  %v2109_v5 = vld [vmem:[#allocation6 + $0x218] sm:$0xff] }
 0x3f3   : > { %v2107_v4 = vld [vmem:[#allocation6 + $0x208] sm:$0xff] }
 0x3f4   : > { %v6614_v12 = vsel %vm654_vm0, %v1756_v11, %v1757_v27  ;;  %v1660_v30 = vpop.permute.xlu0 %1659  ;;  %v1648_v31 = vpop.permute.xlu1 %1647  ;;  %v1844_v11 = vld [vmem:[#allocation6 + $0x90] sm:$0xff] }
 0x3f5   : > { %v1894_v18 = vrot.slane %v6614_v12, 1  ;;  %v2089_v35 = vrot.slane %v6614_v12, 2  ;;  %v1726_v62 = vsel %vm1723_vm9, %v1721_v57, %v1648_v31 }
 0x3f6   : > { %v1731_v7 = vsel %vm1728_vm10, %v1726_v62, %v1660_v30  ;;  %v5057_v30 = vpack.c.bf16 %v1844_v11, %v1842_v10  ;;  %v1774_v10 = vand.u32 7, %v6376_v59  ;;  %v2106_v11 = vld [vmem:[#allocation6 + $0x200] sm:$0xff] }
 0x3f7   : > { %v1895_v41 = vsel %vm813_vm1, %v1893_v33, %v1894_v18  ;;  %v6626_v23 = vsel %vm1106_vm3, %v2088_v34, %v2089_v35  ;;  %v5059_v33 = vpack.c.bf16 %v1849_v61, %v1847_v15  ;;  %v1846_v34 = vld [vmem:[#allocation6 + $0xa0] sm:$0xff]  ;;  %v2111_v61 = vld [vmem:[#allocation6 + $0x228] sm:$0xff] }
 0x3f8   : > { %v1638_v24 = vpop.permute.xlu0 %1637  ;;  %1971 = vmatmul.mubr.f32.vlgmr.msra.gmra.mrb[16].mxu1 %v1895_v41  ;;  %v1676_v47 = vpop.permute.xlu1 %1675  ;;  %v1853_v41 = vld [vmem:[#allocation6 + $0xd8] sm:$0xff]  ;;  %vm4609_vm15 = vcmp.ne.s32.totalorder %v1774_v10, 0  ;;  %vm4613_vm7 = vcmp.ne.s32.totalorder %v1774_v10, 7 }
 0x3f9   : > { %5042 = vmatpush1.bf16.msra.mxu1 %v5041_v32  ;;  %1976 = vmatprep.mubr.f32.mxu1 %v5958_v0  ;;  %v1735_v9 = vsel %vm1376_vm13, %v1731_v7, %v1676_v47  ;;  %v1722_v28 = vsel %vm831_vm2, %v6574_v46, %v1638_v24  ;;  %v5063_v50 = vpack.c.bf16 %v1853_v41, %v1851_v39  ;;  %v2116_v39 = vld [vmem:[#allocation6 + $0x250] sm:$0xff]  ;;  %v2119_v41 = vld [vmem:[#allocation6 + $0x268] sm:$0xff] }
 0x3fa   : > { %5044 = vmatprep.subr.bf16.mxu1 %v5043_v36  ;;  %v1848_v36 = vld [vmem:[#allocation6 + $0xb0] sm:$0xff]  ;;  %v5069_v7 = vpack.c.bf16 %v1856_v3, %v1854_v2 }
 0x3fc   : > { %v1650_v54 = vpop.permute.xlu0 %1649  ;;  %v1688_v25 = vpop.permute.xlu1 %1687 }
 0x3fd   : > { %5046 = vmatpush1.bf16.msra.mxu1 %v5045_v48  ;;  %v1740_v13 = vsel %vm1737_vm11, %v1735_v9, %v1688_v25  ;;  %v1727_v31 = vsel %vm1723_vm9, %v1722_v28, %v1650_v54  ;;  %v1857_v54 = vld [vmem:[#allocation6 + $0xf8] sm:$0xff] }
 0x3fe   : > { %5048 = vmatprep.subr.bf16.mxu1 %v5047_v49  ;;  %v5061_v49 = vpack.c.bf16 %v1848_v36, %v1846_v34  ;;  %v1788_v34 = vand.u32 7, %v6387_v1 }
 0x400   : > { %v1662_v55 = vpop.permute.xlu0 %1661  ;;  %v1700_v6 = vpop.permute.xlu1 %1699  ;;  %vm4611_vm5 = vcmp.ne.s32.totalorder %v1788_v34, 0 }
 0x401   : > { %5050 = vmatpush1.bf16.msra.mxu1 %v5049_v60  ;;  %v1745_v17 = vsel %vm1742_vm12, %v1740_v13, %v1700_v6  ;;  %v1732_v37 = vsel %vm1728_vm10, %v1727_v31, %v1662_v55  ;;  %v5065_v60 = vpack.c.bf16 %v1852_v52, %v1850_v51  ;;  %v2108_v13 = vld [vmem:[#allocation6 + $0x210] sm:$0xff]  ;;  %v2115_v31 = vld [vmem:[#allocation6 + $0x248] sm:$0xff]  ;;  %vm4615_vm10 = vcmp.ne.s32.totalorder %v1788_v34, 7 }
 0x402   : > { %5052 = vmatprep.subr.bf16.mxu1 %v5051_v63  ;;  %v5067_v63 = vpack.c.bf16 %v1857_v54, %v1855_v20  ;;  %v2124_v20 = vld [vmem:[#allocation6 + $0x290] sm:$0xff]  ;;  %v2127_v54 = vld [vmem:[#allocation6 + $0x2a8] sm:$0xff] }
 0x404   : > { %v1678_v22 = vpop.permute.xlu0 %1677  ;;  %v1712_v16 = vpop.permute.xlu1 %1711 }
 0x405   : > { %v1750_v29 = vsel %vm1747_vm14, %v1745_v17, %v1712_v16  ;;  %5054 = vmatpush1.bf16.msra.mxu1 %v5053_v8  ;;  %v1736_v44 = vsel %vm1376_vm13, %v1732_v37, %v1678_v22  ;;  %v5071_v8 = vpack.c.bf16 %v2109_v5, %v2107_v4  ;;  %v2113_v17 = vld [vmem:[#allocation6 + $0x238] sm:$0xff]  ;;  %v5073_v22 = vpack.c.bf16 %v2108_v13, %v2106_v11  ;;  %v2114_v37 = vld [vmem:[#allocation6 + $0x240] sm:$0xff]  ;;  %v2132_v5 = vld [vmem:[#allocation6 + $0x2d0] sm:$0xff] }
 0x406   : > { %v1759_v32 = vrot.slane %v1750_v29, 7  ;;  %5056 = vmatprep.subr.bf16.mxu1 %v5055_v38  ;;  %v1781_v16 = vand.u32 7, %v6414_v14  ;;  %v5075_v28 = vpack.c.bf16 %v2113_v17, %v2111_v61  ;;  %v2110_v29 = vld [vmem:[#allocation6 + $0x220] sm:$0xff]  ;;  %v2136_v11 = vld [vmem:[#allocation6 + $0x2f0] sm:$0xff] }
 0x407   : > { %v2130_v4 = vld [vmem:[#allocation6 + $0x2c0] sm:$0xff] }
 0x408   : > { %v6645_v46 = vsel %vm654_vm0, %v1757_v27, %v1759_v32  ;;  %v1690_v21 = vpop.permute.xlu1 %1689  ;;  %v1702_v24 = vpop.permute.xlu0 %1701  ;;  %vm4610_vm4 = vcmp.ne.s32.totalorder %v1781_v16, 0  ;;  %vm4614_vm8 = vcmp.ne.s32.totalorder %v1781_v16, 7 }
 0x409   : > { %v1741_v47 = vsel %vm1737_vm11, %v1736_v44, %v1690_v21  ;;  %v1896_v48 = vrot.slane %v6645_v46, 1  ;;  %5058 = vmatpush1.bf16.msra.mxu1 %v5057_v30  ;;  %v2112_v30 = vld [vmem:[#allocation6 + $0x230] sm:$0xff]  ;;  %v2121_v44 = vld [vmem:[#allocation6 + $0x278] sm:$0xff]  ;;  %v1795_v21 = vand.u32 7, %v6427_v19 }
 0x40a   : > { %5060 = vmatprep.subr.bf16.mxu1 %v5059_v33  ;;  %v1746_v27 = vsel %vm1742_vm12, %v1741_v47, %v1702_v24  ;;  %v5077_v33 = vpack.c.bf16 %v2112_v30, %v2110_v29  ;;  %v5083_v24 = vpack.c.bf16 %v2121_v44, %v2119_v41  ;;  %v2118_v47 = vld [vmem:[#allocation6 + $0x260] sm:$0xff] }
 0x40b   : > { %v1897_v53 = vsel %vm813_vm1, %v1894_v18, %v1896_v48  ;;  %vm4612_vm6 = vcmp.ne.s32.totalorder %v1795_v21, 0  ;;  %vm4616_vm11 = vcmp.ne.s32.totalorder %v1795_v21, 7 }
 0x40c   : > { %1977 = vmatmul.mubr.f32.gmra.mrb[18].mxu1 %v1897_v53  ;;  %v1714_v25 = vpop.permute.xlu1 %1713  ;;  %v2122_v53 = vld [vmem:[#allocation6 + $0x280] sm:$0xff] }
 0x40d   : > { %v1751_v57 = vsel %vm1747_vm14, %v1746_v27, %v1714_v25  ;;  %5062 = vmatpush1.bf16.msra.mxu1 %v5061_v49  ;;  %1982 = vmatprep.mubr.f32.mxu1 %v5958_v0  ;;  %v2123_v49 = vld [vmem:[#allocation6 + $0x288] sm:$0xff]  ;;  %v2129_v27 = vld [vmem:[#allocation6 + $0x2b8] sm:$0xff]  ;;  %v5089_v19 = vpack.c.bf16 %v2124_v20, %v2122_v53 }
 0x40e   : > { %v1761_v62 = vrot.slane %v1751_v57, 7  ;;  %5064 = vmatprep.subr.bf16.mxu1 %v5063_v50  ;;  %v2125_v50 = vld [vmem:[#allocation6 + $0x298] sm:$0xff]  ;;  %v5091_v25 = vpack.c.bf16 %v2129_v27, %v2127_v54  ;;  %v2126_v57 = vld [vmem:[#allocation6 + $0x2a0] sm:$0xff] }
 0x40f   : > { %v5087_v52 = vpack.c.bf16 %v2125_v50, %v2123_v49 }
 0x410   : > { %v6656_v18 = vsel %vm654_vm0, %v1759_v32, %v1761_v62  ;;  %v6659_v55 = vsel %vm654_vm0, %v1761_v62, 0.0  ;;  %v2117_v32 = vld [vmem:[#allocation6 + $0x258] sm:$0xff]  ;;  %v2131_v62 = vld [vmem:[#allocation6 + $0x2c8] sm:$0xff] }
 0x411   : > { %v1898_v6 = vrot.slane %v6656_v18, 1  ;;  %5066 = vmatpush1.bf16.msra.mxu1 %v5065_v60  ;;  %v1900_v9 = vrot.slane %v6659_v55, 1  ;;  %v5079_v36 = vpack.c.bf16 %v2117_v32, %v2115_v31  ;;  %v2128_v60 = vld [vmem:[#allocation6 + $0x2b0] sm:$0xff]  ;;  %v2093_v17 = vrot.slane %v6656_v18, 2 }
 0x412   : > { %5068 = vmatprep.subr.bf16.mxu1 %v5067_v63  ;;  %v2133_v63 = vld [vmem:[#allocation6 + $0x2d8] sm:$0xff]  ;;  %v5093_v2 = vpack.c.bf16 %v2128_v60, %v2126_v57 }
 0x413   : > { %v1899_v38 = vsel %vm813_vm1, %v1896_v48, %v1898_v6  ;;  %v1901_v15 = vsel %vm813_vm1, %v1898_v6, %v1900_v9  ;;  %v2120_v48 = vld [vmem:[#allocation6 + $0x270] sm:$0xff]  ;;  %v5095_v3 = vpack.c.bf16 %v2133_v63, %v2131_v62  ;;  %v2135_v6 = vld [vmem:[#allocation6 + $0x2e8] sm:$0xff] }
 0x414   : > { %1983 = vmatmul.mubr.f32.gmra.mrb[20].mxu1 %v1899_v38  ;;  %v5085_v51 = vpack.c.bf16 %v2120_v48, %v2118_v47  ;;  %v2134_v38 = vld [vmem:[#allocation6 + $0x2e0] sm:$0xff] }
 0x415   : > { %1988 = vmatprep.mubr.f32.mxu1 %v5958_v0  ;;  %5070 = vmatpush1.bf16.msra.mxu1 %v5069_v7  ;;  %v2137_v7 = vld [vmem:[#allocation6 + $0x2f8] sm:$0xff]  ;;  %v5101_v13 = vpack.c.bf16 %v2136_v11, %v2134_v38  ;;  %v2536_v11 = vld [vmem:[#allocation7 + $0xa0] sm:$0xff] }
 0x416   : > { %5072 = vmatprep.subr.bf16.mxu1 %v5071_v8  ;;  %v5097_v8 = vpack.c.bf16 %v2132_v5, %v2130_v4  ;;  %v5099_v9 = vpack.c.bf16 %v2137_v7, %v2135_v6  ;;  %v2533_v4 = vld [vmem:[#allocation7 + $0x88] sm:$0xff]  ;;  %v2534_v5 = vld [vmem:[#allocation7 + $0x90] sm:$0xff] }
 0x418   : > { %1989 = vmatmul.mubr.f32.gmra.mrb[22].mxu1 %v1901_v15  ;;  %v2091_v15 = vrot.slane %v6645_v46, 2 }
 0x419   : > { %2059 = vmatprep.mubr.f32.mxu1 %v5958_v0 }
 0x41a   : > { %v2092_v61 = vsel %vm1106_vm3, %v2089_v35, %v2091_v15  ;;  %v2235_v35 = vld [vmem:[%s7598_s4] sm:$0x3] }
 0x41b   : > { %v2244_v1 = vrot.slane %v2235_v35, %v6468_v42 }
 0x41c   : > { %4570 = vmatmul.mubr.msk.f32.vlgmr.msra.gmra.mrb[16].mxu1 %vm4609_vm15, %v6608_v26  ;;  %v5081_v26 = vpack.c.bf16 %v2116_v39, %v2114_v37  ;;  %vm5967_vm15 = vmmov 0  }
 0x41d   : > { %5074 = vmatpush1.bf16.msra.mxu1 %v5073_v22  ;;  %2065 = vmatprep.mubr.f32.mxu1 %v5958_v0 }
 0x41e   : > { %5076 = vmatprep.subr.bf16.mxu1 %v5075_v28 }
 0x420   : > { %4572 = vmatmul.mubr.msk.f32.gmra.mrb[18].mxu1 %vm4610_vm4, %v6614_v12  ;;  %vm4385_vm4 = vcmask 122976  }
 0x421   : > { %5078 = vmatpush1.bf16.msra.mxu1 %v5077_v33  ;;  %2071 = vmatprep.mubr.f32.mxu1 %v5958_v0 }
 0x422   : > { %5080 = vmatprep.subr.bf16.mxu1 %v5079_v36 }
 0x424   : > { %4574 = vmatmul.mubr.msk.f32.gmra.mrb[20].mxu1 %vm4611_vm5, %v6645_v46  ;;  %v2095_v46 = vrot.slane %v6659_v55, 2  ;;  %vm4338_vm5 = vcmask 24576  }
 0x425   : > { %5082 = vmatpush1.bf16.msra.mxu1 %v5081_v26  ;;  %2077 = vmatprep.mubr.f32.mxu1 %v5958_v0 }
 0x426   : > { %5084 = vmatprep.subr.bf16.mxu1 %v5083_v24  ;;  %v2096_v12 = vsel %vm1106_vm3, %v2093_v17, %v2095_v46 }
 0x428   : > { %4576 = vmatmul.mubr.msk.f32.gmra.mrb[22].mxu1 %vm4612_vm6, %v6656_v18  ;;  %v2240_v18 = vrot.slane %v2235_v35, %v6462_v40  ;;  %vm4402_vm6 = vcmask 131200  }
 0x429   : > { %5086 = vmatpush1.bf16.msra.mxu1 %v5085_v51  ;;  %2202 = vmatprep.mubr.f32.mxu1 %v5958_v0 }
 0x42a   : > { %5088 = vmatprep.subr.bf16.mxu1 %v5087_v52 }
 0x42d   : > { %5090 = vmatpush1.bf16.msra.mxu1 %v5089_v19 }
 0x42e   : > { %5092 = vmatprep.subr.bf16.mxu1 %v5091_v25 }
 0x431   : > { %5094 = vmatpush1.bf16.msra.mxu1 %v5093_v2 }
 0x432   : > { %5096 = vmatprep.subr.bf16.mxu1 %v5095_v3  ;;  %v2532_v3 = vld [vmem:[#allocation7 + $0x80] sm:$0xff] }
 0x435   : > { %5098 = vmatpush1.bf16.msra.mxu1 %v5097_v8  ;;  %v5119_v8 = vpack.c.bf16 %v2533_v4, %v2532_v3  ;;  %v2518_v3 = vld [vmem:[#allocation7 + $0x18] sm:$0xff] }
 0x436   : > { %5100 = vmatprep.subr.bf16.mxu1 %v5099_v9  ;;  %v2535_v9 = vld [vmem:[#allocation7 + $0x98] sm:$0xff] }
 0x439   : > { %5102 = vmatpush1.bf16.msra.mxu1 %v5101_v13  ;;  %v2537_v13 = vld [vmem:[#allocation7 + $0xa8] sm:$0xff] }
 0x43c   : > { %4578 = vmatmul.mubr.msk.f32.vlgmr.msra.gmra.mrb[16].mxu1 %vm4613_vm7, %v6626_v23  ;;  %v2094_v23 = vsel %vm1106_vm3, %v2091_v15, %v2093_v17  ;;  %v5127_v15 = vpack.c.bf16 %v2537_v13, %v2536_v11  ;;  %v2539_v17 = vld [vmem:[#allocation7 + $0xb8] sm:$0xff]  ;;  %v2521_v13 = vld [vmem:[#allocation7 + $0x30] sm:$0xff] }
 0x43d   : > { %2208 = vmatprep.mubr.f32.mxu1 %v5958_v0 }
 0x440   : > { %4580 = vmatmul.mubr.msk.f32.gmra.mrb[18].mxu1 %vm4614_vm8, %v2092_v61  ;;  %v2538_v61 = vld [vmem:[#allocation7 + $0xb0] sm:$0xff] }
 0x441   : > { %2214 = vmatprep.mubr.f32.mxu1 %v5958_v0  ;;  %v5131_v46 = vpack.c.bf16 %v2539_v17, %v2538_v61  ;;  %v2523_v17 = vld [vmem:[#allocation7 + $0x40] sm:$0xff] }
 0x444   : > { %4582 = vmatmul.mubr.msk.f32.gmra.mrb[20].mxu1 %vm4615_vm10, %v2094_v23  ;;  %v2540_v23 = vld [vmem:[#allocation7 + $0xc0] sm:$0xff] }
 0x445   : > { %2220 = vmatprep.mubr.f32.mxu1 %v5958_v0 }
 0x448   : > { %4584 = vmatmul.mubr.msk.f32.gmra.mrb[22].mxu1 %vm4616_vm11, %v2096_v12  ;;  %v2541_v12 = vld [vmem:[#allocation7 + $0xc8] sm:$0xff] }
 0x449   : > { %v5135_v35 = vpack.c.bf16 %v2541_v12, %v2540_v23  ;;  %v2525_v12 = vld [vmem:[#allocation7 + $0x50] sm:$0xff]  ;;  %4913 = vmatprep.mubr.msk.f32.mxu1 %vm5967_vm15, %v5958_v0 }
 0x50f   : > { %v2204_v10 = vpop.f32.mrb[16].mxu1 }
 0x510   : > { %v2206_v22 = vpop.f32.mrb[17].mxu1  ;;  %v2247_v55 = vadd.f32 %v2240_v18, %v2204_v10  ;;  %v2543_v10 = vld [vmem:[#allocation7 + $0xd8] sm:$0xff] }
 0x511   : > { %v2248_v16 = vadd.f32 %v2244_v1, %v2206_v22  ;;  %v2544_v22 = vld [vmem:[#allocation7 + $0xe0] sm:$0xff] }
 0x512   : > { %v2255_v32 = vmax.f32 %v2247_v55, 0.0  ;;  %v2545_v55 = vld [vmem:[#allocation7 + $0xe8] sm:$0xff] }
 0x513   : > { %v2210_v28 = vpop.f32.mrb[18].mxu1  ;;  %v2256_v34 = vmax.f32 %v2248_v16, 0.0  ;;  %v5143_v16 = vpack.c.bf16 %v2545_v55, %v2544_v22  ;;  %v2529_v55 = vld [vmem:[#allocation7 + $0x70] sm:$0xff] }
 0x514   : > { %v2249_v29 = vadd.f32 %v2240_v18, %v2210_v28  ;;  %v2212_v30 = vpop.f32.mrb[19].mxu1 }
 0x515   : > { %v2250_v31 = vadd.f32 %v2244_v1, %v2212_v30  ;;  %v2546_v30 = vld [vmem:[#allocation7 + $0xf0] sm:$0xff] }
 0x516   : > { %v2257_v33 = vmax.f32 %v2249_v29, 0.0 }
 0x517   : > { %v2258_v36 = vmax.f32 %v2250_v31, 0.0  ;;  %v2216_v37 = vpop.f32.mrb[20].mxu1  ;;  %v2547_v31 = vld [vmem:[#allocation7 + $0xf8] sm:$0xff] }
 0x518   : > { %v5105_v39 = vpack.c.bf16 %v2257_v33, %v2255_v32  ;;  %v2218_v41 = vpop.f32.mrb[21].mxu1  ;;  %v2251_v26 = vadd.f32 %v2240_v18, %v2216_v37  ;;  %v5147_v32 = vpack.c.bf16 %v2547_v31, %v2546_v30  ;;  %v2720_v30 = vld [vmem:[#allocation7 + $0x108] sm:$0xff]  ;;  %v2498_v31 = vand.u32 3, %v6414_v14 }
 0x519   : > { %v5103_v44 = vpack.c.bf16 %v2258_v36, %v2256_v34  ;;  %v2252_v21 = vadd.f32 %v2244_v1, %v2218_v41  ;;  %v2516_v41 = vld [vmem:[#allocation7 + $0x8] sm:$0xff] }
 0x51a   : > { %v2259_v50 = vmax.f32 %v2251_v26, 0.0  ;;  %vm4620_vm14 = vcmp.ne.s32.totalorder %v2498_v31, 3 }
 0x51b   : > { %v2222_v24 = vpop.f32.mrb[22].mxu1  ;;  %5104 = vmatprep.subr.bf16.mxu0 %v5103_v44  ;;  %v2260_v52 = vmax.f32 %v2252_v21, 0.0 }
 0x51c   : > { %v2253_v47 = vadd.f32 %v2240_v18, %v2222_v24  ;;  %v2224_v48 = vpop.f32.mrb[23].mxu1  ;;  %5106 = vmatpush1.bf16.msra.mxu0 %v5105_v39  ;;  %v2542_v18 = vld [vmem:[#allocation7 + $0xd0] sm:$0xff] }
 0x51d   : > { %v2254_v49 = vadd.f32 %v2244_v1, %v2224_v48  ;;  %v5139_v1 = vpack.c.bf16 %v2543_v10, %v2542_v18  ;;  %v2527_v10 = vld [vmem:[#allocation7 + $0x60] sm:$0xff] }
 0x51e   : > { %v2261_v51 = vmax.f32 %v2253_v47, 0.0 }
 0x51f   : > { %v2262_v53 = vmax.f32 %v2254_v49, 0.0 }
 0x520   : > { %v5109_v20 = vpack.c.bf16 %v2261_v51, %v2259_v50 }
 0x521   : > { %v5107_v54 = vpack.c.bf16 %v2262_v53, %v2260_v52 }
 0x523   : > { %5108 = vmatprep.subr.bf16.mxu0 %v5107_v54 }
 0x524   : > { %5110 = vmatpush1.bf16.msra.mxu0 %v5109_v20 }
 0x525   : > { %5112 = vmatprep.subr.bf16.mxu0 %v5103_v44 }
 0x527   : > { %4585 = vmatmul.mubr.msk.f32.vlgmr.msra.gmra.mrb[16].mxu0 %vm1723_vm9, %v6476_v43 }
 0x528   : > { %5114 = vmatpush1.bf16.msra.mxu0 %v5105_v39  ;;  %2337 = vmatprep.mubr.f32.mxu0 %v5958_v0  ;;  %v2515_v39 = vld [vmem:[#allocation7] sm:$0xff] }
 0x529   : > { %5116 = vmatprep.subr.bf16.mxu0 %v5107_v54  ;;  %v5151_v44 = vpack.c.bf16 %v2516_v41, %v2515_v39  ;;  %v2723_v41 = vld [vmem:[#allocation7 + $0x120] sm:$0xff] }
 0x52b   : > { %4586 = vmatmul.mubr.msk.f32.gmra.mrb[18].mxu0 %vm1723_vm9, %v6483_v45 }
 0x52c   : > { %5118 = vmatpush1.bf16.msra.mxu0 %v5109_v20  ;;  %2412 = vmatprep.mubr.f32.mxu0 %v5958_v0 }
 0x52d   : > { %5120 = vmatprep.subr.bf16.mxu0 %v5119_v8 }
 0x52f   : > { %4587 = vmatmul.mubr.msk.f32.vlgmr.msra.gmra.mrb[20].mxu0 %vm1723_vm9, %v6496_v56 }
 0x530   : > { %2418 = vmatprep.mubr.f32.mxu0 %v5958_v0  ;;  %5122 = vmatpush3.bf16.msra.mxu0 %v5119_v8 }
 0x533   : > { %4588 = vmatmul.mubr.msk.f32.gmra.mrb[22].mxu0 %vm1723_vm9, %v6502_v58  ;;  %v5123_v58 = vpack.c.bf16 %v2535_v9, %v2534_v5 }
 0x535   : > { %5124 = vmatprep.subr.bf16.mxu0 %v5123_v58 }
 0x536   : > { %5126 = vmatpush3.bf16.msra.mxu0 %v5123_v58  ;;  %v2520_v58 = vld [vmem:[#allocation7 + $0x28] sm:$0xff] }
 0x537   : > { %5128 = vmatprep.subr.bf16.mxu0 %v5127_v15 }
 0x53a   : > { %5130 = vmatpush3.bf16.msra.mxu0 %v5127_v15  ;;  %v2522_v15 = vld [vmem:[#allocation7 + $0x38] sm:$0xff] }
 0x53b   : > { %5132 = vmatprep.subr.bf16.mxu0 %v5131_v46  ;;  %v5163_v61 = vpack.c.bf16 %v2522_v15, %v2521_v13 }
 0x53e   : > { %5134 = vmatpush3.bf16.msra.mxu0 %v5131_v46  ;;  %v2524_v46 = vld [vmem:[#allocation7 + $0x48] sm:$0xff] }
 0x53f   : > { %5136 = vmatprep.subr.bf16.mxu0 %v5135_v35  ;;  %v5167_v23 = vpack.c.bf16 %v2524_v46, %v2523_v17 }
 0x542   : > { %5138 = vmatpush3.bf16.msra.mxu0 %v5135_v35  ;;  %v2526_v35 = vld [vmem:[#allocation7 + $0x58] sm:$0xff] }
 0x543   : > { %5140 = vmatprep.subr.bf16.mxu0 %v5139_v1  ;;  %v5171_v18 = vpack.c.bf16 %v2526_v35, %v2525_v12  ;;  %v3133_v12 = vld [vmem:[#allocation9 + $0x28] sm:$0xff]  ;;  %v3128_v35 = vld [vmem:[#allocation9] sm:$0xff] }
 0x546   : > { %5142 = vmatpush3.bf16.msra.mxu0 %v5139_v1  ;;  %v2528_v1 = vld [vmem:[#allocation7 + $0x68] sm:$0xff] }
 0x547   : > { %5144 = vmatprep.subr.bf16.mxu0 %v5143_v16  ;;  %v5175_v22 = vpack.c.bf16 %v2528_v1, %v2527_v10  ;;  %v3132_v10 = vld [vmem:[#allocation9 + $0x20] sm:$0xff]  ;;  %v3137_v1 = vld [vmem:[#allocation9 + $0x48] sm:$0xff] }
 0x54a   : > { %5146 = vmatpush3.bf16.msra.mxu0 %v5143_v16  ;;  %v2530_v16 = vld [vmem:[#allocation7 + $0x78] sm:$0xff] }
 0x54b   : > { %5148 = vmatprep.subr.bf16.mxu0 %v5147_v32 }
 0x54e   : > { %5150 = vmatpush3.bf16.msra.mxu0 %v5147_v32 }
 0x54f   : > { %5152 = vmatprep.subr.bf16.mxu0 %v5151_v44 }
 0x5fa   : > { %v2333_v27 = vpop.f32.mrb[16].mxu0 }
 0x5fb   : > { %v2335_v19 = vpop.f32.mrb[17].mxu0 }
 0x5fe   : > { %v2339_v25 = vpop.f32.mrb[18].mxu0 }
 0x5ff   : > { %v2341_v57 = vpop.f32.mrb[19].mxu0 }
 0x602   : > { %v2414_v60 = vpop.f32.mrb[20].mxu0 }
 0x603   : > { %v2425_v62 = vmax.f32 %v2333_v27, %v2414_v60  ;;  %v2416_v63 = vpop.f32.mrb[21].mxu0 }
 0x604   : > { %v2426_v2 = vmax.f32 %v2335_v19, %v2416_v63 }
 0x605   : > { %2431 = vrot.lane.b32.xlu0 %v2425_v62, %s5960_s15 }
 0x606   : > { %v2420_v45 = vpop.f32.mrb[22].mxu0 }
 0x607   : > { %v2427_v6 = vmax.f32 %v2339_v25, %v2420_v45  ;;  %v2422_v7 = vpop.f32.mrb[23].mxu0  ;;  %v2517_v45 = vld [vmem:[#allocation7 + $0x10] sm:$0xff] }
 0x608   : > { %v2428_v38 = vmax.f32 %v2341_v57, %v2422_v7  ;;  %v5155_v9 = vpack.c.bf16 %v2518_v3, %v2517_v45  ;;  %v4597_v45 = vld [vmem:[%s7600_s6] ss:$0 sm:$0xff] }
 0x609   : > { %2441 = vrot.lane.b32.xlu0 %v2426_v2, %s5960_s15  ;;  %2433 = vrot.lane.b32.xlu1 %v2427_v6, %s5960_s15 }
 0x60d   : > { %2443 = vrot.lane.b32.xlu1 %v2428_v38, %s5960_s15 }
 0x677   : > { %v2432_v28 = vpop.permute.xlu0 %2431 }
 0x678   : > { %v2437_v29 = vmax.f32 %v2425_v62, %v2432_v28  ;;  %v2491_v62 = vand.u32 3, %v6376_v59  ;;  %v5179_v28 = vpack.c.bf16 %v2530_v16, %v2529_v55  ;;  %v5223_v55 = vpack.c.bf16 %v3132_v10, %v3128_v35  ;;  %v3404_v35 = vld [vmem:[%s7603_s9 + $0x38] sm:$0xff] }
 0x67a   : > { %2451 = vrot.lane.b32.xlu0 %v2437_v29, %s5960_s15 }
 0x67b   : > { %v2442_v33 = vpop.permute.xlu0 %2441  ;;  %v2434_v34 = vpop.permute.xlu1 %2433 }
 0x67c   : > { %v2447_v36 = vmax.f32 %v2426_v2, %v2442_v33  ;;  %v2438_v37 = vmax.f32 %v2427_v6, %v2434_v34  ;;  %v2721_v33 = vld [vmem:[#allocation7 + $0x110] sm:$0xff]  ;;  %v2722_v34 = vld [vmem:[#allocation7 + $0x118] sm:$0xff] }
 0x67d   : > { %v5187_v39 = vpack.c.bf16 %v2722_v34, %v2721_v33  ;;  %v3148_v33 = vld [vmem:[#allocation9 + $0xa0] sm:$0xff]  ;;  %v3153_v34 = vld [vmem:[#allocation9 + $0xc8] sm:$0xff] }
 0x67e   : > { %2459 = vrot.lane.b32.xlu0 %v2447_v36, %s5962_s27  ;;  %2453 = vrot.lane.b32.xlu1 %v2438_v37, %s5960_s15 }
 0x67f   : > { %v2444_v26 = vpop.permute.xlu1 %2443 }
 0x680   : > { %v2448_v21 = vmax.f32 %v2428_v38, %v2444_v26  ;;  %v2519_v38 = vld [vmem:[#allocation7 + $0x20] sm:$0xff] }
 0x681   : > { %v5159_v11 = vpack.c.bf16 %v2520_v58, %v2519_v38 }
 0x682   : > { %2465 = vrot.lane.b32.xlu0 %v2447_v36, %s5964_s29  ;;  %2461 = vrot.lane.b32.xlu1 %v2448_v21, %s5962_s27 }
 0x686   : > { %2467 = vrot.lane.b32.xlu1 %v2448_v21, %s5964_s29  ;;  %v2725_v21 = vld [vmem:[#allocation7 + $0x130] sm:$0xff] }
 0x6ec   : > { %v2452_v24 = vpop.permute.xlu0 %2451 }
 0x6ed   : > { %v2471_v49 = vsel %vm1723_vm9, %v2437_v29, %v2452_v24  ;;  %v2719_v29 = vld [vmem:[#allocation7 + $0x100] sm:$0xff]  ;;  %v2726_v24 = vld [vmem:[#allocation7 + $0x138] sm:$0xff] }
 0x6ee   : > { %v5183_v32 = vpack.c.bf16 %v2720_v30, %v2719_v29  ;;  %v3145_v29 = vld [vmem:[#allocation9 + $0x88] sm:$0xff] }
 0x6ef   : > { %v3149_v30 = vld [vmem:[#allocation9 + $0xa8] sm:$0xff] }
 0x6f0   : > { %v2460_v47 = vpop.permute.xlu0 %2459  ;;  %v2454_v48 = vpop.permute.xlu1 %2453 }
 0x6f1   : > { %v2473_v50 = vsel %vm1376_vm13, %v2471_v49, %v2460_v47  ;;  %v2472_v54 = vsel %vm1723_vm9, %v2438_v37, %v2454_v48  ;;  %v5195_v47 = vpack.c.bf16 %v2726_v24, %v2725_v21  ;;  %v2727_v48 = vld [vmem:[#allocation7 + $0x140] sm:$0xff]  ;;  %v2728_v49 = vld [vmem:[#allocation7 + $0x148] sm:$0xff] }
 0x6f4   : > { %v2466_v51 = vpop.permute.xlu0 %2465  ;;  %v2462_v52 = vpop.permute.xlu1 %2461 }
 0x6f5   : > { %v2475_v53 = vsel %vm1742_vm12, %v2473_v50, %v2466_v51  ;;  %v2474_v27 = vsel %vm1376_vm13, %v2472_v54, %v2462_v52  ;;  %v5199_v50 = vpack.c.bf16 %v2728_v49, %v2727_v48  ;;  %v2729_v51 = vld [vmem:[#allocation7 + $0x150] sm:$0xff]  ;;  %v2730_v52 = vld [vmem:[#allocation7 + $0x158] sm:$0xff]  ;;  %v2732_v54 = vld [vmem:[#allocation7 + $0x168] sm:$0xff] }
 0x6f6   : > { %v2479_v20 = vrot.slane %v2475_v53, 7  ;;  %v5203_v53 = vpack.c.bf16 %v2730_v52, %v2729_v51  ;;  %v3164_v48 = vld [vmem:[#allocation9 + $0x120] sm:$0xff]  ;;  %v3169_v49 = vld [vmem:[#allocation9 + $0x148] sm:$0xff] }
 0x6f8   : > { %v2468_v19 = vpop.permute.xlu1 %2467  ;;  %v6736_v57 = vsel %vm654_vm0, 0.0, %v2479_v20 }
 0x6f9   : > { %v2476_v25 = vsel %vm1742_vm12, %v2474_v27, %v2468_v19  ;;  %v2550_v5 = vrot.slane %v6736_v57, 1  ;;  %vm4617_vm12 = vcmp.ne.s32.totalorder %v2491_v62, 0  ;;  %v2709_v37 = vrot.slane %v6736_v57, 2  ;;  %v2733_v19 = vld [vmem:[#allocation7 + $0x170] sm:$0xff] }
 0x6fa   : > { %v2480_v60 = vrot.slane %v2476_v25, 7  ;;  %v2734_v25 = vld [vmem:[#allocation7 + $0x178] sm:$0xff] }
 0x6fc   : > { %v6740_v63 = vsel %vm654_vm0, %v2479_v20, %v2480_v60  ;;  %v6743_v2 = vsel %vm654_vm0, %v2480_v60, 0.0  ;;  %vm4618_vm0 = vcmp.ne.s32.totalorder %v2498_v31, 0  ;;  %v2731_v20 = vld [vmem:[#allocation7 + $0x160] sm:$0xff] }
 0x6fd   : > { %v2553_v4 = vrot.slane %v6743_v2, 1  ;;  %v2551_v6 = vrot.slane %v6740_v63, 1  ;;  %v2710_v36 = vrot.slane %v6740_v63, 2  ;;  %v5207_v27 = vpack.c.bf16 %v2732_v54, %v2731_v20  ;;  %v3172_v20 = vld [vmem:[#allocation9 + $0x160] sm:$0xff]  ;;  %v3177_v54 = vld [vmem:[#allocation9 + $0x188] sm:$0xff] }
 0x6fe   : > { %v2712_v60 = vrot.slane %v6743_v2, 2 }
 0x6ff   : > { %v2552_v7 = vsel %vm813_vm1, %v2550_v5, %v2551_v6  ;;  %v2554_v8 = vsel %vm813_vm1, %v2551_v6, %v2553_v4  ;;  %vm4619_vm1 = vcmp.ne.s32.totalorder %v2491_v62, 3  ;;  %v2711_v26 = vsel %vm1106_vm3, %v2709_v37, %v2710_v36 }
 0x700   : > { %4836 = vmatprep.mubr.f32.mxu0 %v2552_v7  ;;  %v2713_v62 = vsel %vm1106_vm3, %v2710_v36, %v2712_v60  ;;  %vm2978_vm3 = vcmask 64512   ;;  %v3157_v36 = vld [vmem:[#allocation9 + $0xe8] sm:$0xff]  ;;  %v3180_v60 = vld [vmem:[#allocation9 + $0x1a0] sm:$0xff] }
 0x701   : > { %4837 = vmatmul.mubr.f32.vlgmr.msra.gmra.mrb[24].mxu0 %v2554_v8 }
 0x702   : > { %5154 = vmatpush3.bf16.msra.mxu0 %v5151_v44  ;;  %4871 = vmatprep.mubr.msk.f32.mxu0 %vm4617_vm12, %v6736_v57  ;;  %v2724_v44 = vld [vmem:[#allocation7 + $0x128] sm:$0xff]  ;;  %v5211_v57 = vpack.c.bf16 %v2734_v25, %v2733_v19 }
 0x703   : > { %5156 = vmatprep.subr.bf16.mxu0 %v5155_v9  ;;  %v5191_v14 = vpack.c.bf16 %v2724_v44, %v2723_v41  ;;  %v3152_v41 = vld [vmem:[#allocation9 + $0xc0] sm:$0xff] }
 0x704   : > { %v3156_v44 = vld [vmem:[#allocation9 + $0xe0] sm:$0xff] }
 0x705   : > { %v5235_v21 = vpack.c.bf16 %v3156_v44, %v3152_v41 }
 0x706   : > { %5158 = vmatpush3.bf16.msra.mxu0 %v5155_v9 }
 0x707   : > { %5160 = vmatprep.subr.bf16.mxu0 %v5159_v11 }
 0x70a   : > { %5162 = vmatpush3.bf16.msra.mxu0 %v5159_v11 }
 0x70b   : > { %5164 = vmatprep.subr.bf16.mxu0 %v5163_v61 }
 0x70e   : > { %5166 = vmatpush3.bf16.msra.mxu0 %v5163_v61 }
 0x70f   : > { %5168 = vmatprep.subr.bf16.mxu0 %v5167_v23 }
 0x712   : > { %5170 = vmatpush3.bf16.msra.mxu0 %v5167_v23  ;;  %v3129_v23 = vld [vmem:[#allocation9 + $0x8] sm:$0xff] }
 0x713   : > { %5172 = vmatprep.subr.bf16.mxu0 %v5171_v18 }
 0x716   : > { %5174 = vmatpush3.bf16.msra.mxu0 %v5171_v18  ;;  %v5221_v18 = vpack.c.bf16 %v3133_v12, %v3129_v23  ;;  %v3399_v23 = vld [vmem:[%s7603_s9 + $0x10] sm:$0xff]  ;;  %v3402_v12 = vld [vmem:[%s7603_s9 + $0x28] sm:$0xff] }
 0x717   : > { %5176 = vmatprep.subr.bf16.mxu0 %v5175_v22  ;;  %v5289_v10 = vpack.c.bf16 %v3404_v35, %v3402_v12  ;;  %v3437_v12 = vld [vmem:[%s7603_s9 + $0x140] sm:$0xff]  ;;  %v3439_v35 = vld [vmem:[%s7603_s9 + $0x150] sm:$0xff] }
 0x71a   : > { %5178 = vmatpush3.bf16.msra.mxu0 %v5175_v22  ;;  %v3141_v22 = vld [vmem:[#allocation9 + $0x68] sm:$0xff] }
 0x71b   : > { %5180 = vmatprep.subr.bf16.mxu0 %v5179_v28  ;;  %v5225_v16 = vpack.c.bf16 %v3141_v22, %v3137_v1  ;;  %v3401_v1 = vld [vmem:[%s7603_s9 + $0x20] sm:$0xff]  ;;  %v3403_v22 = vld [vmem:[%s7603_s9 + $0x30] sm:$0xff] }
 0x71e   : > { %5182 = vmatpush3.bf16.msra.mxu0 %v5179_v28  ;;  %v3140_v28 = vld [vmem:[#allocation9 + $0x60] sm:$0xff] }
 0x71f   : > { %5184 = vmatprep.subr.bf16.mxu0 %v5183_v32 }
 0x721   : > { %4872 = vmatmul.mubr.msk.f32.vlgmr.msra.gmra.mrb[24].mxu0 %vm4618_vm0, %v6740_v63  ;;  %v5966_v63 = vmov 0.0|0.0  }
 0x722   : > { %5186 = vmatpush3.bf16.msra.mxu0 %v5183_v32  ;;  %4906 = vmatprep.mubr.msk.f32.mxu0 %vm4619_vm1, %v2711_v26  ;;  %v3144_v32 = vld [vmem:[#allocation9 + $0x80] sm:$0xff]  ;;  %v3161_v26 = vld [vmem:[#allocation9 + $0x108] sm:$0xff] }
 0x723   : > { %5188 = vmatprep.subr.bf16.mxu0 %v5187_v39  ;;  %5215 = vmatprep.subr.bf16.mxu1 %v5966_v63  ;;  %v5231_v37 = vpack.c.bf16 %v3148_v33, %v3144_v32 }
 0x726   : > { %5190 = vmatpush3.bf16.msra.mxu0 %v5187_v39  ;;  %v5233_v39 = vpack.c.bf16 %v3157_v36, %v3153_v34  ;;  %v3409_v34 = vld [vmem:[%s7603_s9 + $0x60] sm:$0xff]  ;;  %v3411_v36 = vld [vmem:[%s7603_s9 + $0x70] sm:$0xff] }
 0x727   : > { %5192 = vmatprep.subr.bf16.mxu0 %v5191_v14  ;;  %v5299_v41 = vpack.c.bf16 %v3411_v36, %v3409_v34  ;;  %v3146_v36 = vld [vmem:[#allocation9 + $0x90] sm:$0xff] }
 0x72a   : > { %5194 = vmatpush3.bf16.msra.mxu0 %v5191_v14  ;;  %v3165_v14 = vld [vmem:[#allocation9 + $0x128] sm:$0xff] }
 0x72b   : > { %5196 = vmatprep.subr.bf16.mxu0 %v5195_v47  ;;  %v5237_v24 = vpack.c.bf16 %v3165_v14, %v3161_v26  ;;  %v3413_v26 = vld [vmem:[%s7603_s9 + $0x80] sm:$0xff]  ;;  %v3415_v14 = vld [vmem:[%s7603_s9 + $0x90] sm:$0xff] }
 0x72e   : > { %5198 = vmatpush3.bf16.msra.mxu0 %v5195_v47  ;;  %v3160_v47 = vld [vmem:[#allocation9 + $0x100] sm:$0xff] }
 0x72f   : > { %5200 = vmatprep.subr.bf16.mxu0 %v5199_v50  ;;  %v5239_v51 = vpack.c.bf16 %v3164_v48, %v3160_v47  ;;  %v5303_v47 = vpack.c.bf16 %v3415_v14, %v3413_v26  ;;  %v3154_v14 = vld [vmem:[#allocation9 + $0xd0] sm:$0xff] }
 0x732   : > { %5202 = vmatpush3.bf16.msra.mxu0 %v5199_v50  ;;  %v3173_v50 = vld [vmem:[#allocation9 + $0x168] sm:$0xff] }
 0x733   : > { %5204 = vmatprep.subr.bf16.mxu0 %v5203_v53  ;;  %v5241_v52 = vpack.c.bf16 %v3173_v50, %v3169_v49  ;;  %v3417_v49 = vld [vmem:[%s7603_s9 + $0xa0] sm:$0xff]  ;;  %v3419_v50 = vld [vmem:[%s7603_s9 + $0xb0] sm:$0xff] }
 0x736   : > { %5206 = vmatpush3.bf16.msra.mxu0 %v5203_v53  ;;  %v3168_v53 = vld [vmem:[#allocation9 + $0x140] sm:$0xff] }
 0x737   : > { %5208 = vmatprep.subr.bf16.mxu0 %v5207_v27  ;;  %v5243_v19 = vpack.c.bf16 %v3172_v20, %v3168_v53  ;;  %v5307_v53 = vpack.c.bf16 %v3419_v50, %v3417_v49  ;;  %v3162_v49 = vld [vmem:[#allocation9 + $0x110] sm:$0xff] }
 0x738   : > { %v3166_v50 = vld [vmem:[#allocation9 + $0x130] sm:$0xff] }
 0x73a   : > { %5210 = vmatpush3.bf16.msra.mxu0 %v5207_v27  ;;  %v3181_v27 = vld [vmem:[#allocation9 + $0x1a8] sm:$0xff] }
 0x73b   : > { %5212 = vmatprep.subr.bf16.mxu0 %v5211_v57  ;;  %v5245_v25 = vpack.c.bf16 %v3181_v27, %v3177_v54  ;;  %v3421_v54 = vld [vmem:[%s7603_s9 + $0xc0] sm:$0xff]  ;;  %v3423_v27 = vld [vmem:[%s7603_s9 + $0xd0] sm:$0xff] }
 0x73e   : > { %5214 = vmatpush3.bf16.msra.mxu0 %v5211_v57  ;;  %v3176_v57 = vld [vmem:[#allocation9 + $0x180] sm:$0xff] }
 0x741   : > { %4907 = vmatmul.mubr.msk.f32.vlgmr.msra.gmra.mrb[24].mxu0 %vm4620_vm14, %v2713_v62  ;;  %v3185_v62 = vld [vmem:[#allocation9 + $0x1c8] sm:$0xff] }
 0x814   : > { %v4908_v3 = vpop.f32.mrb[24].mxu0 }
 0x815   : > { %v2820_v4 = vadd.f32 %v4908_v3, %v4597_v45  ;;  %v2801_v5 = vpop.f32.mrb[25].mxu0  ;;  %v5247_v3 = vpack.c.bf16 %v3180_v60, %v3176_v57  ;;  %v5311_v57 = vpack.c.bf16 %v3423_v27, %v3421_v54  ;;  %v3170_v54 = vld [vmem:[#allocation9 + $0x150] sm:$0xff] }
 0x816   : > { %v2819_v2 = vadd.f32 %v4597_v45, %v2801_v5  ;;  %v3189_v45 = vld [vmem:[#allocation9 + $0x1e8] sm:$0xff]  ;;  %v3184_v5 = vld [vmem:[#allocation9 + $0x1c0] sm:$0xff]  ;;  %v3174_v27 = vld [vmem:[#allocation9 + $0x170] sm:$0xff] }
 0x817   : > { %v2822_v6 = vmax.f32 %v2820_v4, 0.0  ;;  %v5249_v4 = vpack.c.bf16 %v3189_v45, %v3185_v62  ;;  %v3425_v62 = vld [vmem:[%s7603_s9 + $0xe0] sm:$0xff]  ;;  %v3427_v45 = vld [vmem:[%s7603_s9 + $0xf0] sm:$0xff] }
 0x818   : > { %v2821_v7 = vmax.f32 %v2819_v2, 0.0  ;;  %v3188_v2 = vld [vmem:[#allocation9 + $0x1e0] sm:$0xff] }
 0x81a   : > { %v5216_v8 = vpack.c.bf16 %v2822_v6, %v2821_v7  ;;  %v5251_v6 = vpack.c.bf16 %v3188_v2, %v3184_v5  ;;  %v3131_v7 = vld [vmem:[#allocation9 + $0x18] sm:$0xff]  ;;  %v5315_v5 = vpack.c.bf16 %v3427_v45, %v3425_v62  ;;  %v3178_v62 = vld [vmem:[#allocation9 + $0x190] sm:$0xff] }
 0x81b   : > { %v3182_v45 = vld [vmem:[#allocation9 + $0x1b0] sm:$0xff] }
 0x81c   : > { %5217 = vmatpush3.bf16.msra.mxu1 %v5216_v8 }
 0x81d   : > { %5218 = vmatprep.subr.bf16.mxu1 %v5966_v63 }
 0x81f   : > { %4914 = vmatmul.mubr.msk.f32.vlgmr.msra.gmra.mrb[24].mxu1 %vm831_vm2, %v6476_v43 }
 0x820   : > { %5220 = vmatpush3.bf16.msra.mxu1 %v5216_v8  ;;  %4920 = vmatprep.mubr.msk.f32.mxu1 %vm5967_vm15, %v5958_v0  ;;  %v3135_v8 = vld [vmem:[#allocation9 + $0x38] sm:$0xff] }
 0x821   : > { %4923 = vmatprep.subr.mxu1 %v5958_v0 }
 0x823   : > { %4921 = vmatmul.mubr.msk.f32.vlgmr.msra.gmra.mrb[26].mxu1 %vm831_vm2, %v6496_v56  ;;  %vm3334_vm2 = vcmask 1043456  }
 0x824   : > { %4925 = vmatprep.mubr.msk.f32.mxu1 %vm5967_vm15, %v5958_v0 }
 0x8f2   : > { %v2891_v9 = vpop.f32.mrb[24].mxu1 }
 0x8f3   : > { %v4915_v38 = vpop.f32.mrb[25].mxu1 }
 0x8f6   : > { %v2963_v58 = vpop.f32.mrb[26].mxu1 }
 0x8f7   : > { %v2967_v11 = vmax.f32 %v2891_v9, %v2963_v58  ;;  %v4922_v13 = vpop.f32.mrb[27].mxu1  ;;  %v5253_v9 = vpack.c.bf16 %v3135_v8, %v3131_v7  ;;  %v3431_v7 = vld [vmem:[%s7603_s9 + $0x110] sm:$0xff]  ;;  %v3434_v8 = vld [vmem:[%s7603_s9 + $0x128] sm:$0xff] }
 0x8f9   : > { %2969 = vrot.lane.b32.xlu0 %v2967_v11, %s5960_s15 }
 0x96b   : > { %v2970_v15 = vpop.permute.xlu0 %2969 }
 0x96c   : > { %v2972_v61 = vmax.f32 %v2967_v11, %v2970_v15  ;;  %v3398_v15 = vld [vmem:[%s7603_s9 + $0x8] sm:$0xff] }
 0x96e   : > { %2974 = vrot.lane.b32.xlu1 %v2972_v61, %s5960_s15  ;;  %s7649_s15 = sld [smem:[#allocation20_spill]] }
 0x9e0   : > { %v2975_v17 = vpop.permute.xlu1 %2974 }
 0x9e1   : > { %v2977_v46 = vsel %vm1723_vm9, %v2972_v61, %v2975_v17  ;;  %v3400_v61 = vld [vmem:[%s7603_s9 + $0x18] sm:$0xff]  ;;  %v3397_v17 = vld [vmem:[%s7603_s9] sm:$0xff] }
 0x9e2   : > { %4924 = vmatpush3.msra.mxu1 %v2977_v46 }
 0x9e3   : > { %4926 = vmatmul.mubr.msk.f32.vlgmr.msra.gmra.mrb[28].mxu1 %vm2978_vm3, %v6476_v43  ;;  %4928 = vmatprep.subr.mxu1 %v5958_v0  ;;  %v3136_v43 = vld [vmem:[#allocation9 + $0x40] sm:$0xff] }
 0x9e4   : > { %4929 = vmatpush3.msra.mxu1 %v2977_v46  ;;  %4930 = vmatprep.mubr.msk.f32.mxu1 %vm5967_vm15, %v5958_v0  ;;  %v5227_v31 = vpack.c.bf16 %v3140_v28, %v3136_v43  ;;  %v5285_v46 = vpack.c.bf16 %v3400_v61, %v3398_v15  ;;  %v5291_v43 = vpack.c.bf16 %v3403_v22, %v3401_v1  ;;  %v3435_v15 = vld [vmem:[%s7603_s9 + $0x130] sm:$0xff]  ;;  %v3438_v61 = vld [vmem:[%s7603_s9 + $0x148] sm:$0xff]  ;;  %v3139_v22 = vld [vmem:[#allocation9 + $0x58] sm:$0xff] }
 0x9e5   : > { %5222 = vmatprep.subr.bf16.mxu1 %v5221_v18  ;;  %v5287_v18 = vpack.c.bf16 %v3399_v23, %v3397_v17  ;;  %v3440_v17 = vld [vmem:[%s7603_s9 + $0x158] sm:$0xff]  ;;  %v3134_v1 = vld [vmem:[#allocation9 + $0x30] sm:$0xff] }
 0x9e6   : > { %5286 = vmatprep.subr.bf16.mxu0 %v5285_v46  ;;  %v5325_v23 = vpack.c.bf16 %v3440_v17, %v3438_v61  ;;  %v3446_v17 = vld [vmem:[%s7603_s9 + $0x188] sm:$0xff] }
 0x9e7   : > { %4931 = vmatmul.mubr.msk.f32.vlgmr.msra.gmra.mrb[30].mxu1 %vm2978_vm3, %v6496_v56  ;;  %v5229_v56 = vpack.c.bf16 %v3149_v30, %v3145_v29  ;;  %5288 = vmatpush1.bf16.msra.mxu0 %v5287_v18  ;;  %v3405_v29 = vld [vmem:[%s7603_s9 + $0x40] sm:$0xff]  ;;  %v3407_v30 = vld [vmem:[%s7603_s9 + $0x50] sm:$0xff]  ;;  %v5327_v18 = vpack.c.bf16 %v3439_v35, %v3437_v12 }
 0x9e8   : > { %3256 = vmatprep.mubr.f32.mxu1 %v5958_v0  ;;  %5224 = vmatpush1.bf16.msra.mxu1 %v5223_v55  ;;  %v3406_v55 = vld [vmem:[%s7603_s9 + $0x48] sm:$0xff]  ;;  %v5295_v32 = vpack.c.bf16 %v3407_v30, %v3405_v29  ;;  %v3138_v29 = vld [vmem:[#allocation9 + $0x50] sm:$0xff]  ;;  %v3445_v12 = vld [vmem:[%s7603_s9 + $0x180] sm:$0xff] }
 0x9e9   : > { %5226 = vmatprep.subr.bf16.mxu1 %v5225_v16  ;;  %v3408_v16 = vld [vmem:[%s7603_s9 + $0x58] sm:$0xff]  ;;  %5290 = vmatprep.subr.bf16.mxu0 %v5289_v10  ;;  %v3130_v10 = vld [vmem:[#allocation9 + $0x10] sm:$0xff] }
 0x9ea   : > { %v5293_v28 = vpack.c.bf16 %v3408_v16, %v3406_v55  ;;  %v3143_v55 = vld [vmem:[#allocation9 + $0x78] sm:$0xff]  ;;  %v5255_v16 = vpack.c.bf16 %v3134_v1, %v3130_v10  ;;  %v3142_v30 = vld [vmem:[#allocation9 + $0x70] sm:$0xff]  ;;  %v3450_v10 = vld [vmem:[%s7603_s9 + $0x1a8] sm:$0xff] }
 0x9eb   : > { %5292 = vmatpush1.bf16.msra.mxu0 %v5291_v43  ;;  %v3447_v35 = vld [vmem:[%s7603_s9 + $0x190] sm:$0xff]  ;;  %v3452_v1 = vld [vmem:[%s7603_s9 + $0x1b8] sm:$0xff] }
 0x9ec   : > { %5228 = vmatpush1.bf16.msra.mxu1 %v5227_v31  ;;  %v3410_v31 = vld [vmem:[%s7603_s9 + $0x68] sm:$0xff]  ;;  %5294 = vmatprep.subr.bf16.mxu0 %v5293_v28  ;;  %v5257_v28 = vpack.c.bf16 %v3143_v55, %v3139_v22  ;;  %v5337_v22 = vpack.c.bf16 %v3452_v1, %v3450_v10  ;;  %v3449_v55 = vld [vmem:[%s7603_s9 + $0x1a0] sm:$0xff] }
 0x9ed   : > { %5230 = vmatprep.subr.bf16.mxu1 %v5229_v56  ;;  %v3412_v56 = vld [vmem:[%s7603_s9 + $0x78] sm:$0xff] }
 0x9ee   : > { %v5297_v33 = vpack.c.bf16 %v3412_v56, %v3410_v31  ;;  %v3147_v56 = vld [vmem:[#allocation9 + $0x98] sm:$0xff] }
 0x9ef   : > { %5296 = vmatpush1.bf16.msra.mxu0 %v5295_v32  ;;  %v3151_v32 = vld [vmem:[#allocation9 + $0xb8] sm:$0xff] }
 0x9f0   : > { %5232 = vmatpush1.bf16.msra.mxu1 %v5231_v37  ;;  %v3414_v37 = vld [vmem:[%s7603_s9 + $0x88] sm:$0xff]  ;;  %5298 = vmatprep.subr.bf16.mxu0 %v5297_v33  ;;  %v5259_v33 = vpack.c.bf16 %v3142_v30, %v3138_v29  ;;  %v5261_v34 = vpack.c.bf16 %v3151_v32, %v3147_v56  ;;  %v3456_v29 = vld [vmem:[%s7603_s9 + $0x1d8] sm:$0xff]  ;;  %v3455_v56 = vld [vmem:[%s7603_s9 + $0x1d0] sm:$0xff] }
 0x9f1   : > { %5234 = vmatprep.subr.bf16.mxu1 %v5233_v39  ;;  %v3416_v39 = vld [vmem:[%s7603_s9 + $0x98] sm:$0xff] }
 0x9f2   : > { %v5301_v44 = vpack.c.bf16 %v3416_v39, %v3414_v37  ;;  %v3150_v37 = vld [vmem:[#allocation9 + $0xb0] sm:$0xff]  ;;  %v3155_v39 = vld [vmem:[#allocation9 + $0xd8] sm:$0xff] }
 0x9f3   : > { %5300 = vmatpush1.bf16.msra.mxu0 %v5299_v41  ;;  %v3159_v41 = vld [vmem:[#allocation9 + $0xf8] sm:$0xff] }
 0x9f4   : > { %5236 = vmatpush1.bf16.msra.mxu1 %v5235_v21  ;;  %v3418_v21 = vld [vmem:[%s7603_s9 + $0xa8] sm:$0xff]  ;;  %5302 = vmatprep.subr.bf16.mxu0 %v5301_v44  ;;  %v5263_v44 = vpack.c.bf16 %v3150_v37, %v3146_v36  ;;  %v5265_v26 = vpack.c.bf16 %v3159_v41, %v3155_v39  ;;  %v3457_v36 = vld [vmem:[%s7603_s9 + $0x1e0] sm:$0xff]  ;;  %v3459_v39 = vld [vmem:[%s7603_s9 + $0x1f0] sm:$0xff] }
 0x9f5   : > { %5238 = vmatprep.subr.bf16.mxu1 %v5237_v24  ;;  %v3420_v24 = vld [vmem:[%s7603_s9 + $0xb8] sm:$0xff]  ;;  %v5347_v41 = vpack.c.bf16 %v3459_v39, %v3457_v36 }
 0x9f6   : > { %v5305_v48 = vpack.c.bf16 %v3420_v24, %v3418_v21  ;;  %v3158_v21 = vld [vmem:[#allocation9 + $0xf0] sm:$0xff]  ;;  %v3167_v24 = vld [vmem:[#allocation9 + $0x138] sm:$0xff] }
 0x9f7   : > { %5304 = vmatpush1.bf16.msra.mxu0 %v5303_v47  ;;  %v5267_v47 = vpack.c.bf16 %v3158_v21, %v3154_v14  ;;  %v3697_v21 = vld [vmem:[%s7649_s15 + $0x80] sm:$0xff] }
 0x9f8   : > { %5240 = vmatpush1.bf16.msra.mxu1 %v5239_v51  ;;  %v3422_v51 = vld [vmem:[%s7603_s9 + $0xc8] sm:$0xff]  ;;  %5306 = vmatprep.subr.bf16.mxu0 %v5305_v48 }
 0x9f9   : > { %5242 = vmatprep.subr.bf16.mxu1 %v5241_v52  ;;  %v3424_v52 = vld [vmem:[%s7603_s9 + $0xd8] sm:$0xff] }
 0x9fa   : > { %v5309_v20 = vpack.c.bf16 %v3424_v52, %v3422_v51  ;;  %v3171_v51 = vld [vmem:[#allocation9 + $0x158] sm:$0xff] }
 0x9fb   : > { %5308 = vmatpush1.bf16.msra.mxu0 %v5307_v53  ;;  %v3175_v52 = vld [vmem:[#allocation9 + $0x178] sm:$0xff]  ;;  %v5271_v53 = vpack.c.bf16 %v3166_v50, %v3162_v49  ;;  %v3699_v49 = vld [vmem:[%s7649_s15 + $0x90] sm:$0xff] }
 0x9fc   : > { %5244 = vmatpush1.bf16.msra.mxu1 %v5243_v19  ;;  %v3426_v19 = vld [vmem:[%s7603_s9 + $0xe8] sm:$0xff]  ;;  %5310 = vmatprep.subr.bf16.mxu0 %v5309_v20  ;;  %v5273_v20 = vpack.c.bf16 %v3175_v52, %v3171_v51  ;;  %v3700_v50 = vld [vmem:[%s7649_s15 + $0x98] sm:$0xff] }
 0x9fd   : > { %5246 = vmatprep.subr.bf16.mxu1 %v5245_v25  ;;  %v3428_v25 = vld [vmem:[%s7603_s9 + $0xf8] sm:$0xff]  ;;  %v5417_v52 = vpack.c.bf16 %v3700_v50, %v3699_v49  ;;  %v3466_v49 = vld [vmem:[%s7603_s9 + $0x228] sm:$0xff] }
 0x9fe   : > { %v5313_v60 = vpack.c.bf16 %v3428_v25, %v3426_v19  ;;  %v3179_v19 = vld [vmem:[#allocation9 + $0x198] sm:$0xff] }
 0x9ff   : > { %5312 = vmatpush1.bf16.msra.mxu0 %v5311_v57  ;;  %v3183_v25 = vld [vmem:[#allocation9 + $0x1b8] sm:$0xff]  ;;  %v5275_v57 = vpack.c.bf16 %v3174_v27, %v3170_v54  ;;  %v3701_v54 = vld [vmem:[%s7649_s15 + $0xa0] sm:$0xff]  ;;  %v3702_v27 = vld [vmem:[%s7649_s15 + $0xa8] sm:$0xff] }
 0xa00   : > { %5248 = vmatpush1.bf16.msra.mxu1 %v5247_v3  ;;  %v3430_v3 = vld [vmem:[%s7603_s9 + $0x108] sm:$0xff]  ;;  %5314 = vmatprep.subr.bf16.mxu0 %v5313_v60  ;;  %v5277_v60 = vpack.c.bf16 %v3183_v25, %v3179_v19  ;;  %v5421_v25 = vpack.c.bf16 %v3702_v27, %v3701_v54  ;;  %v3468_v50 = vld [vmem:[%s7603_s9 + $0x238] sm:$0xff]  ;;  %v3465_v54 = vld [vmem:[%s7603_s9 + $0x220] sm:$0xff] }
 0xa01   : > { %5250 = vmatprep.subr.bf16.mxu1 %v5249_v4  ;;  %v3432_v4 = vld [vmem:[%s7603_s9 + $0x118] sm:$0xff]  ;;  %v3467_v27 = vld [vmem:[%s7603_s9 + $0x230] sm:$0xff] }
 0xa02   : > { %v5317_v2 = vpack.c.bf16 %v3432_v4, %v3430_v3  ;;  %v3187_v3 = vld [vmem:[#allocation9 + $0x1d8] sm:$0xff] }
 0xa03   : > { %5316 = vmatpush1.bf16.msra.mxu0 %v5315_v5  ;;  %v3191_v4 = vld [vmem:[#allocation9 + $0x1f8] sm:$0xff]  ;;  %v5279_v5 = vpack.c.bf16 %v3182_v45, %v3178_v62  ;;  %v3703_v62 = vld [vmem:[%s7649_s15 + $0xb0] sm:$0xff] }
 0xa04   : > { %5252 = vmatpush1.bf16.msra.mxu1 %v5251_v6  ;;  %v3429_v6 = vld [vmem:[%s7603_s9 + $0x100] sm:$0xff]  ;;  %5318 = vmatprep.subr.bf16.mxu0 %v5317_v2  ;;  %v5281_v2 = vpack.c.bf16 %v3191_v4, %v3187_v3  ;;  %v3704_v45 = vld [vmem:[%s7649_s15 + $0xb8] sm:$0xff] }
 0xa05   : > { %5254 = vmatprep.subr.bf16.mxu1 %v5253_v9  ;;  %v3436_v9 = vld [vmem:[%s7603_s9 + $0x138] sm:$0xff]  ;;  %v5425_v4 = vpack.c.bf16 %v3704_v45, %v3703_v62  ;;  %v3469_v62 = vld [vmem:[%s7603_s9 + $0x240] sm:$0xff]  ;;  %v3471_v45 = vld [vmem:[%s7603_s9 + $0x250] sm:$0xff] }
 0xab6   : > { %v6783_v38 = vpop.f32.mrb[28].mxu1 }
 0xab7   : > { %v4927_v58 = vpop.f32.mrb[29].mxu1 }
 0xab8   : > { %v5319_v58 = vpack.c.bf16 %v3431_v7, %v3429_v6  ;;  %v3186_v6 = vld [vmem:[#allocation9 + $0x1d0] sm:$0xff] }
 0xab9   : > { %v3190_v7 = vld [vmem:[#allocation9 + $0x1f0] sm:$0xff] }
 0xaba   : > { %v3119_v11 = vpop.f32.mrb[30].mxu1  ;;  %5320 = vmatpush1.bf16.msra.mxu0 %v5319_v58  ;;  %v3444_v58 = vld [vmem:[%s7603_s9 + $0x178] sm:$0xff] }
 0xabb   : > { %3124 = vrot.lane.b32.xlu0 %v3119_v11, %s5962_s27  ;;  %v4932_v13 = vpop.f32.mrb[31].mxu1  ;;  %v5321_v11 = vpack.c.bf16 %v3436_v9, %v3434_v8  ;;  %v5283_v8 = vpack.c.bf16 %v3190_v7, %v3186_v6  ;;  %v3442_v9 = vld [vmem:[%s7603_s9 + $0x168] sm:$0xff]  ;;  %v3705_v6 = vld [vmem:[%s7649_s15 + $0xc0] sm:$0xff]  ;;  %s7653_s27 = sld [smem:[#allocation23_spill]] }
 0xabc   : > { %v3433_v13 = vld [vmem:[%s7603_s9 + $0x120] sm:$0xff]  ;;  %v3706_v7 = vld [vmem:[%s7649_s15 + $0xc8] sm:$0xff] }
 0xabd   : > { %v5323_v46 = vpack.c.bf16 %v3435_v15, %v3433_v13  ;;  %5322 = vmatprep.subr.bf16.mxu0 %v5321_v11  ;;  %v5329_v11 = vpack.c.bf16 %v3444_v58, %v3442_v9  ;;  %v3441_v13 = vld [vmem:[%s7603_s9 + $0x160] sm:$0xff]  ;;  %v3443_v15 = vld [vmem:[%s7603_s9 + $0x170] sm:$0xff]  ;;  %v5429_v9 = vpack.c.bf16 %v3706_v7, %v3705_v6 }
 0xabe   : > { %v5331_v61 = vpack.c.bf16 %v3443_v15, %v3441_v13  ;;  %v3689_v58 = vld [vmem:[%s7649_s15 + $0x40] sm:$0xff]  ;;  %v3707_v13 = vld [vmem:[%s7649_s15 + $0xd0] sm:$0xff]  ;;  %v3708_v15 = vld [vmem:[%s7649_s15 + $0xd8] sm:$0xff] }
 0xabf   : > { %5324 = vmatpush1.bf16.msra.mxu0 %v5323_v46  ;;  %v3448_v46 = vld [vmem:[%s7603_s9 + $0x198] sm:$0xff]  ;;  %v3473_v6 = vld [vmem:[%s7603_s9 + $0x260] sm:$0xff]  ;;  %v3475_v7 = vld [vmem:[%s7603_s9 + $0x270] sm:$0xff] }
 0xac0   : > { %5326 = vmatprep.subr.bf16.mxu0 %v5325_v23  ;;  %v5333_v23 = vpack.c.bf16 %v3448_v46, %v3446_v17  ;;  %v5433_v17 = vpack.c.bf16 %v3708_v15, %v3707_v13  ;;  %v3691_v46 = vld [vmem:[%s7649_s15 + $0x50] sm:$0xff]  ;;  %v3477_v15 = vld [vmem:[%s7603_s9 + $0x280] sm:$0xff] }
 0xac1   : > { %s7654_s29 = smov %s7653_s27 }
 0xac3   : > { %5328 = vmatpush1.bf16.msra.mxu0 %v5327_v18  ;;  %v5335_v18 = vpack.c.bf16 %v3447_v35, %v3445_v12  ;;  %v3709_v12 = vld [vmem:[%s7649_s15 + $0xe0] sm:$0xff]  ;;  %v3710_v35 = vld [vmem:[%s7649_s15 + $0xe8] sm:$0xff] }
 0xac4   : > { %5330 = vmatprep.subr.bf16.mxu0 %v5329_v11  ;;  %v3690_v11 = vld [vmem:[%s7649_s15 + $0x48] sm:$0xff]  ;;  %v5437_v10 = vpack.c.bf16 %v3710_v35, %v3709_v12  ;;  %v3484_v12 = vld [vmem:[%s7603_s9 + $0x2b8] sm:$0xff] }
 0xac7   : > { %5332 = vmatpush1.bf16.msra.mxu0 %v5331_v61  ;;  %v5431_v61 = vpack.c.bf16 %v3690_v11, %v3689_v58  ;;  %v5363_v58 = vpack.c.bf16 %v3475_v7, %v3473_v6 }
 0xac8   : > { %5334 = vmatprep.subr.bf16.mxu0 %v5333_v23  ;;  %v3692_v23 = vld [vmem:[%s7649_s15 + $0x58] sm:$0xff] }
 0xacb   : > { %5336 = vmatpush1.bf16.msra.mxu0 %v5335_v18  ;;  %v5435_v18 = vpack.c.bf16 %v3692_v23, %v3691_v46  ;;  %v3482_v23 = vld [vmem:[%s7603_s9 + $0x2a8] sm:$0xff] }
 0xacc   : > { %5338 = vmatprep.subr.bf16.mxu0 %v5337_v22 }
 0xb2d   : > { %v3125_v43 = vpop.permute.xlu0 %3124 }
 0xb2e   : > { %v3127_v31 = vsel %vm1376_vm13, %v6783_v38, %v3125_v43  ;;  %v3163_v38 = vld [vmem:[#allocation9 + $0x118] sm:$0xff] }
 0xb2f   : > { %3257 = vmatmul.mubr.f32.vlgmr.msra.gmra.mrb[32].mxu1 %v3127_v31  ;;  %v5269_v48 = vpack.c.bf16 %v3167_v24, %v3163_v38  ;;  %v3698_v38 = vld [vmem:[%s7649_s15 + $0x88] sm:$0xff]  ;;  %v3681_v24 = vld [vmem:[%s7649_s15] sm:$0xff] }
 0xb30   : > { %5256 = vmatpush1.bf16.msra.mxu1 %v5255_v16  ;;  %3327 = vmatprep.mubr.f32.mxu1 %v5958_v0  ;;  %v3451_v16 = vld [vmem:[%s7603_s9 + $0x1b0] sm:$0xff] }
 0xb31   : > { %5258 = vmatprep.subr.bf16.mxu1 %v5257_v28  ;;  %v5339_v43 = vpack.c.bf16 %v3451_v16, %v3449_v55  ;;  %v3454_v28 = vld [vmem:[%s7603_s9 + $0x1c8] sm:$0xff] }
 0xb32   : > { %v5341_v30 = vpack.c.bf16 %v3456_v29, %v3454_v28 }
 0xb33   : > { %5340 = vmatpush1.bf16.msra.mxu0 %v5339_v43 }
 0xb34   : > { %5260 = vmatpush1.bf16.msra.mxu1 %v5259_v33  ;;  %5342 = vmatprep.subr.bf16.mxu0 %v5341_v30  ;;  %v3458_v33 = vld [vmem:[%s7603_s9 + $0x1e8] sm:$0xff] }
 0xb35   : > { %5262 = vmatprep.subr.bf16.mxu1 %v5261_v34  ;;  %v3460_v34 = vld [vmem:[%s7603_s9 + $0x1f8] sm:$0xff] }
 0xb36   : > { %v5345_v37 = vpack.c.bf16 %v3460_v34, %v3458_v33  ;;  %v7070_v34 = vld [vmem:[%s7650_s10] sm:$0xf] }
 0xb38   : > { %5264 = vmatpush1.bf16.msra.mxu1 %v5263_v44  ;;  %v3462_v44 = vld [vmem:[%s7603_s9 + $0x208] sm:$0xff] }
 0xb39   : > { %5266 = vmatprep.subr.bf16.mxu1 %v5265_v26  ;;  %v3464_v26 = vld [vmem:[%s7603_s9 + $0x218] sm:$0xff] }
 0xb3a   : > { %v5349_v14 = vpack.c.bf16 %v3464_v26, %v3462_v44  ;;  %v3376_v26 = vrot.slane %v7070_v34, %v6468_v42 }
 0xb3c   : > { %5268 = vmatpush1.bf16.msra.mxu1 %v5267_v47  ;;  %v5413_v47 = vpack.c.bf16 %v3698_v38, %v3697_v21 }
 0xb3d   : > { %5270 = vmatprep.subr.bf16.mxu1 %v5269_v48  ;;  %v3682_v48 = vld [vmem:[%s7649_s15 + $0x8] sm:$0xff] }
 0xb3e   : > { %v5415_v51 = vpack.c.bf16 %v3682_v48, %v3681_v24  ;;  %v3461_v24 = vld [vmem:[%s7603_s9 + $0x200] sm:$0xff] }
 0xb40   : > { %5272 = vmatpush1.bf16.msra.mxu1 %v5271_v53  ;;  %v3683_v53 = vld [vmem:[%s7649_s15 + $0x10] sm:$0xff] }
 0xb41   : > { %5274 = vmatprep.subr.bf16.mxu1 %v5273_v20  ;;  %v3684_v20 = vld [vmem:[%s7649_s15 + $0x18] sm:$0xff] }
 0xb42   : > { %v5419_v19 = vpack.c.bf16 %v3684_v20, %v3683_v53  ;;  %v5353_v20 = vpack.c.bf16 %v3468_v50, %v3466_v49  ;;  %v3489_v50 = vld [vmem:[%s7603_s9 + $0x2e0] sm:$0xff] }
 0xb44   : > { %5276 = vmatpush1.bf16.msra.mxu1 %v5275_v57  ;;  %v3685_v57 = vld [vmem:[%s7649_s15 + $0x20] sm:$0xff] }
 0xb45   : > { %5278 = vmatprep.subr.bf16.mxu1 %v5277_v60  ;;  %v3686_v60 = vld [vmem:[%s7649_s15 + $0x28] sm:$0xff] }
 0xb46   : > { %v5423_v3 = vpack.c.bf16 %v3686_v60, %v3685_v57  ;;  %v5355_v57 = vpack.c.bf16 %v3467_v27, %v3465_v54  ;;  %v3494_v54 = vld [vmem:[%s7603_s9 + $0x308] sm:$0xff]  ;;  %v3496_v27 = vld [vmem:[%s7603_s9 + $0x318] sm:$0xff] }
 0xb48   : > { %5280 = vmatpush1.bf16.msra.mxu1 %v5279_v5  ;;  %v3687_v5 = vld [vmem:[%s7649_s15 + $0x30] sm:$0xff] }
 0xb49   : > { %5282 = vmatprep.subr.bf16.mxu1 %v5281_v2  ;;  %v3688_v2 = vld [vmem:[%s7649_s15 + $0x38] sm:$0xff] }
 0xb4c   : > { %5284 = vmatpush1.bf16.msra.mxu1 %v5283_v8  ;;  %v5427_v8 = vpack.c.bf16 %v3688_v2, %v3687_v5  ;;  %v5359_v5 = vpack.c.bf16 %v3471_v45, %v3469_v62  ;;  %v3493_v62 = vld [vmem:[%s7603_s9 + $0x300] sm:$0xff] }
 0xb4d   : > { %5414 = vmatprep.subr.bf16.mxu1 %v5413_v47  ;;  %v3463_v47 = vld [vmem:[%s7603_s9 + $0x210] sm:$0xff] }
 0xb4f   : > { %3328 = vmatmul.mubr.f32.vlgmr.msra.gmra.mrb[34].mxu1 %v3127_v31  ;;  %v3453_v31 = vld [vmem:[%s7603_s9 + $0x1c0] sm:$0xff] }
 0xb50   : > { %v5343_v32 = vpack.c.bf16 %v3455_v56, %v3453_v31  ;;  %5416 = vmatpush3.bf16.msra.mxu1 %v5415_v51 }
 0xb51   : > { %5418 = vmatprep.subr.bf16.mxu1 %v5417_v52  ;;  %v5351_v52 = vpack.c.bf16 %v3463_v47, %v3461_v24 }
 0xb52   : > { %5344 = vmatpush1.bf16.msra.mxu0 %v5343_v32 }
 0xb53   : > { %5346 = vmatprep.subr.bf16.mxu0 %v5345_v37 }
 0xb54   : > { %5420 = vmatpush3.bf16.msra.mxu1 %v5419_v19  ;;  %v3470_v19 = vld [vmem:[%s7603_s9 + $0x248] sm:$0xff] }
 0xb55   : > { %5422 = vmatprep.subr.bf16.mxu1 %v5421_v25  ;;  %v3472_v25 = vld [vmem:[%s7603_s9 + $0x258] sm:$0xff] }
 0xb56   : > { %5348 = vmatpush1.bf16.msra.mxu0 %v5347_v41  ;;  %v3372_v41 = vrot.slane %v7070_v34, %v6462_v40  ;;  %v5357_v60 = vpack.c.bf16 %v3472_v25, %v3470_v19 }
 0xb57   : > { %5350 = vmatprep.subr.bf16.mxu0 %v5349_v14 }
 0xb58   : > { %5424 = vmatpush3.bf16.msra.mxu1 %v5423_v3  ;;  %v3474_v3 = vld [vmem:[%s7603_s9 + $0x268] sm:$0xff] }
 0xb59   : > { %5426 = vmatprep.subr.bf16.mxu1 %v5425_v4  ;;  %v3476_v4 = vld [vmem:[%s7603_s9 + $0x278] sm:$0xff] }
 0xb5a   : > { %v5361_v2 = vpack.c.bf16 %v3476_v4, %v3474_v3  ;;  %v3498_v4 = vld [vmem:[%s7603_s9 + $0x328] sm:$0xff] }
 0xb5c   : > { %5428 = vmatpush3.bf16.msra.mxu1 %v5427_v8  ;;  %v3478_v8 = vld [vmem:[%s7603_s9 + $0x288] sm:$0xff] }
 0xb5d   : > { %5430 = vmatprep.subr.bf16.mxu1 %v5429_v9  ;;  %v3480_v9 = vld [vmem:[%s7603_s9 + $0x298] sm:$0xff] }
 0xb5e   : > { %v5365_v13 = vpack.c.bf16 %v3480_v9, %v3478_v8  ;;  %v3497_v8 = vld [vmem:[%s7603_s9 + $0x320] sm:$0xff]  ;;  %v3499_v9 = vld [vmem:[%s7603_s9 + $0x330] sm:$0xff] }
 0xb60   : > { %5432 = vmatpush3.bf16.msra.mxu1 %v5431_v61  ;;  %v3479_v61 = vld [vmem:[%s7603_s9 + $0x290] sm:$0xff] }
 0xb61   : > { %5434 = vmatprep.subr.bf16.mxu1 %v5433_v17 }
 0xb64   : > { %5436 = vmatpush3.bf16.msra.mxu1 %v5435_v18 }
 0xb65   : > { %5438 = vmatprep.subr.bf16.mxu1 %v5437_v10 }
 0xc02   : > { %v3258_v1 = vpop.f32.mrb[32].mxu1 }
 0xc03   : > { %v3335_v22 = vsel %vm3334_vm2, %v3258_v1, 0.0  ;;  %v3260_v55 = vpop.f32.mrb[33].mxu1  ;;  %v5367_v1 = vpack.c.bf16 %v3479_v61, %v3477_v15  ;;  %v3501_v61 = vld [vmem:[%s7603_s9 + $0x340] sm:$0xff] }
 0xc04   : > { %v3336_v16 = vrot.slane %v3335_v22, 4  ;;  %v3342_v43 = vsel %vm3334_vm2, %v3260_v55, 0.0  ;;  %v5369_v55 = vpack.c.bf16 %v3484_v12, %v3482_v23  ;;  %v3508_v23 = vld [vmem:[%s7603_s9 + $0x378] sm:$0xff] }
 0xc05   : > { %v3343_v28 = vrot.slane %v3342_v43, 4 }
 0xc06   : > { %v3337_v29 = vadd.f32 %v3336_v16, %v3335_v22  ;;  %v3481_v16 = vld [vmem:[%s7603_s9 + $0x2a0] sm:$0xff] }
 0xc07   : > { %v3344_v30 = vadd.f32 %v3343_v28, %v3342_v43  ;;  %v3483_v43 = vld [vmem:[%s7603_s9 + $0x2b0] sm:$0xff] }
 0xc08   : > { %v3338_v31 = vrot.slane %v3337_v29, 2 }
 0xc09   : > { %v3345_v56 = vrot.slane %v3344_v30, 2 }
 0xc0a   : > { %v3339_v32 = vadd.f32 %v3338_v31, %v3337_v29  ;;  %v3486_v29 = vld [vmem:[%s7603_s9 + $0x2c8] sm:$0xff] }
 0xc0b   : > { %v3346_v33 = vadd.f32 %v3345_v56, %v3344_v30  ;;  %v3488_v30 = vld [vmem:[%s7603_s9 + $0x2d8] sm:$0xff] }
 0xc0c   : > { %v3340_v36 = vrot.slane %v3339_v32, 1 }
 0xc0d   : > { %v3347_v37 = vrot.slane %v3346_v33, 1 }
 0xc0e   : > { %v3341_v39 = vadd.f32 %v3340_v36, %v3339_v32  ;;  %v5371_v32 = vpack.c.bf16 %v3483_v43, %v3481_v16  ;;  %v5373_v36 = vpack.c.bf16 %v3488_v30, %v3486_v29  ;;  %v3509_v43 = vld [vmem:[%s7603_s9 + $0x380] sm:$0xff]  ;;  %v3514_v29 = vld [vmem:[%s7603_s9 + $0x3a8] sm:$0xff]  ;;  %v3516_v30 = vld [vmem:[%s7603_s9 + $0x3b8] sm:$0xff] }
 0xc0f   : > { %v3348_v44 = vadd.f32 %v3347_v37, %v3346_v33  ;;  %v3485_v37 = vld [vmem:[%s7603_s9 + $0x2c0] sm:$0xff] }
 0xc10   : > { %v3363_v14 = vmul.f32 0.25, %v3341_v39  ;;  %v3487_v39 = vld [vmem:[%s7603_s9 + $0x2d0] sm:$0xff] }
 0xc11   : > { %v3364_v21 = vmul.f32 0.25, %v3348_v44  ;;  %v5375_v47 = vpack.c.bf16 %v3487_v39, %v3485_v37  ;;  %v3520_v37 = vld [vmem:[%s7603_s9 + $0x3d8] sm:$0xff] }
 0xc12   : > { %v3389_v38 = vadd.f32 %v3372_v41, %v3363_v14  ;;  %v3379_v41 = vsub.s32 2, %v6376_v59  ;;  %v3492_v14 = vld [vmem:[%s7603_s9 + $0x2f8] sm:$0xff] }
 0xc13   : > { %v3390_v48 = vadd.f32 %v3376_v26, %v3364_v21  ;;  %v3490_v26 = vld [vmem:[%s7603_s9 + $0x2e8] sm:$0xff]  ;;  %v3383_v21 = vsub.s32 3, %v6376_v59 }
 0xc14   : > { %v3393_v53 = vmax.f32 %v3389_v38, 0.0  ;;  %v5377_v49 = vpack.c.bf16 %v3492_v14, %v3490_v26  ;;  %v3517_v26 = vld [vmem:[%s7603_s9 + $0x3c0] sm:$0xff]  ;;  %v3519_v14 = vld [vmem:[%s7603_s9 + $0x3d0] sm:$0xff] }
 0xc15   : > { %v3394_v51 = vmax.f32 %v3390_v48, 0.0 }
 0xc17   : > { %3601 = vmatprep.mubr.f32.mxu0 %v3394_v51  ;;  %v3491_v51 = vld [vmem:[%s7603_s9 + $0x2f0] sm:$0xff] }
 0xc18   : > { %3602 = vmatmul.mubr.f32.vlgmr.msra.gmra.mrb[26].mxu0 %v3393_v53 }
 0xc19   : > { %5352 = vmatpush1.bf16.msra.mxu0 %v5351_v52  ;;  %v3380_v52 = vrot.slane %v7070_v34, %v3379_v41 }
 0xc1a   : > { %5354 = vmatprep.subr.bf16.mxu0 %v5353_v20  ;;  %v3384_v20 = vrot.slane %v7070_v34, %v3383_v21  ;;  %v3495_v34 = vld [vmem:[%s7603_s9 + $0x310] sm:$0xff] }
 0xc1b   : > { %v5383_v6 = vpack.c.bf16 %v3495_v34, %v3493_v62  ;;  %v3786_v34 = vld [vmem:[#allocation10 + $0x8] sm:$0xff] }
 0xc1d   : > { %5356 = vmatpush1.bf16.msra.mxu0 %v5355_v57  ;;  %v5379_v57 = vpack.c.bf16 %v3491_v51, %v3489_v50  ;;  %v3523_v50 = vld [vmem:[%s7603_s9 + $0x3f0] sm:$0xff] }
 0xc1e   : > { %5358 = vmatprep.subr.bf16.mxu0 %v5357_v60  ;;  %v5381_v60 = vpack.c.bf16 %v3496_v27, %v3494_v54  ;;  %v3711_v27 = vld [vmem:[%s7649_s15 + $0xf0] sm:$0xff] }
 0xc21   : > { %5360 = vmatpush1.bf16.msra.mxu0 %v5359_v5  ;;  %v3500_v5 = vld [vmem:[%s7603_s9 + $0x338] sm:$0xff] }
 0xc22   : > { %v3329_v11 = vpop.f32.mrb[34].mxu1  ;;  %5362 = vmatprep.subr.bf16.mxu0 %v5361_v2  ;;  %v5385_v7 = vpack.c.bf16 %v3500_v5, %v3498_v4  ;;  %v3525_v4 = vld [vmem:[%s7651_s14] sm:$0x3]  ;;  %s7656_s14 = sld [smem:[#allocation24_spill]] }
 0xc23   : > { %v3349_v17 = vsel %vm3334_vm2, %v3329_v11, 0.0  ;;  %v3331_v46 = vpop.f32.mrb[35].mxu1  ;;  %v3504_v11 = vld [vmem:[%s7603_s9 + $0x358] sm:$0xff]  ;;  %v3530_v5 = vrot.slane %v3525_v4, %v6462_v40 }
 0xc24   : > { %v3350_v35 = vrot.slane %v3349_v17, 4  ;;  %v3356_v18 = vsel %vm3334_vm2, %v3331_v46, 0.0  ;;  %v3506_v46 = vld [vmem:[%s7603_s9 + $0x368] sm:$0xff] }
 0xc25   : > { %v3357_v10 = vrot.slane %v3356_v18, 4  ;;  %5364 = vmatpush1.bf16.msra.mxu0 %v5363_v58  ;;  %v3502_v58 = vld [vmem:[%s7603_s9 + $0x348] sm:$0xff] }
 0xc26   : > { %v3351_v22 = vadd.f32 %v3350_v35, %v3349_v17  ;;  %5366 = vmatprep.subr.bf16.mxu0 %v5365_v13  ;;  %v5387_v13 = vpack.c.bf16 %v3499_v9, %v3497_v8  ;;  %v5389_v15 = vpack.c.bf16 %v3504_v11, %v3502_v58  ;;  %v3503_v17 = vld [vmem:[%s7603_s9 + $0x350] sm:$0xff]  ;;  %v5393_v35 = vpack.c.bf16 %v3508_v23, %v3506_v46  ;;  %v3801_v46 = vld [vmem:[#allocation10 + $0x80] sm:$0xff] }
 0xc27   : > { %v3358_v28 = vadd.f32 %v3357_v10, %v3356_v18  ;;  %v5391_v12 = vpack.c.bf16 %v3503_v17, %v3501_v61  ;;  %v3505_v18 = vld [vmem:[%s7603_s9 + $0x360] sm:$0xff]  ;;  %v3507_v10 = vld [vmem:[%s7603_s9 + $0x370] sm:$0xff]  ;;  %v3796_v17 = vld [vmem:[#allocation10 + $0x58] sm:$0xff] }
 0xc28   : > { %v3352_v31 = vrot.slane %v3351_v22, 2  ;;  %v5449_v23 = vpack.c.bf16 %v3801_v46, %v3796_v17  ;;  %v4061_v17 = vld [vmem:[%s7654_s29 + $0x48] sm:$0xff]  ;;  %v4078_v46 = vld [vmem:[%s7654_s29 + $0xd0] sm:$0xff] }
 0xc29   : > { %v3359_v56 = vrot.slane %v3358_v28, 2  ;;  %5368 = vmatpush1.bf16.msra.mxu0 %v5367_v1  ;;  %v3510_v1 = vld [vmem:[%s7603_s9 + $0x388] sm:$0xff] }
 0xc2a   : > { %v3353_v33 = vadd.f32 %v3352_v31, %v3351_v22  ;;  %5370 = vmatprep.subr.bf16.mxu0 %v5369_v55  ;;  %v3512_v22 = vld [vmem:[%s7603_s9 + $0x398] sm:$0xff]  ;;  %v5395_v55 = vpack.c.bf16 %v3507_v10, %v3505_v18 }
 0xc2b   : > { %v3360_v44 = vadd.f32 %v3359_v56, %v3358_v28  ;;  %v5397_v16 = vpack.c.bf16 %v3512_v22, %v3510_v1  ;;  %v3511_v28 = vld [vmem:[%s7603_s9 + $0x390] sm:$0xff]  ;;  %v5401_v56 = vpack.c.bf16 %v3516_v30, %v3514_v29  ;;  %v3788_v10 = vld [vmem:[#allocation10 + $0x18] sm:$0xff]  ;;  %v3793_v1 = vld [vmem:[#allocation10 + $0x40] sm:$0xff] }
 0xc2c   : > { %v3354_v38 = vrot.slane %v3353_v33, 1  ;;  %v5399_v31 = vpack.c.bf16 %v3511_v28, %v3509_v43  ;;  %v5453_v22 = vpack.c.bf16 %v3793_v1, %v3788_v10  ;;  %v3787_v29 = vld [vmem:[#allocation10 + $0x10] sm:$0xff]  ;;  %v3792_v30 = vld [vmem:[#allocation10 + $0x38] sm:$0xff]  ;;  %v4080_v1 = vld [vmem:[%s7654_s29 + $0xe0] sm:$0xff] }
 0xc2d   : > { %v3361_v24 = vrot.slane %v3360_v44, 1  ;;  %5372 = vmatpush1.bf16.msra.mxu0 %v5371_v32  ;;  %v3513_v32 = vld [vmem:[%s7603_s9 + $0x3a0] sm:$0xff]  ;;  %v4063_v10 = vld [vmem:[%s7654_s29 + $0x58] sm:$0xff] }
 0xc2e   : > { %v3355_v48 = vadd.f32 %v3354_v38, %v3353_v33  ;;  %5374 = vmatprep.subr.bf16.mxu0 %v5373_v36  ;;  %v3515_v33 = vld [vmem:[%s7603_s9 + $0x3b0] sm:$0xff]  ;;  %v3518_v36 = vld [vmem:[%s7603_s9 + $0x3c8] sm:$0xff] }
 0xc2f   : > { %v3362_v53 = vadd.f32 %v3361_v24, %v3360_v44  ;;  %v5403_v39 = vpack.c.bf16 %v3515_v33, %v3513_v32  ;;  %v5405_v44 = vpack.c.bf16 %v3520_v37, %v3518_v36  ;;  %v3522_v38 = vld [vmem:[%s7603_s9 + $0x3e8] sm:$0xff]  ;;  %v3524_v24 = vld [vmem:[%s7603_s9 + $0x3f8] sm:$0xff]  ;;  %v5455_v33 = vpack.c.bf16 %v3792_v30, %v3787_v29  ;;  %v4082_v30 = vld [vmem:[%s7654_s29 + $0xf0] sm:$0xff] }
 0xc30   : > { %v3365_v19 = vmul.f32 0.25, %v3355_v48  ;;  %v5409_v48 = vpack.c.bf16 %v3524_v24, %v3522_v38  ;;  %v3794_v38 = vld [vmem:[#allocation10 + $0x48] sm:$0xff] }
 0xc31   : > { %v3366_v25 = vmul.f32 0.25, %v3362_v53  ;;  %5376 = vmatpush1.bf16.msra.mxu0 %v5375_v47  ;;  %v5407_v47 = vpack.c.bf16 %v3519_v14, %v3517_v26  ;;  %v3693_v53 = vld [vmem:[%s7649_s15 + $0x60] sm:$0xff] }
 0xc32   : > { %5378 = vmatprep.subr.bf16.mxu0 %v5377_v49  ;;  %v7188_v45 = vadd.f32 %v3380_v52, %v3365_v19  ;;  %v3521_v49 = vld [vmem:[%s7603_s9 + $0x3e0] sm:$0xff]  ;;  %v3712_v19 = vld [vmem:[%s7649_s15 + $0xf8] sm:$0xff] }
 0xc33   : > { %v3392_v3 = vadd.f32 %v3384_v20, %v3366_v25  ;;  %v5411_v51 = vpack.c.bf16 %v3523_v50, %v3521_v49  ;;  %v3694_v20 = vld [vmem:[%s7649_s15 + $0x68] sm:$0xff]  ;;  %v5441_v25 = vpack.c.bf16 %v3712_v19, %v3711_v27  ;;  %v3789_v14 = vld [vmem:[#allocation10 + $0x20] sm:$0xff]  ;;  %v4071_v27 = vld [vmem:[%s7654_s29 + $0x98] sm:$0xff] }
 0xc34   : > { %v3395_v52 = vmax.f32 %v7188_v45, 0.0  ;;  %v5439_v54 = vpack.c.bf16 %v3694_v20, %v3693_v53  ;;  %v3791_v45 = vld [vmem:[#allocation10 + $0x30] sm:$0xff]  ;;  %v5462_v24 = vpack.c.bf16 %v3794_v38, %v3789_v14  ;;  %v4068_v49 = vld [vmem:[%s7653_s27 + $0x80] sm:$0xff]  ;;  %v4069_v50 = vld [vmem:[%s7654_s29 + $0x88] sm:$0xff]  ;;  %s7657_s27 = sld [smem:[#allocation25_spill]] }
 0xc35   : > { %5380 = vmatpush1.bf16.msra.mxu0 %v5379_v57  ;;  %v3396_v2 = vmax.f32 %v3392_v3, 0.0  ;;  %v3695_v57 = vld [vmem:[%s7649_s15 + $0x70] sm:$0xff]  ;;  %v5445_v3 = vpack.c.bf16 %v3791_v45, %v3786_v34  ;;  %v4052_v53 = vld [vmem:[%s7654_s29] sm:$0xff]  ;;  %v4053_v20 = vld [vmem:[%s7654_s29 + $0x8] sm:$0xff] }
 0xc36   : > { %5382 = vmatprep.subr.bf16.mxu0 %v5381_v60  ;;  %5440 = vmatpush3.bf16.msra.mxu1 %v5439_v54  ;;  %v3696_v60 = vld [vmem:[%s7649_s15 + $0x78] sm:$0xff]  ;;  %v4070_v54 = vld [vmem:[%s7654_s29 + $0x90] sm:$0xff]  ;;  %v4101_v14 = vld [vmem:[%s7654_s29 + $0x188] sm:$0xff] }
 0xc37   : > { %3672 = vmatprep.mubr.f32.mxu0 %v3396_v2  ;;  %v5443_v62 = vpack.c.bf16 %v3696_v60, %v3695_v57  ;;  %5442 = vmatprep.subr.bf16.mxu1 %v5441_v25  ;;  %v3534_v2 = vrot.slane %v3525_v4, %v6468_v42  ;;  %v5471_v19 = vpack.c.bf16 %v4071_v27, %v4070_v54  ;;  %v4054_v25 = vld [vmem:[%s7654_s29 + $0x10] sm:$0xff]  ;;  %v4055_v57 = vld [vmem:[%s7654_s29 + $0x18] sm:$0xff]  ;;  %v4072_v60 = vld [vmem:[%s7654_s29 + $0xa0] sm:$0xff] }
 0xc38   : > { %v5473_v34 = vpack.c.bf16 %v4055_v57, %v4054_v25  ;;  %v4057_v4 = vld [vmem:[%s7654_s29 + $0x28] sm:$0xff]  ;;  %v7445_v54 = vld [vmem:[%s7655_s11] sm:$0x1f] }
 0xc39   : > { %5384 = vmatpush1.bf16.msra.mxu0 %v5383_v6  ;;  %v3810_v27 = vrot.slane %v7445_v54, %v6462_v40  ;;  %v4084_v57 = vld [vmem:[%s7654_s29 + $0x100] sm:$0xff]  ;;  %v4103_v40 = vld [vmem:[%s7654_s29 + $0x198] sm:$0xff] }
 0xc3a   : > { %5386 = vmatprep.subr.bf16.mxu0 %v5385_v7  ;;  %5444 = vmatpush3.bf16.msra.mxu1 %v5443_v62  ;;  %v4073_v62 = vld [vmem:[%s7654_s29 + $0xa8] sm:$0xff]  ;;  %s637_s11 = scalar_lea.vmem %s7657_s27, %s7663_s0 }
 0xc3b   : > { %5446 = vmatprep.subr.bf16.mxu1 %v5445_v3  ;;  %v5475_v45 = vpack.c.bf16 %v4073_v62, %v4072_v60  ;;  %v4056_v3 = vld [vmem:[%s7654_s29 + $0x20] sm:$0xff]  ;;  %v4085_v60 = vld [vmem:[%s7654_s29 + $0x108] sm:$0xff] }
 0xc3d   : > { %5388 = vmatpush1.bf16.msra.mxu0 %v5387_v13  ;;  %v3785_v13 = vld [vmem:[#allocation10] sm:$0xff] }
 0xc3e   : > { %5390 = vmatprep.subr.bf16.mxu0 %v5389_v15  ;;  %v3790_v15 = vld [vmem:[#allocation10 + $0x28] sm:$0xff] }
 0xc3f   : > { %v5447_v61 = vpack.c.bf16 %v3790_v15, %v3785_v13 }
 0xc41   : > { %5392 = vmatpush1.bf16.msra.mxu0 %v5391_v12  ;;  %v3795_v12 = vld [vmem:[#allocation10 + $0x50] sm:$0xff] }
 0xc42   : > { %5394 = vmatprep.subr.bf16.mxu0 %v5393_v35  ;;  %v3800_v35 = vld [vmem:[#allocation10 + $0x78] sm:$0xff] }
 0xc43   : > { %v5451_v18 = vpack.c.bf16 %v3800_v35, %v3795_v12 }
 0xc45   : > { %5396 = vmatpush1.bf16.msra.mxu0 %v5395_v55 }
 0xc46   : > { %5398 = vmatprep.subr.bf16.mxu0 %v5397_v16  ;;  %v3713_v16 = vld [vmem:[%s7652_s22] sm:$0x1]  ;;  %s5970_s22 = smov 116  }
 0xc49   : > { %5400 = vmatpush1.bf16.msra.mxu0 %v5399_v31  ;;  %v3798_v31 = vld [vmem:[#allocation10 + $0x68] sm:$0xff] }
 0xc4a   : > { %5402 = vmatprep.subr.bf16.mxu0 %v5401_v56  ;;  %v3803_v56 = vld [vmem:[#allocation10 + $0x90] sm:$0xff] }
 0xc4b   : > { %v5457_v37 = vpack.c.bf16 %v3803_v56, %v3798_v31  ;;  %v4083_v31 = vld [vmem:[%s7654_s29 + $0xf8] sm:$0xff] }
 0xc4c   : > { %v5495_v56 = vpack.c.bf16 %v4083_v31, %v4082_v30 }
 0xc4d   : > { %5404 = vmatpush1.bf16.msra.mxu0 %v5403_v39  ;;  %v3797_v39 = vld [vmem:[#allocation10 + $0x60] sm:$0xff] }
 0xc4e   : > { %5406 = vmatprep.subr.bf16.mxu0 %v5405_v44  ;;  %v3802_v44 = vld [vmem:[#allocation10 + $0x88] sm:$0xff] }
 0xc4f   : > { %v5459_v26 = vpack.c.bf16 %v3802_v44, %v3797_v39  ;;  %v4117_v39 = vld [vmem:[%s7654_s29 + $0x208] sm:$0xff] }
 0xc51   : > { %5408 = vmatpush1.bf16.msra.mxu0 %v5407_v47  ;;  %v3799_v47 = vld [vmem:[#allocation10 + $0x70] sm:$0xff] }
 0xc52   : > { %5410 = vmatprep.subr.bf16.mxu0 %v5409_v48  ;;  %v3804_v48 = vld [vmem:[#allocation10 + $0x98] sm:$0xff] }
 0xc55   : > { %5412 = vmatpush1.bf16.msra.mxu0 %v5411_v51  ;;  %v5465_v51 = vpack.c.bf16 %v3804_v48, %v3799_v47  ;;  %v4119_v47 = vld [vmem:[%s7654_s29 + $0x218] sm:$0xff] }
 0xc56   : > { %5531 = vmatprep.subr.bf16.mxu0 %v5966_v63 }
 0xc58   : > { %3673 = vmatmul.mubr.f32.vlgmr.msra.gmra.mrb[26].mxu0 %v3395_v52  ;;  %v5467_v52 = vpack.c.bf16 %v4069_v50, %v4068_v49  ;;  %v4120_v49 = vld [vmem:[%s7654_s29 + $0x220] sm:$0xff]  ;;  %v4121_v50 = vld [vmem:[%s7654_s29 + $0x228] sm:$0xff] }
 0xc59   : > { %4960 = vmatprep.mubr.msk.f32.mxu0 %vm5967_vm15, %v5958_v0 }
 0xd2b   : > { %v3674_v6 = vpop.f32.mrb[26].mxu0 }
 0xd2c   : > { %v5543_v7 = vadd.f32 %v3674_v6, %v3530_v5  ;;  %v3676_v8 = vpop.f32.mrb[27].mxu0  ;;  %v4074_v5 = vld [vmem:[%s7654_s29 + $0xb0] sm:$0xff]  ;;  %v5477_v6 = vpack.c.bf16 %v4057_v4, %v4056_v3 }
 0xd2d   : > { %v5544_v9 = vadd.f32 %v3676_v8, %v3534_v2  ;;  %v4075_v2 = vld [vmem:[%s7654_s29 + $0xb8] sm:$0xff]  ;;  %v4058_v8 = vld [vmem:[%s7654_s29 + $0x30] sm:$0xff] }
 0xd2e   : > { %v3679_v11 = vmax.f32 %v5543_v7, 0.0  ;;  %v5479_v7 = vpack.c.bf16 %v4075_v2, %v4074_v5  ;;  %v4086_v5 = vld [vmem:[%s7654_s29 + $0x110] sm:$0xff]  ;;  %v4087_v2 = vld [vmem:[%s7654_s29 + $0x118] sm:$0xff] }
 0xd2f   : > { %v3680_v58 = vmax.f32 %v5544_v9, 0.0  ;;  %v4059_v9 = vld [vmem:[%s7654_s29 + $0x38] sm:$0xff] }
 0xd30   : > { %v5481_v13 = vpack.c.bf16 %v4059_v9, %v4058_v8  ;;  %v4105_v8 = vld [vmem:[%s7654_s29 + $0x1a8] sm:$0xff] }
 0xd31   : > { %3778 = vmatprep.mubr.f32.mxu1 %v3680_v58  ;;  %v4076_v58 = vld [vmem:[%s7654_s29 + $0xc0] sm:$0xff] }
 0xd32   : > { %3779 = vmatmul.mubr.f32.vlgmr.msra.gmra.mrb[36].mxu1 %v3679_v11  ;;  %v4077_v11 = vld [vmem:[%s7654_s29 + $0xc8] sm:$0xff] }
 0xd33   : > { %3899 = vmatprep.mubr.f32.mxu1 %v5958_v0  ;;  %5448 = vmatpush1.bf16.msra.mxu1 %v5447_v61  ;;  %v5483_v15 = vpack.c.bf16 %v4077_v11, %v4076_v58  ;;  %v4060_v61 = vld [vmem:[%s7654_s29 + $0x40] sm:$0xff]  ;;  %v5505_v58 = vpack.c.bf16 %v4087_v2, %v4086_v5 }
 0xd34   : > { %5450 = vmatprep.subr.bf16.mxu1 %v5449_v23  ;;  %v4079_v23 = vld [vmem:[%s7654_s29 + $0xd8] sm:$0xff]  ;;  %v5485_v12 = vpack.c.bf16 %v4061_v17, %v4060_v61  ;;  %v4089_v61 = vld [vmem:[%s7654_s29 + $0x128] sm:$0xff] }
 0xd35   : > { %v5487_v35 = vpack.c.bf16 %v4079_v23, %v4078_v46  ;;  %v4106_v46 = vld [vmem:[%s7654_s29 + $0x1b0] sm:$0xff]  ;;  %v4107_v23 = vld [vmem:[%s7654_s29 + $0x1b8] sm:$0xff] }
 0xd37   : > { %5452 = vmatpush1.bf16.msra.mxu1 %v5451_v18  ;;  %v4062_v18 = vld [vmem:[%s7654_s29 + $0x50] sm:$0xff] }
 0xd38   : > { %5454 = vmatprep.subr.bf16.mxu1 %v5453_v22  ;;  %v4081_v22 = vld [vmem:[%s7654_s29 + $0xe8] sm:$0xff] }
 0xe05   : > { %v4717_v55 = vpop.f32.mrb[36].mxu1 }
 0xe06   : > { %v4718_v43 = vpop.f32.mrb[37].mxu1 }
 0xe07   : > { %v4719_v28 = vadd.f32 %v4718_v43, %v4717_v55  ;;  %v5489_v55 = vpack.c.bf16 %v4063_v10, %v4062_v18  ;;  %v4064_v43 = vld [vmem:[%s7654_s29 + $0x60] sm:$0xff]  ;;  %v5511_v10 = vpack.c.bf16 %v4107_v23, %v4106_v46 }
 0xe09   : > { %v3781_v32 = vadd.f32 %v4719_v28, %v3713_v16  ;;  %v5491_v16 = vpack.c.bf16 %v4081_v22, %v4080_v1  ;;  %v4065_v28 = vld [vmem:[%s7654_s29 + $0x68] sm:$0xff]  ;;  %v4090_v1 = vld [vmem:[%s7654_s29 + $0x130] sm:$0xff]  ;;  %v4091_v22 = vld [vmem:[%s7654_s29 + $0x138] sm:$0xff] }
 0xe0a   : > { %v5493_v29 = vpack.c.bf16 %v4065_v28, %v4064_v43  ;;  %v5513_v28 = vpack.c.bf16 %v4091_v22, %v4090_v1 }
 0xe0b   : > { %v3784_v36 = vmax.f32 %v3781_v32, 0.0  ;;  %v4066_v32 = vld [vmem:[%s7654_s29 + $0x70] sm:$0xff] }
 0xe0d   : > { %4602 = vmatmul.mubr.msk.f32.vlgmr.msra.gmra.mrb[38].mxu1 %vm1723_vm9, %v3784_v36 }
 0xe0e   : > { %5456 = vmatpush1.bf16.msra.mxu1 %v5455_v33  ;;  %3970 = vmatprep.mubr.f32.mxu1 %v5958_v0  ;;  %v4067_v33 = vld [vmem:[%s7654_s29 + $0x78] sm:$0xff] }
 0xe0f   : > { %5458 = vmatprep.subr.bf16.mxu1 %v5457_v37  ;;  %v4116_v37 = vld [vmem:[%s7654_s29 + $0x200] sm:$0xff] }
 0xe10   : > { %v5532_v44 = vpack.c.bf16 %v4117_v39, %v4116_v37 }
 0xe12   : > { %5460 = vmatpush1.bf16.msra.mxu1 %v5459_v26  ;;  %v4100_v26 = vld [vmem:[%s7654_s29 + $0x180] sm:$0xff]  ;;  %5533 = vmatpush3.bf16.msra.mxu0 %v5532_v44 }
 0xe13   : > { %5461 = vmatprep.subr.bf16.mxu1 %v5966_v63  ;;  %v5499_v38 = vpack.c.bf16 %v4101_v14, %v4100_v26  ;;  %5534 = vmatprep.subr.bf16.mxu0 %v5966_v63  ;;  %v4094_v26 = vld [vmem:[%s7654_s29 + $0x150] sm:$0xff]  ;;  %v4095_v14 = vld [vmem:[%s7654_s29 + $0x158] sm:$0xff] }
 0xe15   : > { %4603 = vmatmul.mubr.msk.f32.vlgmr.msra.gmra.mrb[40].mxu1 %vm1723_vm9, %v3784_v36 }
 0xe16   : > { %5463 = vmatpush3.bf16.msra.mxu1 %v5462_v24  ;;  %4941 = vmatprep.mubr.msk.f32.mxu1 %vm5967_vm15, %v5958_v0  ;;  %v5469_v0 = vpack.c.bf16 %v4053_v20, %v4052_v53  ;;  %v4118_v24 = vld [vmem:[%s7654_s29 + $0x210] sm:$0xff]  ;;  %v4123_v53 = vld [vmem:[%s7654_s29 + $0x238] sm:$0xff] }
 0xe17   : > { %5464 = vmatprep.subr.bf16.mxu1 %v5966_v63  ;;  %v5535_v48 = vpack.c.bf16 %v4119_v47, %v4118_v24  ;;  %v4113_v24 = vld [vmem:[%s7654_s29 + $0x1e8] sm:$0xff]  ;;  %v5521_v47 = vpack.c.bf16 %v4095_v14, %v4094_v26 }
 0xe19   : > { %5536 = vmatpush3.bf16.msra.mxu0 %v5535_v48 }
 0xe1a   : > { %5466 = vmatpush3.bf16.msra.mxu1 %v5465_v51  ;;  %5537 = vmatprep.subr.bf16.mxu0 %v5966_v63  ;;  %v5538_v51 = vpack.c.bf16 %v4121_v50, %v4120_v49  ;;  %v4096_v49 = vld [vmem:[%s7654_s29 + $0x160] sm:$0xff]  ;;  %v4097_v50 = vld [vmem:[%s7654_s29 + $0x168] sm:$0xff] }
 0xe1b   : > { %5468 = vmatprep.subr.bf16.mxu1 %v5467_v52  ;;  %v4122_v52 = vld [vmem:[%s7654_s29 + $0x230] sm:$0xff] }
 0xe1c   : > { %v5541_v20 = vpack.c.bf16 %v4123_v53, %v4122_v52  ;;  %v4115_v52 = vld [vmem:[%s7654_s29 + $0x1f8] sm:$0xff]  ;;  %v5525_v53 = vpack.c.bf16 %v4097_v50, %v4096_v49 }
 0xe1d   : > { %4942 = vmatmul.mubr.msk.f32.vlgmr.msra.gmra.mrb[42].mxu1 %vm1723_vm9, %v3784_v36  ;;  %v5497_v36 = vpack.c.bf16 %v4067_v33, %v4066_v32  ;;  %5539 = vmatpush3.bf16.msra.mxu0 %v5538_v51  ;;  %v4093_v32 = vld [vmem:[%s7654_s29 + $0x148] sm:$0xff]  ;;  %v4110_v33 = vld [vmem:[%s7654_s29 + $0x1d0] sm:$0xff]  ;;  %vm4351_vm9 = vcmask 57376  }
 0xe1e   : > { %5470 = vmatpush3.bf16.msra.mxu1 %v5469_v0  ;;  %5540 = vmatprep.subr.bf16.mxu0 %v5966_v63  ;;  %v3814_v63 = vrot.slane %v7445_v54, %v6468_v42  ;;  %v4114_v51 = vld [vmem:[%s7654_s29 + $0x1f0] sm:$0xff] }
 0xe1f   : > { %5472 = vmatprep.subr.bf16.mxu1 %v5471_v19 }
 0xe21   : > { %5542 = vmatpush3.bf16.msra.mxu0 %v5541_v20  ;;  %v3818_v20 = vrot.slane %v7445_v54, %v3379_v41 }
 0xe22   : > { %5474 = vmatpush3.bf16.msra.mxu1 %v5473_v34  ;;  %v4102_v34 = vld [vmem:[%s7654_s29 + $0x190] sm:$0xff] }
 0xe23   : > { %5476 = vmatprep.subr.bf16.mxu1 %v5475_v45  ;;  %v5501_v45 = vpack.c.bf16 %v4085_v60, %v4084_v57  ;;  %v5503_v4 = vpack.c.bf16 %v4103_v40, %v4102_v34  ;;  %v4124_v34 = vld [vmem:[%s7656_s14] sm:$0x1] }
 0xe26   : > { %5478 = vmatpush3.bf16.msra.mxu1 %v5477_v6  ;;  %v3822_v6 = vrot.slane %v7445_v54, %v3383_v21  ;;  %v4088_v21 = vld [vmem:[%s7654_s29 + $0x120] sm:$0xff] }
 0xe27   : > { %5480 = vmatprep.subr.bf16.mxu1 %v5479_v7  ;;  %v4104_v7 = vld [vmem:[%s7654_s29 + $0x1a0] sm:$0xff] }
 0xe2a   : > { %5482 = vmatpush3.bf16.msra.mxu1 %v5481_v13  ;;  %v5507_v13 = vpack.c.bf16 %v4105_v8, %v4104_v7 }
 0xe2b   : > { %5484 = vmatprep.subr.bf16.mxu1 %v5483_v15  ;;  %v3825_v15 = vsub.s32 4, %v6376_v59 }
 0xe2d   : > { %v3826_v18 = vrot.slane %v7445_v54, %v3825_v15 }
 0xe2e   : > { %5486 = vmatpush3.bf16.msra.mxu1 %v5485_v12 }
 0xe2f   : > { %5488 = vmatprep.subr.bf16.mxu1 %v5487_v35  ;;  %v5509_v35 = vpack.c.bf16 %v4089_v61, %v4088_v21 }
 0xe32   : > { %5490 = vmatpush3.bf16.msra.mxu1 %v5489_v55  ;;  %v4108_v55 = vld [vmem:[%s7654_s29 + $0x1c0] sm:$0xff] }
 0xe33   : > { %5492 = vmatprep.subr.bf16.mxu1 %v5491_v16  ;;  %v4109_v16 = vld [vmem:[%s7654_s29 + $0x1c8] sm:$0xff] }
 0xe34   : > { %v5515_v31 = vpack.c.bf16 %v4109_v16, %v4108_v55 }
 0xe36   : > { %5494 = vmatpush3.bf16.msra.mxu1 %v5493_v29 }
 0xe37   : > { %5496 = vmatprep.subr.bf16.mxu1 %v5495_v56  ;;  %v4092_v56 = vld [vmem:[%s7654_s29 + $0x140] sm:$0xff] }
 0xe38   : > { %v5517_v39 = vpack.c.bf16 %v4093_v32, %v4092_v56 }
 0xe3a   : > { %5498 = vmatpush3.bf16.msra.mxu1 %v5497_v36  ;;  %v4111_v36 = vld [vmem:[%s7654_s29 + $0x1d8] sm:$0xff] }
 0xe3b   : > { %5500 = vmatprep.subr.bf16.mxu1 %v5499_v38  ;;  %v5519_v44 = vpack.c.bf16 %v4111_v36, %v4110_v33  ;;  %v4112_v38 = vld [vmem:[%s7654_s29 + $0x1e0] sm:$0xff] }
 0xe3c   : > { %v5523_v48 = vpack.c.bf16 %v4113_v24, %v4112_v38 }
 0xee0   : > { %v3901_v0 = vpop.f32.mrb[38].mxu1 }
 0xee1   : > { %v3902_v19 = vadd.f32 %v3901_v0, %v3810_v27  ;;  %v3903_v25 = vpop.f32.mrb[39].mxu1  ;;  %v5527_v27 = vpack.c.bf16 %v4115_v52, %v4114_v51  ;;  %v4099_v0 = vld [vmem:[%s7654_s29 + $0x178] sm:$0xff] }
 0xee2   : > { %v3904_v62 = vadd.f32 %v3903_v25, %v3814_v63  ;;  %v4098_v63 = vld [vmem:[%s7654_s29 + $0x170] sm:$0xff] }
 0xee3   : > { %v4047_v3 = vmax.f32 %v3902_v19, 0.0  ;;  %v5529_v19 = vpack.c.bf16 %v4099_v0, %v4098_v63 }
 0xee4   : > { %v4048_v42 = vmax.f32 %v3904_v62, 0.0 }
 0xee6   : > { %4192 = vmatprep.mubr.f32.mxu1 %v4048_v42 }
 0xee7   : > { %4193 = vmatmul.mubr.f32.vlgmr.msra.gmra.mrb[44].mxu1 %v4047_v3 }
 0xee8   : > { %v3972_v9 = vpop.f32.mrb[40].mxu1  ;;  %5502 = vmatpush3.bf16.msra.mxu1 %v5501_v45 }
 0xee9   : > { %v3974_v11 = vpop.f32.mrb[41].mxu1  ;;  %5504 = vmatprep.subr.bf16.mxu1 %v5503_v4  ;;  %v3973_v25 = vadd.f32 %v3972_v9, %v3818_v20 }
 0xeea   : > { %v3975_v17 = vadd.f32 %v3974_v11, %v3822_v6 }
 0xeeb   : > { %v4049_v57 = vmax.f32 %v3973_v25, 0.0 }
 0xeec   : > { %v4050_v12 = vmax.f32 %v3975_v17, 0.0  ;;  %5506 = vmatpush3.bf16.msra.mxu1 %v5505_v58 }
 0xeed   : > { %5508 = vmatprep.subr.bf16.mxu1 %v5507_v13 }
 0xeee   : > { %4262 = vmatprep.mubr.f32.mxu1 %v4050_v12 }
 0xef0   : > { %v4043_v43 = vpop.f32.mrb[42].mxu1  ;;  %5510 = vmatpush3.bf16.msra.mxu1 %v5509_v35 }
 0xef1   : > { %v4044_v29 = vadd.f32 %v4043_v43, %v3826_v18  ;;  %v4943_v30 = vpop.f32.mrb[43].mxu1  ;;  %5512 = vmatprep.subr.bf16.mxu1 %v5511_v10 }
 0xef3   : > { %v4051_v37 = vmax.f32 %v4044_v29, 0.0 }
 0xef4   : > { %5514 = vmatpush3.bf16.msra.mxu1 %v5513_v28 }
 0xef5   : > { %4961 = vmatmul.mubr.msk.f32.vlgmr.msra.gmra.mrb[28].mxu0 %vm1376_vm13, %v4051_v37  ;;  %5516 = vmatprep.subr.bf16.mxu1 %v5515_v31  ;;  %vm4368_vm13 = vcmask 90176  }
 0xef8   : > { %5518 = vmatpush3.bf16.msra.mxu1 %v5517_v39 }
 0xef9   : > { %5520 = vmatprep.subr.bf16.mxu1 %v5519_v44 }
 0xefc   : > { %5522 = vmatpush3.bf16.msra.mxu1 %v5521_v47 }
 0xefd   : > { %5524 = vmatprep.subr.bf16.mxu1 %v5523_v48 }
 0xf00   : > { %5526 = vmatpush3.bf16.msra.mxu1 %v5525_v53 }
 0xf01   : > { %5528 = vmatprep.subr.bf16.mxu1 %v5527_v27 }
 0xf04   : > { %5530 = vmatpush3.bf16.msra.mxu1 %v5529_v19 }
 0xf07   : > { %4263 = vmatmul.mubr.f32.vlgmr.msra.gmra.mrb[46].mxu1 %v4049_v57 }
 0xfba   : > { %v4757_v59 = vpop.f32.mrb[44].mxu1 }
 0xfbb   : > { %v4758_v60 = vpop.f32.mrb[45].mxu1 }
 0xfbc   : > { %v4759_v41 = vadd.f32 %v4758_v60, %v4757_v59 }
 0xfbe   : > { %v4195_v45 = vadd.f32 %v4759_v41, %v4124_v34 }
 0xfc8   : > { %v4334_v54 = vpop.f32.mrb[28].mxu0 }
 0xfc9   : > { %v4962_v62 = vpop.f32.mrb[29].mxu0 }
 0xfda   : > { %v4792_v40 = vpop.f32.mrb[46].mxu1 }
 0xfdb   : > { %v4793_v42 = vpop.f32.mrb[47].mxu1 }
 0xfdc   : > { %v4794_v3 = vadd.f32 %v4793_v42, %v4792_v40 }
 0xfde   : > { %v4265_v4 = vadd.f32 %v4794_v3, %v4195_v45 }
 0xfe0   : > { %v7553_v5 = vadd.f32 %v4334_v54, %v4265_v4 }
 0xfe2   : > { %v4369_v2 = vsel %vm4368_vm13, %v7553_v5, -inf  ;;  %v4352_v6 = vsel %vm4351_vm9, %v7553_v5, -inf  ;;  %v4386_v7 = vsel %vm4385_vm4, %v7553_v5, -inf  ;;  %v4339_v8 = vsel %vm4338_vm5, %v7553_v5, -inf }
 0xfe3   : > { %4370 = vmax.xlane.f32.xlu0 %v4369_v2  ;;  %4353 = vmax.xlane.f32.xlu1 %v4352_v6 }
 0xfe7   : > { %4387 = vmax.xlane.f32.xlu0 %v4386_v7  ;;  %4340 = vmax.xlane.f32.xlu1 %v4339_v8 }
0x1070   : > { %v4371_v9 = vpop.xlane.xlu0 %4370  ;;  %v4354_v58 = vpop.xlane.xlu1 %4353 }
0x1071   : > { %v4372_v11 = vsub.f32 %v7553_v5, %v4371_v9  ;;  %v4355_v13 = vsub.f32 %v7553_v5, %v4354_v58 }
0x1073   : > { %v4373_v15 = vmul.f32 1.442695, %v4372_v11  ;;  %v4356_v21 = vmul.f32 1.442695, %v4355_v13 }
0x1074   : > { %v4388_v61 = vpop.xlane.xlu0 %4387  ;;  %v4341_v18 = vpop.xlane.xlu1 %4340 }
0x1075   : > { %5710 = vpow2.f32 %v4373_v15  ;;  %v4389_v17 = vsub.f32 %v7553_v5, %v4388_v61  ;;  %v4342_v10 = vsub.f32 %v7553_v5, %v4341_v18 }
0x1076   : > { %5712 = vpow2.f32 %v4356_v21 }
0x1077   : > { %v4390_v46 = vmul.f32 1.442695, %v4389_v17  ;;  %v4343_v1 = vmul.f32 1.442695, %v4342_v10 }
0x1079   : > { %5714 = vpow2.f32 %v4390_v46 }
0x107a   : > { %5716 = vpow2.f32 %v4343_v1 }
0x107f   : > { %v5711_v23 = vpop.eup %5710 }
0x1080   : > { %v5713_v12 = vpop.eup %5712  ;;  %4376 = vrot.lane.b32.xlu1 %v5711_v23, %s5968_s30 }
0x1081   : > { %4359 = vrot.lane.b32.xlu0 %v5713_v12, %s5969_s20 }
0x1083   : > { %v5715_v35 = vpop.eup %5714 }
0x1084   : > { %4393 = vrot.lane.b32.xlu1 %v5715_v35, %s5970_s22  ;;  %v5717_v22 = vpop.eup %5716 }
0x1085   : > { %v4345_v55 = vsel %vm4338_vm5, %v5717_v22, 0.0 }
0x10a0   : > { %4346 = vadd.xlane.f32.xlu0 %v4345_v55 }
0x10f2   : > { %v4377_v16 = vpop.permute.xlu1 %4376 }
0x10f3   : > { %v4360_v43 = vpop.permute.xlu0 %4359  ;;  %v4379_v28 = vsel %vm4338_vm5, %v4377_v16, 0.0 }
0x10f4   : > { %v4362_v29 = vsel %vm4338_vm5, %v4360_v43, 0.0  ;;  %4380 = vadd.xlane.f32.xlu0 %v4379_v28 }
0x10f5   : > { %4363 = vadd.xlane.f32.xlu1 %v4362_v29 }
0x10f6   : > { %v4394_v30 = vpop.permute.xlu1 %4393 }
0x10f7   : > { %v4396_v31 = vsel %vm4338_vm5, %v4394_v30, 0.0 }
0x10f8   : > { %4397 = vadd.xlane.f32.xlu0 %v4396_v31 }
0x112d   : > { %v4347_v56 = vpop.xlane.xlu0 %4346 }
0x112e   : > { %5718 = vrcp.f32 %v4347_v56 }
0x1138   : > { %v5719_v32 = vpop.eup %5718 }
0x1139   : > { %v4349_v33 = vmul.f32 %v5719_v32, %v5717_v22 }
0x113b   : > { %4350 = vst.msk [vmem:[%s637_s11] sm:$0x1] %vm4338_vm5, %v4349_v33 }
0x1181   : > { %v4381_v36 = vpop.xlane.xlu0 %4380 }
0x1182   : > { %5720 = vrcp.f32 %v4381_v36  ;;  %v4364_v37 = vpop.xlane.xlu1 %4363 }
0x1183   : > { %5722 = vrcp.f32 %v4364_v37 }
0x1185   : > { %v4398_v39 = vpop.xlane.xlu0 %4397 }
0x1186   : > { %5724 = vrcp.f32 %v4398_v39 }
0x118c   : > { %v5721_v44 = vpop.eup %5720 }
0x118d   : > { %v5723_v26 = vpop.eup %5722  ;;  %v4383_v14 = vmul.f32 %v5721_v44, %v5711_v23 }
0x118e   : > { %v4366_v38 = vmul.f32 %v5723_v26, %v5713_v12 }
0x1190   : > { %v5725_v24 = vpop.eup %5724  ;;  %4367 = vst.msk [vmem:[%s637_s11] sm:$0x1] %vm4351_vm9, %v4366_v38 }
0x1191   : > { %4384 = vst.msk [vmem:[%s637_s11] sm:$0x1] %vm4368_vm13, %v4383_v14  ;;  %v4400_v47 = vmul.f32 %v5725_v24, %v5715_v35 }
0x1193   : > { %4401 = vst.msk [vmem:[%s637_s11] sm:$0x1] %vm4385_vm4, %v4400_v47 }
0x1194   : > { %4403 = vst.msk [vmem:[%s637_s11] sm:$0x1] %vm4402_vm6, %v7553_v5 }
0x1195 PF: > { %p30_p2 = scmp.ge.s32.totalorder %s6222_s8, 4   ;;  %s7658_s24 = smov %s5934_s25 }
0x1196   : > { %s7659_s25 = smov %s5938_s26  ;;  %s7660_s26 = smov %s6233_s23 }
0x1197   : > { %s7661_s27 = smov %s6222_s8  ;;  %32 = sbr.rel (!%p30_p2) target bundleno = 17 (0x11), region = 154 }
0x119e   :  { %4421 = vsyncpa [#allocation3], 1 }
0x119f   :  { %4423 = vsyncpa [#allocation3 + $0x1], 1 }
0x11a0   :  { %4424 = vsyncpa [#allocation5], 1 }
0x11a1   :  { %4425 = vsyncpa [#allocation8], 1 }
0x11a2   :  { %4426 = vsyncpa [#allocation11], 1 }

</bundles_post_ra>
